<compile_context>
chip_gen: v5e
topology: v5e:2x2
jax: 0.10.0
libtpu: 0.0.40
codegen_flags: <defaults>
</compile_context>

<pallas_src>
import functools
import math

import jax
import jax.numpy as jnp
from jax.experimental import pallas as pl
from jax.experimental.pallas import tpu as pltpu


def _round_up(x, m):
    return (x + m - 1) // m * m


# ----------------------------------------------------------------------------
# Pallas kernel: tiled matmul + bias (+ReLU-in/out, +residual add)
# ----------------------------------------------------------------------------
def _mm_bias_kernel(x_ref, w_ref, b_ref, *rest, relu_in, relu_out, n_k, tk, has_add):
    if has_add:
        add_ref, o_ref, acc_ref = rest
    else:
        o_ref, acc_ref = rest

    k = pl.program_id(2)

    @pl.when(k == 0)
    def _():
        acc_ref[...] = jnp.zeros_like(acc_ref)

    x = x_ref[...]
    if relu_in:
        x = jnp.maximum(x, 0)
    k0 = pl.multiple_of(k * tk, 128)
    wk = w_ref[pl.ds(k0, tk), :]               # weight panel is VMEM-resident
    acc_ref[...] += jnp.dot(x, wk, preferred_element_type=jnp.float32)

    @pl.when(k == n_k - 1)
    def _():
        out = acc_ref[...] + b_ref[...]
        if has_add:
            out = out + add_ref[...].astype(jnp.float32)
        if relu_out:
            out = jnp.maximum(out, 0.0)
        o_ref[...] = out.astype(o_ref.dtype)


def matmul_bias(x, w, b, *, add=None, relu_in=False, relu_out=False,
                out_dtype=jnp.bfloat16):
    """x:(M,Kp) any float dtype, w:(Kp,Np) bf16 pre-padded, b:(1,Np) f32.
    Returns (M, Np) in `out_dtype`.  f32 MXU accumulation, f32 epilogue."""
    M, Kp = x.shape
    Kw, Np = w.shape
    assert Kp == Kw and Kp % 128 == 0 and Np % 128 == 0

    tm = 512 if M >= 512 else (256 if M >= 256 else 128)
    tn = Np if Np <= 512 else (512 if Np % 512 == 0 else (256 if Np % 256 == 0 else 128))
    tk = Kp if Kp <= 512 else (512 if Kp % 512 == 0 else (256 if Kp % 256 == 0 else 128))
    Mp = _round_up(M, tm)
    if Mp // tm == 1 and Np // tn == 1 and Mp >= 256:
        tm //= 2                     # v7x: expose >= 2 parallel blocks (2 TCs)
    grid = (Mp // tm, Np // tn, Kp // tk)

    xp = x.astype(jnp.bfloat16)
    if Mp != M:
        xp = jnp.pad(xp, ((0, Mp - M), (0, 0)))

    in_specs = [
        pl.BlockSpec((tm, tk), lambda i, j, k: (i, k)),
        pl.BlockSpec((Kp, tn), lambda i, j, k: (0, j)),   # resident weight panel
        pl.BlockSpec((1, tn), lambda i, j, k: (0, j)),
    ]
    args = [xp, w, b]
    has_add = add is not None
    if has_add:
        addp = add.astype(jnp.bfloat16)
        Ma, Na = addp.shape
        if Ma != Mp or Na != Np:
            addp = jnp.pad(addp, ((0, Mp - Ma), (0, Np - Na)))
        in_specs.append(pl.BlockSpec((tm, tn), lambda i, j, k: (i, j)))
        args.append(addp)

    kernel = functools.partial(_mm_bias_kernel, relu_in=relu_in, relu_out=relu_out,
                               n_k=grid[2], tk=tk, has_add=has_add)
    out = pl.pallas_call(
        kernel,
        out_shape=jax.ShapeDtypeStruct((Mp, Np), out_dtype),
        grid_spec=pltpu.PrefetchScalarGridSpec(
            num_scalar_prefetch=0,
            grid=grid,
            in_specs=in_specs,
            out_specs=pl.BlockSpec((tm, tn), lambda i, j, k: (i, j)),
            scratch_shapes=[pltpu.VMEM((tm, tn), jnp.float32)]),
        compiler_params=pltpu.CompilerParams(
            dimension_semantics=("parallel", "parallel", "arbitrary"),
            vmem_limit_bytes=48 * 1024 * 1024),
    )(*args)
    if Mp != M:
        out = out[:M]
    return out


# ----------------------------------------------------------------------------
# Pallas kernel: fused SoftQuantize (LayerNorm -> scores -> softmax -> argmax
#                -> probs @ codebook), tiled over rows, resident codebooks.
# ----------------------------------------------------------------------------
def _soft_quantize_kernel(x_ref, et_ref, e_ref, g_ref, b_ref, q_ref, idx_ref,
                          *, dim, vocab, cp, vp):
    x = x_ref[...].astype(jnp.float32)                       # (tm, Cp)
    inv_d = 1.0 / dim
    # Padded channels are exactly zero, so no mask is needed for the mean.
    mean = jnp.sum(x, axis=-1, keepdims=True) * inv_d
    cent = x - mean
    ssq = jnp.sum(cent * cent, axis=-1, keepdims=True)
    if cp != dim:                                            # analytic pad fix-up
        ssq = ssq - (cp - dim) * (mean * mean)
    var = ssq * inv_d
    xn = cent * jax.lax.rsqrt(var + 1e-5) * g_ref[...] + b_ref[...]

    # scores = ln(x) @ (E^T / sqrt(d)); E^T is a separate resident operand so
    # the codebook is never transposed through the XLU in-kernel.
    scores = jnp.dot(xn.astype(jnp.bfloat16), et_ref[...],
                     preferred_element_type=jnp.float32)     # (tm, Vp)
    col_v = jax.lax.broadcasted_iota(jnp.int32, scores.shape, 1)
    if vp != vocab:
        scores = jnp.where(col_v < vocab, scores, -1e30)
    m = jnp.max(scores, axis=-1, keepdims=True)
    p = jnp.exp(scores - m)
    probs = p * pl.reciprocal(jnp.sum(p, axis=-1, keepdims=True), approx=True)

    # argmax with torch's first-max tie-breaking.
    idx_ref[...] = jnp.min(jnp.where(scores >= m, col_v, vp),
                           axis=-1, keepdims=True).astype(jnp.int32)

    # quantize = probs @ E (forward value of the straight-through estimator).
    q_ref[...] = jnp.dot(probs.astype(jnp.bfloat16), e_ref[...],
                         preferred_element_type=jnp.float32).astype(q_ref.dtype)


def soft_quantize(x_btc, q):
    B, T, Cin = x_btc.shape
    e, et = q["e"], q["et"]
    Vp, Cp = e.shape
    C, V = q["dim"], q["vocab"]
    M = B * T
    tm = 256 if M >= 256 else 128
    Mp = _round_up(M, tm)
    if Mp // tm == 1 and Mp >= 256:
        tm //= 2                                             # v7x: 2 parallel blocks

    xf = x_btc.reshape(M, Cin)
    if Cin != Cp:
        xf = jnp.pad(xf, ((0, 0), (0, Cp - Cin)))
    if Mp != M:
        xf = jnp.pad(xf, ((0, Mp - M), (0, 0)))

    kernel = functools.partial(_soft_quantize_kernel, dim=C, vocab=V, cp=Cp, vp=Vp)
    qv, idx = pl.pallas_call(
        kernel,
        out_shape=(jax.ShapeDtypeStruct((Mp, Cp), jnp.bfloat16),
                   jax.ShapeDtypeStruct((Mp, 1), jnp.int32)),
        grid_spec=pltpu.PrefetchScalarGridSpec(
            num_scalar_prefetch=0,
            grid=(Mp // tm,),
            in_specs=[
                pl.BlockSpec((tm, Cp), lambda i: (i, 0)),
                pl.BlockSpec((Cp, Vp), lambda i: (0, 0)),    # E^T/sqrt(d), resident
                pl.BlockSpec((Vp, Cp), lambda i: (0, 0)),    # E, resident
                pl.BlockSpec((1, Cp), lambda i: (0, 0)),
                pl.BlockSpec((1, Cp), lambda i: (0, 0)),
            ],
            out_specs=(
                pl.BlockSpec((tm, Cp), lambda i: (i, 0)),
                # TODO(synk): last-dim-1 index store is lane-sparse (vst.msk);
                # traffic is negligible so it is kept for simplicity.
                pl.BlockSpec((tm, 1), lambda i: (i, 0)),
            )),
        compiler_params=pltpu.CompilerParams(
            dimension_semantics=("parallel",),
            vmem_limit_bytes=32 * 1024 * 1024),
    )(xf, et, e, q["gamma"], q["beta"])
    if Mp != M:
        qv, idx = qv[:M], idx[:M]
    return qv.reshape(B, T, Cp), idx[:, 0].reshape(B, T)


# ----------------------------------------------------------------------------
# Conv glue: bf16 im2col (plain-JAX data movement) feeding the Pallas matmul
# ----------------------------------------------------------------------------
def _im2col(x, kh, kw, stride, pad_h, pad_w, k_pad_to):
    B, H, W, C = x.shape
    if any(pad_h) or any(pad_w):
        x = jnp.pad(x, ((0, 0), pad_h, pad_w, (0, 0)))
    Hp = H + pad_h[0] + pad_h[1]
    Wp = W + pad_w[0] + pad_w[1]
    Ho = (Hp - kh) // stride + 1
    Wo = (Wp - kw) // stride + 1
    K = kh * kw * C
    assert K <= k_pad_to
    if kh == 1 and kw == 1 and stride == 1:
        patches = x
    else:
        cols = [x[:, i:i + stride * Ho:stride, j:j + stride * Wo:stride, :]
                for i in range(kh) for j in range(kw)]
        patches = jnp.concatenate(cols, axis=-1) if len(cols) > 1 else cols[0]
    if k_pad_to != K:   # fold the K pad into the (single) patch materialization
        patches = jnp.concatenate(
            [patches, jnp.zeros((B, Ho, Wo, k_pad_to - K), x.dtype)], axis=-1)
    return patches.reshape(B * Ho * Wo, k_pad_to), Ho, Wo


def conv2d(x_nhwc, prep, *, relu_in=False, relu_out=False, add=None,
           out_dtype=jnp.bfloat16, keep_padded_channels=False):
    B = x_nhwc.shape[0]
    kh, kw = prep["kh"], prep["kw"]
    stride, pad = prep["stride"], prep["pad"]
    C_out = prep["cout"]
    Kp, Np = prep["w"].shape
    if isinstance(pad, int):
        pad_h = pad_w = (pad, pad)
    else:
        pad_h, pad_w = pad
    patches, Ho, Wo = _im2col(x_nhwc.astype(jnp.bfloat16), kh, kw, stride,
                              pad_h, pad_w, Kp)
    add_mat = None if add is None else add.reshape(B * Ho * Wo, add.shape[-1])
    out = matmul_bias(patches, prep["w"], prep["b"], add=add_mat,
                      relu_in=relu_in, relu_out=relu_out, out_dtype=out_dtype)
    out = out.reshape(B, Ho, Wo, Np)
    if not keep_padded_channels and Np != C_out:
        out = out[..., :C_out]
    return out


def conv_transpose2d(x_nhwc, prep, *, relu_in=False, relu_out=False,
                     out_dtype=jnp.bfloat16):
    """Sub-pixel decomposition; for stride>1 the s^2 phase sub-kernels are
    concatenated along N so one im2col + one pallas_call covers all phases."""
    if prep["kind"] == "conv":             # stride-1: plain conv of flipped kernel
        return conv2d(x_nhwc, prep, relu_in=relu_in, relu_out=relu_out,
                      out_dtype=out_dtype)

    B, H, W, _ = x_nhwc.shape
    s, k, p = prep["s"], prep["k"], prep["p"]
    C_out, Mh, Mw = prep["cout"], prep["Mh"], prep["Mw"]
    Ho = (H - 1) * s + k - 2 * p
    Wo = (W - 1) * s + k - 2 * p

    phases = []
    for ph in prep["phases"]:
        Qh = -(-(Ho - ph["rh"]) // s)
        Qw = -(-(Wo - ph["rw"]) // s)
        hh = (Qh - 1 + ph["ch"]) - (H - 1)
        hw = (Qw - 1 + ph["cw"]) - (W - 1)
        assert ph["lh"] >= 0 and ph["lw"] >= 0 and hh >= 0 and hw >= 0, \
            "TODO(synk): unsupported transposed-conv geometry"
        phases.append(dict(ph, Qh=Qh, Qw=Qw, hh=hh, hw=hw))
    Lh = max(ph["lh"] for ph in phases)
    Lw = max(ph["lw"] for ph in phases)
    Hh = max(ph["hh"] for ph in phases)
    Hw = max(ph["hw"] for ph in phases)

    Kp = prep["w"].shape[0]
    patches, Uh, Uw = _im2col(x_nhwc.astype(jnp.bfloat16), Mh, Mw, 1,
                              (Lh, Hh), (Lw, Hw), Kp)
    out = matmul_bias(patches, prep["w"], prep["b"], relu_in=relu_in,
                      relu_out=relu_out, out_dtype=out_dtype)
    out = out.reshape(B, Uh, Uw, out.shape[-1])

    same_q = (len({ph["Qh"] for ph in phases}) == 1 and
              len({ph["Qw"] for ph in phases}) == 1)
    if same_q and Ho % s == 0 and Wo % s == 0:
        rows = []
        for rh in range(s):
            cols_ = []
            for rw in range(s):
                g = rh * s + rw
                ph = phases[g]
                r0, c0 = Lh - ph["lh"], Lw - ph["lw"]
                cols_.append(out[:, r0:r0 + ph["Qh"], c0:c0 + ph["Qw"],
                                 g * C_out:(g + 1) * C_out])
            rows.append(jnp.stack(cols_, axis=3))            # (B,Qh,Qw,s,C)
        stacked = jnp.stack(rows, axis=2)                    # (B,Qh,s,Qw,s,C)
        return stacked.reshape(B, Ho, Wo, C_out)

    y = jnp.zeros((B, Ho, Wo, C_out), out_dtype)
    for rh in range(s):
        for rw in range(s):
            g = rh * s + rw
            ph = phases[g]
            r0, c0 = Lh - ph["lh"], Lw - ph["lw"]
            win = out[:, r0:r0 + ph["Qh"], c0:c0 + ph["Qw"],
                      g * C_out:(g + 1) * C_out]
            y = y.at[:, rh::s, rw::s, :].set(win)
    return y


# ----------------------------------------------------------------------------
# Parameter init (torch layout) and one-time preparation (matmul layout).
# ----------------------------------------------------------------------------
def _init_conv(key, c_out, c_in, k):
    k1, k2 = jax.random.split(key)
    fan_in = c_in * k * k
    return {"w": jax.random.normal(k1, (c_out, c_in, k, k), jnp.float32) / math.sqrt(fan_in),
            "b": 0.01 * jax.random.normal(k2, (c_out,), jnp.float32)}


def _init_convT(key, c_in, c_out, k):
    k1, k2 = jax.random.split(key)
    fan_in = c_in * k * k
    return {"w": jax.random.normal(k1, (c_in, c_out, k, k), jnp.float32) / math.sqrt(fan_in),
            "b": 0.01 * jax.random.normal(k2, (c_out,), jnp.float32)}


def init_vqvae(key, *, in_channel, hid_channel, n_res_block, n_res_channel,
               embed_dim, n_embed, scale_factor):
    keys = iter(jax.random.split(key, 64))
    hid = hid_channel // (2 ** scale_factor)
    sub = [_init_conv(next(keys), hid, in_channel, 4)]
    for _ in range(scale_factor):
        sub.append(_init_conv(next(keys), hid * 2, hid, 4))
        hid *= 2
    sub.append(_init_conv(next(keys), hid_channel, hid, 3))
    enc_res = [{"c1": _init_conv(next(keys), n_res_channel, hid_channel, 3),
                "c2": _init_conv(next(keys), hid_channel, n_res_channel, 1)}
               for _ in range(n_res_block)]
    enc_out = _init_conv(next(keys), embed_dim, hid_channel, 1)
    quant = {"gamma": jnp.ones((embed_dim,), jnp.float32),
             "beta": jnp.zeros((embed_dim,), jnp.float32),
             "embd": jax.random.normal(next(keys), (n_embed, embed_dim), jnp.float32)}
    dec_in = _init_conv(next(keys), hid_channel, embed_dim, 1)
    dec_res = [{"c1": _init_conv(next(keys), n_res_channel, hid_channel, 3),
                "c2": _init_conv(next(keys), hid_channel, n_res_channel, 1)}
               for _ in range(n_res_block)]
    hid = hid_channel
    up = [_init_convT(next(keys), hid, hid, 3)]
    for _ in range(scale_factor):
        up.append(_init_convT(next(keys), hid, hid // 2, 4))
        hid //= 2
    up.append(_init_convT(next(keys), hid, in_channel, 4))
    return {"encoder": {"subsample": sub, "res": enc_res},
            "enc_out": enc_out, "quantize": quant, "dec_in": dec_in,
            "decoder": {"res": dec_res, "upsample": up}}


def _prep_conv(w, b, *, stride, pad):
    C_out, C_in, kh, kw = w.shape
    K, N = kh * kw * C_in, C_out
    Kp, Np = _round_up(K, 128), _round_up(N, 128)
    w_mat = jnp.transpose(w, (2, 3, 1, 0)).reshape(K, N).astype(jnp.bfloat16)
    if (Kp, Np) != (K, N):
        w_mat = jnp.pad(w_mat, ((0, Kp - K), (0, Np - N)))
    b_row = b.astype(jnp.float32).reshape(1, N)
    if Np != N:
        b_row = jnp.pad(b_row, ((0, 0), (0, Np - N)))
    return {"kind": "conv", "w": w_mat, "b": b_row, "kh": kh, "kw": kw,
            "cin": C_in, "cout": C_out, "stride": stride, "pad": pad}


def _prep_convT(w, b, *, stride, pad):
    C_in, C_out, k, _ = w.shape
    if stride == 1:
        w_conv = jnp.transpose(jnp.flip(w, axis=(2, 3)), (1, 0, 2, 3))
        return _prep_conv(w_conv, b, stride=1, pad=k - 1 - pad)
    assert k % stride == 0, "TODO(synk): general transposed-conv geometry"
    s = stride
    Mh = Mw = k // s
    subs, phases = [], []
    for rh in range(s):
        th, ch = (rh + pad) % s, (rh + pad) // s
        kh_taps = list(range(th, k, s))
        lh = (Mh - 1) - ch
        for rw in range(s):
            tw, cw = (rw + pad) % s, (rw + pad) // s
            kw_taps = list(range(tw, k, s))
            lw = (Mw - 1) - cw
            w_sub = w[:, :, kh_taps[::-1], :][:, :, :, kw_taps[::-1]]
            subs.append(jnp.transpose(w_sub, (2, 3, 0, 1)).reshape(Mh * Mw * C_in, C_out))
            phases.append({"rh": rh, "rw": rw, "lh": lh, "lw": lw, "ch": ch, "cw": cw})
    w_all = jnp.concatenate(subs, axis=1).astype(jnp.bfloat16)  # (Mh*Mw*Cin, s*s*Cout)
    b_all = jnp.concatenate([b] * (s * s)).astype(jnp.float32)
    K, N = w_all.shape
    Kp, Np = _round_up(K, 128), _round_up(N, 128)
    if (Kp, Np) != (K, N):
        w_all = jnp.pad(w_all, ((0, Kp - K), (0, Np - N)))
    b_row = b_all.reshape(1, N)
    if Np != N:
        b_row = jnp.pad(b_row, ((0, 0), (0, Np - N)))
    return {"kind": "convT", "w": w_all, "b": b_row, "s": s, "k": k, "p": pad,
            "cin": C_in, "cout": C_out, "Mh": Mh, "Mw": Mw, "phases": phases}


def prepare_params(params):
    """One-time (outside jit) conversion to padded/transposed matmul layout."""
    enc_sub = params["encoder"]["subsample"]
    sub_prep = [_prep_conv(c["w"], c["b"], stride=2, pad=1) for c in enc_sub[:-1]]
    sub_prep.append(_prep_conv(enc_sub[-1]["w"], enc_sub[-1]["b"], stride=1, pad=1))

    def prep_res(res):
        return [{"c1": _prep_conv(rb["c1"]["w"], rb["c1"]["b"], stride=1, pad=1),
                 "c2": _prep_conv(rb["c2"]["w"], rb["c2"]["b"], stride=1, pad=0)}
                for rb in res]

    q = params["quantize"]
    V, C = q["embd"].shape
    Cp, Vp = _round_up(C, 128), _round_up(V, 128)
    e = q["embd"].astype(jnp.float32)
    e_pad = jnp.pad(e, ((0, Vp - V), (0, Cp - C))) if (Vp, Cp) != (V, C) else e
    et = e.T * (1.0 / math.sqrt(C))          # fold 1/sqrt(d) into the scores operand
    et_pad = jnp.pad(et, ((0, Cp - C), (0, Vp - V))) if (Cp, Vp) != (C, V) else et
    gamma = q["gamma"].reshape(1, C).astype(jnp.float32)
    beta = q["beta"].reshape(1, C).astype(jnp.float32)
    if Cp != C:
        gamma = jnp.pad(gamma, ((0, 0), (0, Cp - C)))
        beta = jnp.pad(beta, ((0, 0), (0, Cp - C)))
    quant = {"e": e_pad.astype(jnp.bfloat16), "et": et_pad.astype(jnp.bfloat16),
             "gamma": gamma, "beta": beta, "dim": C, "vocab": V}

    up = params["decoder"]["upsample"]
    up_prep = [_prep_convT(up[0]["w"], up[0]["b"], stride=1, pad=1)]
    up_prep += [_prep_convT(c["w"], c["b"], stride=2, pad=1) for c in up[1:]]

    return {"encoder": {"subsample": sub_prep, "res": prep_res(params["encoder"]["res"])},
            "enc_out": _prep_conv(params["enc_out"]["w"], params["enc_out"]["b"],
                                  stride=1, pad=0),
            "quantize": quant,
            "dec_in": _prep_conv(params["dec_in"]["w"], params["dec_in"]["b"],
                                 stride=1, pad=0),
            "decoder": {"res": prep_res(params["decoder"]["res"]), "upsample": up_prep}}


# ----------------------------------------------------------------------------
# Forward pass (matches torch VQVAE.forward semantics)
# ----------------------------------------------------------------------------
def _res_blocks(res, x):
    # ResBlock: out = conv1x1(relu(conv3x3(relu(x)))) + x ; the module-trailing
    # ReLU (Encoder/Decoder) is fused into the last block's post-add epilogue.
    for ridx, rb in enumerate(res):
        h = conv2d(x, rb["c1"], relu_in=True, relu_out=True)
        x = conv2d(h, rb["c2"], add=x, relu_out=(ridx == len(res) - 1))
    return x, len(res) == 0          # True -> trailing ReLU still pending


def vqvae_forward(prep, x_nchw):
    x = jnp.transpose(x_nchw, (0, 2, 3, 1))                     # NCHW -> NHWC

    # Encoder: SubSampleBlock (ReLUs fused into producers) + ResBlocks + ReLU
    sub = prep["encoder"]["subsample"]
    x = conv2d(x, sub[0], relu_out=True)
    for pc in sub[1:-1]:
        x = conv2d(x, pc, relu_out=True)
    x = conv2d(x, sub[-1])
    x, relu_pending = _res_blocks(prep["encoder"]["res"], x)

    # enc_out 1x1 conv; keep the 128-padded channel layout (padded cols are
    # exactly zero) so SoftQuantize and dec_in consume it without re-padding.
    enc = conv2d(x, prep["enc_out"], relu_in=relu_pending,
                 out_dtype=jnp.float32, keep_padded_channels=True)
    B, H, W, _ = enc.shape
    quant, idxs = soft_quantize(enc.reshape(B, H * W, enc.shape[-1]),
                                prep["quantize"])
    quant = quant.reshape(B, H, W, quant.shape[-1])

    x = conv2d(quant, prep["dec_in"])

    # Decoder: ResBlocks + ReLU + SubsampleTransposeBlock
    x, relu_pending = _res_blocks(prep["decoder"]["res"], x)
    up = prep["decoder"]["upsample"]
    x = conv_transpose2d(x, up[0], relu_in=relu_pending, relu_out=True)
    for pc in up[1:-1]:
        x = conv_transpose2d(x, pc, relu_out=True)
    dec = conv_transpose2d(x, up[-1], out_dtype=jnp.float32)

    return jnp.transpose(dec, (0, 3, 1, 2)), idxs               # NHWC -> NCHW


# ----------------------------------------------------------------------------
if __name__ == "__main__":
    cfg = dict(in_channel=3, hid_channel=8, n_res_block=1, n_res_channel=4,
               embed_dim=8, n_embed=16, scale_factor=1)
    key = jax.random.PRNGKey(0)
    kp, kx = jax.random.split(key)
    params = init_vqvae(kp, **cfg)
    prepped = prepare_params(params)        # one-time weight pad/transpose (eager)
    x = jax.random.normal(kx, (2, 3, 16, 16), jnp.float32)      # NCHW like PyTorch

    fwd = jax.jit(functools.partial(vqvae_forward, prepped))
    dec, idxs = fwd(x)
    jax.block_until_ready((dec, idxs))

    assert dec.shape == (2, 3, 16, 16), dec.shape
    assert idxs.shape == (2, 16), idxs.shape                    # (B, H*W) latent indices
    assert dec.dtype == jnp.float32 and idxs.dtype == jnp.int32
    print("KERNEL_OK")
</pallas_src>

<mosaic_0001>
module attributes {stable_mosaic.version = 11 : i64} {
  func.func @_mm_bias_kernel(%arg0: i32, %arg1: i32, %arg2: i32, %arg3: memref<128x128xbf16, #tpu.memory_space<vmem>>, %arg4: memref<128x128xbf16, #tpu.memory_space<vmem>>, %arg5: memref<1x128xf32, #tpu.memory_space<vmem>>, %arg6: memref<128x128xbf16, #tpu.memory_space<vmem>>, %arg7: memref<128x128xf32, #tpu.memory_space<vmem>>) attributes {dimension_semantics = [#tpu.dimension_semantics<parallel>, #tpu.dimension_semantics<parallel>, #tpu.dimension_semantics<arbitrary>], iteration_bounds = array<i64: 1, 1, 1>, scalar_prefetch = 0 : i64, scratch_operands = 1 : i64, tpu.core_type = #tpu.core_type<tc>, window_params = [{transform_indices = @transform_0, window_bounds = array<i64: 128, 128>}, {transform_indices = @transform_1, window_bounds = array<i64: 128, 128>}, {transform_indices = @transform_2, window_bounds = array<i64: 1, 128>}, {transform_indices = @transform_3, window_bounds = array<i64: 128, 128>}]} {
    %c0_i32 = arith.constant 0 : i32
    %0 = arith.cmpi eq, %arg2, %c0_i32 : i32
    %1 = arith.extui %0 : i1 to i32
    %c0_i32_0 = arith.constant 0 : i32
    %2 = arith.cmpi ne, %1, %c0_i32_0 : i32
    scf.if %2 {
      %cst_9 = arith.constant 0.000000e+00 : f32
      %15 = vector.broadcast %cst_9 : f32 to vector<128x128xf32>
      %c0_10 = arith.constant 0 : index
      %c0_11 = arith.constant 0 : index
      %16 = vector.load %arg7[%c0_10, %c0_11] : memref<128x128xf32, #tpu.memory_space<vmem>>, vector<128x128xf32>
      tpu.vector_store %arg7[%c0_10, %c0_11], %15 {strides = array<i32>} : memref<128x128xf32, #tpu.memory_space<vmem>>, vector<128x128xf32>,
    } else {
    }
    %c0 = arith.constant 0 : index
    %c0_1 = arith.constant 0 : index
    %3 = vector.load %arg3[%c0, %c0_1] : memref<128x128xbf16, #tpu.memory_space<vmem>>, vector<128x128xbf16>
    %c128_i32 = arith.constant 128 : i32
    %4 = arith.muli %arg2, %c128_i32 : i32
    %5 = tpu.assume_multiple %4, 128 : i32
    %6 = arith.index_cast %5 : i32 to index
    %c0_2 = arith.constant 0 : index
    %7 = vector.load %arg4[%6, %c0_2] : memref<128x128xbf16, #tpu.memory_space<vmem>>, vector<128x128xbf16>
    %c0_3 = arith.constant 0 : index
    %c0_4 = arith.constant 0 : index
    %8 = vector.load %arg7[%c0_3, %c0_4] : memref<128x128xf32, #tpu.memory_space<vmem>>, vector<128x128xf32>
    %cst = arith.constant dense<0.000000e+00> : vector<128x128xf32>
    %9 = tpu.matmul %3, %7, %cst {dimension_numbers = #tpu.dot_dimension_numbers<[1], [0], [0], [1], [0, 0, 1, 1], [], []>} : vector<128x128xbf16>, vector<128x128xbf16>, vector<128x128xf32> -> vector<128x128xf32>
    %10 = arith.addf %8, %9 : vector<128x128xf32>
    %c0_5 = arith.constant 0 : index
    %c0_6 = arith.constant 0 : index
    %11 = vector.load %arg7[%c0_5, %c0_6] : memref<128x128xf32, #tpu.memory_space<vmem>>, vector<128x128xf32>
    tpu.vector_store %arg7[%c0_5, %c0_6], %10 {strides = array<i32>} : memref<128x128xf32, #tpu.memory_space<vmem>>, vector<128x128xf32>,
    %c0_i32_7 = arith.constant 0 : i32
    %12 = arith.cmpi eq, %arg2, %c0_i32_7 : i32
    %13 = arith.extui %12 : i1 to i32
    %c0_i32_8 = arith.constant 0 : i32
    %14 = arith.cmpi ne, %13, %c0_i32_8 : i32
    scf.if %14 {
      %c0_9 = arith.constant 0 : index
      %c0_10 = arith.constant 0 : index
      %15 = vector.load %arg7[%c0_9, %c0_10] : memref<128x128xf32, #tpu.memory_space<vmem>>, vector<128x128xf32>
      %c0_11 = arith.constant 0 : index
      %c0_12 = arith.constant 0 : index
      %16 = vector.load %arg5[%c0_11, %c0_12] : memref<1x128xf32, #tpu.memory_space<vmem>>, vector<1x128xf32>
      %17 = vector.broadcast %16 : vector<1x128xf32> to vector<128x128xf32>
      %18 = arith.addf %15, %17 : vector<128x128xf32>
      %cst_13 = arith.constant 0.000000e+00 : f32
      %19 = vector.broadcast %cst_13 : f32 to vector<128x128xf32>
      %20 = arith.maximumf %18, %19 : vector<128x128xf32>
      %21 = arith.truncf %20 : vector<128x128xf32> to vector<128x128xbf16>
      %c0_14 = arith.constant 0 : index
      %c0_15 = arith.constant 0 : index
      %22 = vector.load %arg6[%c0_14, %c0_15] : memref<128x128xbf16, #tpu.memory_space<vmem>>, vector<128x128xbf16>
      tpu.vector_store %arg6[%c0_14, %c0_15], %21 {strides = array<i32>} : memref<128x128xbf16, #tpu.memory_space<vmem>>, vector<128x128xbf16>,
    } else {
    }
    return
  }
  func.func @transform_0(%arg0: i32, %arg1: i32, %arg2: i32) -> (i32, i32) {
    %c0_i32 = arith.constant 0 : i32
    return %arg0, %arg2 : i32, i32
  }
  func.func @transform_1(%arg0: i32, %arg1: i32, %arg2: i32) -> (i32, i32) {
    %c0_i32 = arith.constant 0 : i32
    %c0_i32_0 = arith.constant 0 : i32
    return %c0_i32, %arg1 : i32, i32
  }
  func.func @transform_2(%arg0: i32, %arg1: i32, %arg2: i32) -> (i32, i32) {
    %c0_i32 = arith.constant 0 : i32
    %c0_i32_0 = arith.constant 0 : i32
    return %c0_i32, %arg1 : i32, i32
  }
  func.func @transform_3(%arg0: i32, %arg1: i32, %arg2: i32) -> (i32, i32) {
    %c0_i32 = arith.constant 0 : i32
    return %arg0, %arg1 : i32, i32
  }
}

module attributes {stable_mosaic.version = 11 : i64} {
  func.func @_mm_bias_kernel(%arg0: i32, %arg1: i32, %arg2: i32, %arg3: memref<128x128xbf16, #tpu.memory_space<vmem>>, %arg4: memref<128x128xbf16, #tpu.memory_space<vmem>>, %arg5: memref<1x128xf32, #tpu.memory_space<vmem>>, %arg6: memref<128x128xbf16, #tpu.memory_space<vmem>>, %arg7: memref<128x128xf32, #tpu.memory_space<vmem>>) attributes {dimension_semantics = [#tpu.dimension_semantics<parallel>, #tpu.dimension_semantics<parallel>, #tpu.dimension_semantics<arbitrary>], iteration_bounds = array<i64: 1, 1, 1>, scalar_prefetch = 0 : i64, scratch_operands = 1 : i64, tpu.core_type = #tpu.core_type<tc>, window_params = [{transform_indices = @transform_0, window_bounds = array<i64: 128, 128>}, {transform_indices = @transform_1, window_bounds = array<i64: 128, 128>}, {transform_indices = @transform_2, window_bounds = array<i64: 1, 128>}, {transform_indices = @transform_3, window_bounds = array<i64: 128, 128>}]} {
    %c0_i32 = arith.constant 0 : i32
    %0 = arith.cmpi eq, %arg2, %c0_i32 : i32
    %1 = arith.extui %0 : i1 to i32
    %c0_i32_0 = arith.constant 0 : i32
    %2 = arith.cmpi ne, %1, %c0_i32_0 : i32
    scf.if %2 {
      %cst_10 = arith.constant 0.000000e+00 : f32
      %17 = vector.broadcast %cst_10 : f32 to vector<128x128xf32>
      %c0_11 = arith.constant 0 : index
      %c0_12 = arith.constant 0 : index
      %18 = vector.load %arg7[%c0_11, %c0_12] : memref<128x128xf32, #tpu.memory_space<vmem>>, vector<128x128xf32>
      tpu.vector_store %arg7[%c0_11, %c0_12], %17 {strides = array<i32>} : memref<128x128xf32, #tpu.memory_space<vmem>>, vector<128x128xf32>,
    } else {
    }
    %c0 = arith.constant 0 : index
    %c0_1 = arith.constant 0 : index
    %3 = vector.load %arg3[%c0, %c0_1] : memref<128x128xbf16, #tpu.memory_space<vmem>>, vector<128x128xbf16>
    %cst = arith.constant 0.000000e+00 : bf16
    %4 = vector.broadcast %cst : bf16 to vector<128x128xbf16>
    %5 = arith.maximumf %3, %4 : vector<128x128xbf16>
    %c128_i32 = arith.constant 128 : i32
    %6 = arith.muli %arg2, %c128_i32 : i32
    %7 = tpu.assume_multiple %6, 128 : i32
    %8 = arith.index_cast %7 : i32 to index
    %c0_2 = arith.constant 0 : index
    %9 = vector.load %arg4[%8, %c0_2] : memref<128x128xbf16, #tpu.memory_space<vmem>>, vector<128x128xbf16>
    %c0_3 = arith.constant 0 : index
    %c0_4 = arith.constant 0 : index
    %10 = vector.load %arg7[%c0_3, %c0_4] : memref<128x128xf32, #tpu.memory_space<vmem>>, vector<128x128xf32>
    %cst_5 = arith.constant dense<0.000000e+00> : vector<128x128xf32>
    %11 = tpu.matmul %5, %9, %cst_5 {dimension_numbers = #tpu.dot_dimension_numbers<[1], [0], [0], [1], [0, 0, 1, 1], [], []>} : vector<128x128xbf16>, vector<128x128xbf16>, vector<128x128xf32> -> vector<128x128xf32>
    %12 = arith.addf %10, %11 : vector<128x128xf32>
    %c0_6 = arith.constant 0 : index
    %c0_7 = arith.constant 0 : index
    %13 = vector.load %arg7[%c0_6, %c0_7] : memref<128x128xf32, #tpu.memory_space<vmem>>, vector<128x128xf32>
    tpu.vector_store %arg7[%c0_6, %c0_7], %12 {strides = array<i32>} : memref<128x128xf32, #tpu.memory_space<vmem>>, vector<128x128xf32>,
    %c0_i32_8 = arith.constant 0 : i32
    %14 = arith.cmpi eq, %arg2, %c0_i32_8 : i32
    %15 = arith.extui %14 : i1 to i32
    %c0_i32_9 = arith.constant 0 : i32
    %16 = arith.cmpi ne, %15, %c0_i32_9 : i32
    scf.if %16 {
      %c0_10 = arith.constant 0 : index
      %c0_11 = arith.constant 0 : index
      %17 = vector.load %arg7[%c0_10, %c0_11] : memref<128x128xf32, #tpu.memory_space<vmem>>, vector<128x128xf32>
      %c0_12 = arith.constant 0 : index
      %c0_13 = arith.constant 0 : index
      %18 = vector.load %arg5[%c0_12, %c0_13] : memref<1x128xf32, #tpu.memory_space<vmem>>, vector<1x128xf32>
      %19 = vector.broadcast %18 : vector<1x128xf32> to vector<128x128xf32>
      %20 = arith.addf %17, %19 : vector<128x128xf32>
      %cst_14 = arith.constant 0.000000e+00 : f32
      %21 = vector.broadcast %cst_14 : f32 to vector<128x128xf32>
      %22 = arith.maximumf %20, %21 : vector<128x128xf32>
      %23 = arith.truncf %22 : vector<128x128xf32> to vector<128x128xbf16>
      %c0_15 = arith.constant 0 : index
      %c0_16 = arith.constant 0 : index
      %24 = vector.load %arg6[%c0_15, %c0_16] : memref<128x128xbf16, #tpu.memory_space<vmem>>, vector<128x128xbf16>
      tpu.vector_store %arg6[%c0_15, %c0_16], %23 {strides = array<i32>} : memref<128x128xbf16, #tpu.memory_space<vmem>>, vector<128x128xbf16>,
    } else {
    }
    return
  }
  func.func @transform_0(%arg0: i32, %arg1: i32, %arg2: i32) -> (i32, i32) {
    %c0_i32 = arith.constant 0 : i32
    return %arg0, %arg2 : i32, i32
  }
  func.func @transform_1(%arg0: i32, %arg1: i32, %arg2: i32) -> (i32, i32) {
    %c0_i32 = arith.constant 0 : i32
    %c0_i32_0 = arith.constant 0 : i32
    return %c0_i32, %arg1 : i32, i32
  }
  func.func @transform_2(%arg0: i32, %arg1: i32, %arg2: i32) -> (i32, i32) {
    %c0_i32 = arith.constant 0 : i32
    %c0_i32_0 = arith.constant 0 : i32
    return %c0_i32, %arg1 : i32, i32
  }
  func.func @transform_3(%arg0: i32, %arg1: i32, %arg2: i32) -> (i32, i32) {
    %c0_i32 = arith.constant 0 : i32
    return %arg0, %arg1 : i32, i32
  }
}

module attributes {stable_mosaic.version = 11 : i64} {
  func.func @_mm_bias_kernel(%arg0: i32, %arg1: i32, %arg2: i32, %arg3: memref<128x128xbf16, #tpu.memory_space<vmem>>, %arg4: memref<128x128xbf16, #tpu.memory_space<vmem>>, %arg5: memref<1x128xf32, #tpu.memory_space<vmem>>, %arg6: memref<128x128xbf16, #tpu.memory_space<vmem>>, %arg7: memref<128x128xf32, #tpu.memory_space<vmem>>) attributes {dimension_semantics = [#tpu.dimension_semantics<parallel>, #tpu.dimension_semantics<parallel>, #tpu.dimension_semantics<arbitrary>], iteration_bounds = array<i64: 1, 1, 1>, scalar_prefetch = 0 : i64, scratch_operands = 1 : i64, tpu.core_type = #tpu.core_type<tc>, window_params = [{transform_indices = @transform_0, window_bounds = array<i64: 128, 128>}, {transform_indices = @transform_1, window_bounds = array<i64: 128, 128>}, {transform_indices = @transform_2, window_bounds = array<i64: 1, 128>}, {transform_indices = @transform_3, window_bounds = array<i64: 128, 128>}]} {
    %c0_i32 = arith.constant 0 : i32
    %0 = arith.cmpi eq, %arg2, %c0_i32 : i32
    %1 = arith.extui %0 : i1 to i32
    %c0_i32_0 = arith.constant 0 : i32
    %2 = arith.cmpi ne, %1, %c0_i32_0 : i32
    scf.if %2 {
      %cst_9 = arith.constant 0.000000e+00 : f32
      %15 = vector.broadcast %cst_9 : f32 to vector<128x128xf32>
      %c0_10 = arith.constant 0 : index
      %c0_11 = arith.constant 0 : index
      %16 = vector.load %arg7[%c0_10, %c0_11] : memref<128x128xf32, #tpu.memory_space<vmem>>, vector<128x128xf32>
      tpu.vector_store %arg7[%c0_10, %c0_11], %15 {strides = array<i32>} : memref<128x128xf32, #tpu.memory_space<vmem>>, vector<128x128xf32>,
    } else {
    }
    %c0 = arith.constant 0 : index
    %c0_1 = arith.constant 0 : index
    %3 = vector.load %arg3[%c0, %c0_1] : memref<128x128xbf16, #tpu.memory_space<vmem>>, vector<128x128xbf16>
    %c128_i32 = arith.constant 128 : i32
    %4 = arith.muli %arg2, %c128_i32 : i32
    %5 = tpu.assume_multiple %4, 128 : i32
    %6 = arith.index_cast %5 : i32 to index
    %c0_2 = arith.constant 0 : index
    %7 = vector.load %arg4[%6, %c0_2] : memref<128x128xbf16, #tpu.memory_space<vmem>>, vector<128x128xbf16>
    %c0_3 = arith.constant 0 : index
    %c0_4 = arith.constant 0 : index
    %8 = vector.load %arg7[%c0_3, %c0_4] : memref<128x128xf32, #tpu.memory_space<vmem>>, vector<128x128xf32>
    %cst = arith.constant dense<0.000000e+00> : vector<128x128xf32>
    %9 = tpu.matmul %3, %7, %cst {dimension_numbers = #tpu.dot_dimension_numbers<[1], [0], [0], [1], [0, 0, 1, 1], [], []>} : vector<128x128xbf16>, vector<128x128xbf16>, vector<128x128xf32> -> vector<128x128xf32>
    %10 = arith.addf %8, %9 : vector<128x128xf32>
    %c0_5 = arith.constant 0 : index
    %c0_6 = arith.constant 0 : index
    %11 = vector.load %arg7[%c0_5, %c0_6] : memref<128x128xf32, #tpu.memory_space<vmem>>, vector<128x128xf32>
    tpu.vector_store %arg7[%c0_5, %c0_6], %10 {strides = array<i32>} : memref<128x128xf32, #tpu.memory_space<vmem>>, vector<128x128xf32>,
    %c0_i32_7 = arith.constant 0 : i32
    %12 = arith.cmpi eq, %arg2, %c0_i32_7 : i32
    %13 = arith.extui %12 : i1 to i32
    %c0_i32_8 = arith.constant 0 : i32
    %14 = arith.cmpi ne, %13, %c0_i32_8 : i32
    scf.if %14 {
      %c0_9 = arith.constant 0 : index
      %c0_10 = arith.constant 0 : index
      %15 = vector.load %arg7[%c0_9, %c0_10] : memref<128x128xf32, #tpu.memory_space<vmem>>, vector<128x128xf32>
      %c0_11 = arith.constant 0 : index
      %c0_12 = arith.constant 0 : index
      %16 = vector.load %arg5[%c0_11, %c0_12] : memref<1x128xf32, #tpu.memory_space<vmem>>, vector<1x128xf32>
      %17 = vector.broadcast %16 : vector<1x128xf32> to vector<128x128xf32>
      %18 = arith.addf %15, %17 : vector<128x128xf32>
      %19 = arith.truncf %18 : vector<128x128xf32> to vector<128x128xbf16>
      %c0_13 = arith.constant 0 : index
      %c0_14 = arith.constant 0 : index
      %20 = vector.load %arg6[%c0_13, %c0_14] : memref<128x128xbf16, #tpu.memory_space<vmem>>, vector<128x128xbf16>
      tpu.vector_store %arg6[%c0_13, %c0_14], %19 {strides = array<i32>} : memref<128x128xbf16, #tpu.memory_space<vmem>>, vector<128x128xbf16>,
    } else {
    }
    return
  }
  func.func @transform_0(%arg0: i32, %arg1: i32, %arg2: i32) -> (i32, i32) {
    %c0_i32 = arith.constant 0 : i32
    return %arg0, %arg2 : i32, i32
  }
  func.func @transform_1(%arg0: i32, %arg1: i32, %arg2: i32) -> (i32, i32) {
    %c0_i32 = arith.constant 0 : i32
    %c0_i32_0 = arith.constant 0 : i32
    return %c0_i32, %arg1 : i32, i32
  }
  func.func @transform_2(%arg0: i32, %arg1: i32, %arg2: i32) -> (i32, i32) {
    %c0_i32 = arith.constant 0 : i32
    %c0_i32_0 = arith.constant 0 : i32
    return %c0_i32, %arg1 : i32, i32
  }
  func.func @transform_3(%arg0: i32, %arg1: i32, %arg2: i32) -> (i32, i32) {
    %c0_i32 = arith.constant 0 : i32
    return %arg0, %arg1 : i32, i32
  }
}

module attributes {stable_mosaic.version = 11 : i64} {
  func.func @_mm_bias_kernel(%arg0: i32, %arg1: i32, %arg2: i32, %arg3: memref<128x128xbf16, #tpu.memory_space<vmem>>, %arg4: memref<128x128xbf16, #tpu.memory_space<vmem>>, %arg5: memref<1x128xf32, #tpu.memory_space<vmem>>, %arg6: memref<128x128xbf16, #tpu.memory_space<vmem>>, %arg7: memref<128x128xbf16, #tpu.memory_space<vmem>>, %arg8: memref<128x128xf32, #tpu.memory_space<vmem>>) attributes {dimension_semantics = [#tpu.dimension_semantics<parallel>, #tpu.dimension_semantics<parallel>, #tpu.dimension_semantics<arbitrary>], iteration_bounds = array<i64: 1, 1, 1>, scalar_prefetch = 0 : i64, scratch_operands = 1 : i64, tpu.core_type = #tpu.core_type<tc>, window_params = [{transform_indices = @transform_0, window_bounds = array<i64: 128, 128>}, {transform_indices = @transform_1, window_bounds = array<i64: 128, 128>}, {transform_indices = @transform_2, window_bounds = array<i64: 1, 128>}, {transform_indices = @transform_3, window_bounds = array<i64: 128, 128>}, {transform_indices = @transform_4, window_bounds = array<i64: 128, 128>}]} {
    %c0_i32 = arith.constant 0 : i32
    %0 = arith.cmpi eq, %arg2, %c0_i32 : i32
    %1 = arith.extui %0 : i1 to i32
    %c0_i32_0 = arith.constant 0 : i32
    %2 = arith.cmpi ne, %1, %c0_i32_0 : i32
    scf.if %2 {
      %cst_9 = arith.constant 0.000000e+00 : f32
      %15 = vector.broadcast %cst_9 : f32 to vector<128x128xf32>
      %c0_10 = arith.constant 0 : index
      %c0_11 = arith.constant 0 : index
      %16 = vector.load %arg8[%c0_10, %c0_11] : memref<128x128xf32, #tpu.memory_space<vmem>>, vector<128x128xf32>
      tpu.vector_store %arg8[%c0_10, %c0_11], %15 {strides = array<i32>} : memref<128x128xf32, #tpu.memory_space<vmem>>, vector<128x128xf32>,
    } else {
    }
    %c0 = arith.constant 0 : index
    %c0_1 = arith.constant 0 : index
    %3 = vector.load %arg3[%c0, %c0_1] : memref<128x128xbf16, #tpu.memory_space<vmem>>, vector<128x128xbf16>
    %c128_i32 = arith.constant 128 : i32
    %4 = arith.muli %arg2, %c128_i32 : i32
    %5 = tpu.assume_multiple %4, 128 : i32
    %6 = arith.index_cast %5 : i32 to index
    %c0_2 = arith.constant 0 : index
    %7 = vector.load %arg4[%6, %c0_2] : memref<128x128xbf16, #tpu.memory_space<vmem>>, vector<128x128xbf16>
    %c0_3 = arith.constant 0 : index
    %c0_4 = arith.constant 0 : index
    %8 = vector.load %arg8[%c0_3, %c0_4] : memref<128x128xf32, #tpu.memory_space<vmem>>, vector<128x128xf32>
    %cst = arith.constant dense<0.000000e+00> : vector<128x128xf32>
    %9 = tpu.matmul %3, %7, %cst {dimension_numbers = #tpu.dot_dimension_numbers<[1], [0], [0], [1], [0, 0, 1, 1], [], []>} : vector<128x128xbf16>, vector<128x128xbf16>, vector<128x128xf32> -> vector<128x128xf32>
    %10 = arith.addf %8, %9 : vector<128x128xf32>
    %c0_5 = arith.constant 0 : index
    %c0_6 = arith.constant 0 : index
    %11 = vector.load %arg8[%c0_5, %c0_6] : memref<128x128xf32, #tpu.memory_space<vmem>>, vector<128x128xf32>
    tpu.vector_store %arg8[%c0_5, %c0_6], %10 {strides = array<i32>} : memref<128x128xf32, #tpu.memory_space<vmem>>, vector<128x128xf32>,
    %c0_i32_7 = arith.constant 0 : i32
    %12 = arith.cmpi eq, %arg2, %c0_i32_7 : i32
    %13 = arith.extui %12 : i1 to i32
    %c0_i32_8 = arith.constant 0 : i32
    %14 = arith.cmpi ne, %13, %c0_i32_8 : i32
    scf.if %14 {
      %c0_9 = arith.constant 0 : index
      %c0_10 = arith.constant 0 : index
      %15 = vector.load %arg8[%c0_9, %c0_10] : memref<128x128xf32, #tpu.memory_space<vmem>>, vector<128x128xf32>
      %c0_11 = arith.constant 0 : index
      %c0_12 = arith.constant 0 : index
      %16 = vector.load %arg5[%c0_11, %c0_12] : memref<1x128xf32, #tpu.memory_space<vmem>>, vector<1x128xf32>
      %17 = vector.broadcast %16 : vector<1x128xf32> to vector<128x128xf32>
      %18 = arith.addf %15, %17 : vector<128x128xf32>
      %c0_13 = arith.constant 0 : index
      %c0_14 = arith.constant 0 : index
      %19 = vector.load %arg6[%c0_13, %c0_14] : memref<128x128xbf16, #tpu.memory_space<vmem>>, vector<128x128xbf16>
      %20 = arith.extf %19 : vector<128x128xbf16> to vector<128x128xf32>
      %21 = arith.addf %18, %20 : vector<128x128xf32>
      %cst_15 = arith.constant 0.000000e+00 : f32
      %22 = vector.broadcast %cst_15 : f32 to vector<128x128xf32>
      %23 = arith.maximumf %21, %22 : vector<128x128xf32>
      %24 = arith.truncf %23 : vector<128x128xf32> to vector<128x128xbf16>
      %c0_16 = arith.constant 0 : index
      %c0_17 = arith.constant 0 : index
      %25 = vector.load %arg7[%c0_16, %c0_17] : memref<128x128xbf16, #tpu.memory_space<vmem>>, vector<128x128xbf16>
      tpu.vector_store %arg7[%c0_16, %c0_17], %24 {strides = array<i32>} : memref<128x128xbf16, #tpu.memory_space<vmem>>, vector<128x128xbf16>,
    } else {
    }
    return
  }
  func.func @transform_0(%arg0: i32, %arg1: i32, %arg2: i32) -> (i32, i32) {
    %c0_i32 = arith.constant 0 : i32
    return %arg0, %arg2 : i32, i32
  }
  func.func @transform_1(%arg0: i32, %arg1: i32, %arg2: i32) -> (i32, i32) {
    %c0_i32 = arith.constant 0 : i32
    %c0_i32_0 = arith.constant 0 : i32
    return %c0_i32, %arg1 : i32, i32
  }
  func.func @transform_2(%arg0: i32, %arg1: i32, %arg2: i32) -> (i32, i32) {
    %c0_i32 = arith.constant 0 : i32
    %c0_i32_0 = arith.constant 0 : i32
    return %c0_i32, %arg1 : i32, i32
  }
  func.func @transform_3(%arg0: i32, %arg1: i32, %arg2: i32) -> (i32, i32) {
    %c0_i32 = arith.constant 0 : i32
    return %arg0, %arg1 : i32, i32
  }
  func.func @transform_4(%arg0: i32, %arg1: i32, %arg2: i32) -> (i32, i32) {
    %c0_i32 = arith.constant 0 : i32
    return %arg0, %arg1 : i32, i32
  }
}

module attributes {stable_mosaic.version = 11 : i64} {
  func.func @_mm_bias_kernel(%arg0: i32, %arg1: i32, %arg2: i32, %arg3: memref<128x128xbf16, #tpu.memory_space<vmem>>, %arg4: memref<128x128xbf16, #tpu.memory_space<vmem>>, %arg5: memref<1x128xf32, #tpu.memory_space<vmem>>, %arg6: memref<128x128xf32, #tpu.memory_space<vmem>>, %arg7: memref<128x128xf32, #tpu.memory_space<vmem>>) attributes {dimension_semantics = [#tpu.dimension_semantics<parallel>, #tpu.dimension_semantics<parallel>, #tpu.dimension_semantics<arbitrary>], iteration_bounds = array<i64: 1, 1, 1>, scalar_prefetch = 0 : i64, scratch_operands = 1 : i64, tpu.core_type = #tpu.core_type<tc>, window_params = [{transform_indices = @transform_0, window_bounds = array<i64: 128, 128>}, {transform_indices = @transform_1, window_bounds = array<i64: 128, 128>}, {transform_indices = @transform_2, window_bounds = array<i64: 1, 128>}, {transform_indices = @transform_3, window_bounds = array<i64: 128, 128>}]} {
    %c0_i32 = arith.constant 0 : i32
    %0 = arith.cmpi eq, %arg2, %c0_i32 : i32
    %1 = arith.extui %0 : i1 to i32
    %c0_i32_0 = arith.constant 0 : i32
    %2 = arith.cmpi ne, %1, %c0_i32_0 : i32
    scf.if %2 {
      %cst_9 = arith.constant 0.000000e+00 : f32
      %15 = vector.broadcast %cst_9 : f32 to vector<128x128xf32>
      %c0_10 = arith.constant 0 : index
      %c0_11 = arith.constant 0 : index
      %16 = vector.load %arg7[%c0_10, %c0_11] : memref<128x128xf32, #tpu.memory_space<vmem>>, vector<128x128xf32>
      tpu.vector_store %arg7[%c0_10, %c0_11], %15 {strides = array<i32>} : memref<128x128xf32, #tpu.memory_space<vmem>>, vector<128x128xf32>,
    } else {
    }
    %c0 = arith.constant 0 : index
    %c0_1 = arith.constant 0 : index
    %3 = vector.load %arg3[%c0, %c0_1] : memref<128x128xbf16, #tpu.memory_space<vmem>>, vector<128x128xbf16>
    %c128_i32 = arith.constant 128 : i32
    %4 = arith.muli %arg2, %c128_i32 : i32
    %5 = tpu.assume_multiple %4, 128 : i32
    %6 = arith.index_cast %5 : i32 to index
    %c0_2 = arith.constant 0 : index
    %7 = vector.load %arg4[%6, %c0_2] : memref<128x128xbf16, #tpu.memory_space<vmem>>, vector<128x128xbf16>
    %c0_3 = arith.constant 0 : index
    %c0_4 = arith.constant 0 : index
    %8 = vector.load %arg7[%c0_3, %c0_4] : memref<128x128xf32, #tpu.memory_space<vmem>>, vector<128x128xf32>
    %cst = arith.constant dense<0.000000e+00> : vector<128x128xf32>
    %9 = tpu.matmul %3, %7, %cst {dimension_numbers = #tpu.dot_dimension_numbers<[1], [0], [0], [1], [0, 0, 1, 1], [], []>} : vector<128x128xbf16>, vector<128x128xbf16>, vector<128x128xf32> -> vector<128x128xf32>
    %10 = arith.addf %8, %9 : vector<128x128xf32>
    %c0_5 = arith.constant 0 : index
    %c0_6 = arith.constant 0 : index
    %11 = vector.load %arg7[%c0_5, %c0_6] : memref<128x128xf32, #tpu.memory_space<vmem>>, vector<128x128xf32>
    tpu.vector_store %arg7[%c0_5, %c0_6], %10 {strides = array<i32>} : memref<128x128xf32, #tpu.memory_space<vmem>>, vector<128x128xf32>,
    %c0_i32_7 = arith.constant 0 : i32
    %12 = arith.cmpi eq, %arg2, %c0_i32_7 : i32
    %13 = arith.extui %12 : i1 to i32
    %c0_i32_8 = arith.constant 0 : i32
    %14 = arith.cmpi ne, %13, %c0_i32_8 : i32
    scf.if %14 {
      %c0_9 = arith.constant 0 : index
      %c0_10 = arith.constant 0 : index
      %15 = vector.load %arg7[%c0_9, %c0_10] : memref<128x128xf32, #tpu.memory_space<vmem>>, vector<128x128xf32>
      %c0_11 = arith.constant 0 : index
      %c0_12 = arith.constant 0 : index
      %16 = vector.load %arg5[%c0_11, %c0_12] : memref<1x128xf32, #tpu.memory_space<vmem>>, vector<1x128xf32>
      %17 = vector.broadcast %16 : vector<1x128xf32> to vector<128x128xf32>
      %18 = arith.addf %15, %17 : vector<128x128xf32>
      %c0_13 = arith.constant 0 : index
      %c0_14 = arith.constant 0 : index
      %19 = vector.load %arg6[%c0_13, %c0_14] : memref<128x128xf32, #tpu.memory_space<vmem>>, vector<128x128xf32>
      tpu.vector_store %arg6[%c0_13, %c0_14], %18 {strides = array<i32>} : memref<128x128xf32, #tpu.memory_space<vmem>>, vector<128x128xf32>,
    } else {
    }
    return
  }
  func.func @transform_0(%arg0: i32, %arg1: i32, %arg2: i32) -> (i32, i32) {
    %c0_i32 = arith.constant 0 : i32
    return %arg0, %arg2 : i32, i32
  }
  func.func @transform_1(%arg0: i32, %arg1: i32, %arg2: i32) -> (i32, i32) {
    %c0_i32 = arith.constant 0 : i32
    %c0_i32_0 = arith.constant 0 : i32
    return %c0_i32, %arg1 : i32, i32
  }
  func.func @transform_2(%arg0: i32, %arg1: i32, %arg2: i32) -> (i32, i32) {
    %c0_i32 = arith.constant 0 : i32
    %c0_i32_0 = arith.constant 0 : i32
    return %c0_i32, %arg1 : i32, i32
  }
  func.func @transform_3(%arg0: i32, %arg1: i32, %arg2: i32) -> (i32, i32) {
    %c0_i32 = arith.constant 0 : i32
    return %arg0, %arg1 : i32, i32
  }
}

module attributes {stable_mosaic.version = 11 : i64} {
  func.func @_soft_quantize_kernel(%arg0: i32, %arg1: memref<128x128xf32, #tpu.memory_space<vmem>>, %arg2: memref<128x128xbf16, #tpu.memory_space<vmem>>, %arg3: memref<128x128xbf16, #tpu.memory_space<vmem>>, %arg4: memref<1x128xf32, #tpu.memory_space<vmem>>, %arg5: memref<1x128xf32, #tpu.memory_space<vmem>>, %arg6: memref<128x128xbf16, #tpu.memory_space<vmem>>, %arg7: memref<128x1xi32, #tpu.memory_space<vmem>>) attributes {dimension_semantics = [#tpu.dimension_semantics<parallel>], iteration_bounds = array<i64: 1>, scalar_prefetch = 0 : i64, scratch_operands = 0 : i64, tpu.core_type = #tpu.core_type<tc>, window_params = [{transform_indices = @transform_0, window_bounds = array<i64: 128, 128>}, {pipeline_mode = #tpu.pipeline_mode<synchronous>, transform_indices = @transform_1, window_bounds = array<i64: 128, 128>}, {pipeline_mode = #tpu.pipeline_mode<synchronous>, transform_indices = @transform_2, window_bounds = array<i64: 128, 128>}, {pipeline_mode = #tpu.pipeline_mode<synchronous>, transform_indices = @transform_3, window_bounds = array<i64: 1, 128>}, {pipeline_mode = #tpu.pipeline_mode<synchronous>, transform_indices = @transform_4, window_bounds = array<i64: 1, 128>}, {transform_indices = @transform_5, window_bounds = array<i64: 128, 128>}, {transform_indices = @transform_6, window_bounds = array<i64: 128, 1>}]} {
    %c0 = arith.constant 0 : index
    %c0_0 = arith.constant 0 : index
    %0 = vector.load %arg1[%c0, %c0_0] : memref<128x128xf32, #tpu.memory_space<vmem>>, vector<128x128xf32>
    %cst = arith.constant dense<0.000000e+00> : vector<128xf32>
    %1 = vector.multi_reduction <add>, %0, %cst [1] : vector<128x128xf32> to vector<128xf32>
    %2 = vector.shape_cast %1 : vector<128xf32> to vector<128x1xf32>
    %cst_1 = arith.constant 1.250000e-01 : f32
    %3 = vector.broadcast %cst_1 : f32 to vector<128x1xf32>
    %4 = arith.mulf %2, %3 : vector<128x1xf32>
    %5 = vector.broadcast %4 : vector<128x1xf32> to vector<128x128xf32>
    %6 = arith.subf %0, %5 : vector<128x128xf32>
    %7 = arith.mulf %6, %6 : vector<128x128xf32>
    %cst_2 = arith.constant dense<0.000000e+00> : vector<128xf32>
    %8 = vector.multi_reduction <add>, %7, %cst_2 [1] : vector<128x128xf32> to vector<128xf32>
    %9 = vector.shape_cast %8 : vector<128xf32> to vector<128x1xf32>
    %10 = arith.mulf %4, %4 : vector<128x1xf32>
    %cst_3 = arith.constant 1.200000e+02 : f32
    %11 = vector.broadcast %cst_3 : f32 to vector<128x1xf32>
    %12 = arith.mulf %11, %10 : vector<128x1xf32>
    %13 = arith.subf %9, %12 : vector<128x1xf32>
    %cst_4 = arith.constant 1.250000e-01 : f32
    %14 = vector.broadcast %cst_4 : f32 to vector<128x1xf32>
    %15 = arith.mulf %13, %14 : vector<128x1xf32>
    %cst_5 = arith.constant 9.99999974E-6 : f32
    %16 = vector.broadcast %cst_5 : f32 to vector<128x1xf32>
    %17 = arith.addf %15, %16 : vector<128x1xf32>
    %18 = math.rsqrt %17 : vector<128x1xf32>
    %19 = vector.broadcast %18 : vector<128x1xf32> to vector<128x128xf32>
    %20 = arith.mulf %6, %19 : vector<128x128xf32>
    %c0_6 = arith.constant 0 : index
    %c0_7 = arith.constant 0 : index
    %21 = vector.load %arg4[%c0_6, %c0_7] : memref<1x128xf32, #tpu.memory_space<vmem>>, vector<1x128xf32>
    %22 = vector.broadcast %21 : vector<1x128xf32> to vector<128x128xf32>
    %23 = arith.mulf %20, %22 : vector<128x128xf32>
    %c0_8 = arith.constant 0 : index
    %c0_9 = arith.constant 0 : index
    %24 = vector.load %arg5[%c0_8, %c0_9] : memref<1x128xf32, #tpu.memory_space<vmem>>, vector<1x128xf32>
    %25 = vector.broadcast %24 : vector<1x128xf32> to vector<128x128xf32>
    %26 = arith.addf %23, %25 : vector<128x128xf32>
    %27 = arith.truncf %26 : vector<128x128xf32> to vector<128x128xbf16>
    %c0_10 = arith.constant 0 : index
    %c0_11 = arith.constant 0 : index
    %28 = vector.load %arg2[%c0_10, %c0_11] : memref<128x128xbf16, #tpu.memory_space<vmem>>, vector<128x128xbf16>
    %cst_12 = arith.constant dense<0.000000e+00> : vector<128x128xf32>
    %29 = tpu.matmul %27, %28, %cst_12 {dimension_numbers = #tpu.dot_dimension_numbers<[1], [0], [0], [1], [0, 0, 1, 1], [], []>} : vector<128x128xbf16>, vector<128x128xbf16>, vector<128x128xf32> -> vector<128x128xf32>
    %30 = tpu.iota {dimensions = array<i32: 1>} : vector<128x128xi32>
    %c16_i32 = arith.constant 16 : i32
    %31 = vector.broadcast %c16_i32 : i32 to vector<128x128xi32>
    %32 = arith.cmpi slt, %30, %31 : vector<128x128xi32>
    %cst_13 = arith.constant -1.000000e+30 : f32
    %33 = vector.broadcast %cst_13 : f32 to vector<128x128xf32>
    %34 = arith.select %32, %29, %33 : vector<128x128xi1>, vector<128x128xf32>
    %cst_14 = arith.constant dense<0xFF800000> : vector<128xf32>
    %35 = vector.multi_reduction <maximumf>, %34, %cst_14 [1] : vector<128x128xf32> to vector<128xf32>
    %36 = vector.shape_cast %35 : vector<128xf32> to vector<128x1xf32>
    %37 = vector.broadcast %36 : vector<128x1xf32> to vector<128x128xf32>
    %38 = arith.subf %34, %37 : vector<128x128xf32>
    %39 = math.exp %38 : vector<128x128xf32>
    %cst_15 = arith.constant dense<0.000000e+00> : vector<128xf32>
    %40 = vector.multi_reduction <add>, %39, %cst_15 [1] : vector<128x128xf32> to vector<128xf32>
    %41 = vector.shape_cast %40 : vector<128xf32> to vector<128x1xf32>
    %42 = tpu.reciprocal %41 {approx = true} : vector<128x1xf32> -> vector<128x1xf32>
    %43 = vector.broadcast %42 : vector<128x1xf32> to vector<128x128xf32>
    %44 = arith.mulf %39, %43 : vector<128x128xf32>
    %45 = vector.broadcast %36 : vector<128x1xf32> to vector<128x128xf32>
    %46 = arith.cmpf oge, %34, %45 : vector<128x128xf32>
    %c128_i32 = arith.constant 128 : i32
    %47 = vector.broadcast %c128_i32 : i32 to vector<128x128xi32>
    %48 = arith.select %46, %30, %47 : vector<128x128xi1>, vector<128x128xi32>
    %cst_16 = arith.constant dense<2147483647> : vector<128xi32>
    %49 = vector.multi_reduction <minsi>, %48, %cst_16 [1] : vector<128x128xi32> to vector<128xi32>
    %50 = vector.shape_cast %49 : vector<128xi32> to vector<128x1xi32>
    %c0_17 = arith.constant 0 : index
    %c0_18 = arith.constant 0 : index
    %51 = vector.load %arg7[%c0_17, %c0_18] : memref<128x1xi32, #tpu.memory_space<vmem>>, vector<128x1xi32>
    tpu.vector_store %arg7[%c0_17, %c0_18], %50 {strides = array<i32>} : memref<128x1xi32, #tpu.memory_space<vmem>>, vector<128x1xi32>,
    %52 = arith.truncf %44 : vector<128x128xf32> to vector<128x128xbf16>
    %c0_19 = arith.constant 0 : index
    %c0_20 = arith.constant 0 : index
    %53 = vector.load %arg3[%c0_19, %c0_20] : memref<128x128xbf16, #tpu.memory_space<vmem>>, vector<128x128xbf16>
    %cst_21 = arith.constant dense<0.000000e+00> : vector<128x128xf32>
    %54 = tpu.matmul %52, %53, %cst_21 {dimension_numbers = #tpu.dot_dimension_numbers<[1], [0], [0], [1], [0, 0, 1, 1], [], []>} : vector<128x128xbf16>, vector<128x128xbf16>, vector<128x128xf32> -> vector<128x128xf32>
    %55 = arith.truncf %54 : vector<128x128xf32> to vector<128x128xbf16>
    %c0_22 = arith.constant 0 : index
    %c0_23 = arith.constant 0 : index
    %56 = vector.load %arg6[%c0_22, %c0_23] : memref<128x128xbf16, #tpu.memory_space<vmem>>, vector<128x128xbf16>
    tpu.vector_store %arg6[%c0_22, %c0_23], %55 {strides = array<i32>} : memref<128x128xbf16, #tpu.memory_space<vmem>>, vector<128x128xbf16>,
    return
  }
  func.func @transform_0(%arg0: i32) -> (i32, i32) {
    %c0_i32 = arith.constant 0 : i32
    %c0_i32_0 = arith.constant 0 : i32
    return %arg0, %c0_i32 : i32, i32
  }
  func.func @transform_1(%arg0: i32) -> (i32, i32) {
    %c0_i32 = arith.constant 0 : i32
    %c0_i32_0 = arith.constant 0 : i32
    %c0_i32_1 = arith.constant 0 : i32
    return %c0_i32, %c0_i32_0 : i32, i32
  }
  func.func @transform_2(%arg0: i32) -> (i32, i32) {
    %c0_i32 = arith.constant 0 : i32
    %c0_i32_0 = arith.constant 0 : i32
    %c0_i32_1 = arith.constant 0 : i32
    return %c0_i32, %c0_i32_0 : i32, i32
  }
  func.func @transform_3(%arg0: i32) -> (i32, i32) {
    %c0_i32 = arith.constant 0 : i32
    %c0_i32_0 = arith.constant 0 : i32
    %c0_i32_1 = arith.constant 0 : i32
    return %c0_i32, %c0_i32_0 : i32, i32
  }
  func.func @transform_4(%arg0: i32) -> (i32, i32) {
    %c0_i32 = arith.constant 0 : i32
    %c0_i32_0 = arith.constant 0 : i32
    %c0_i32_1 = arith.constant 0 : i32
    return %c0_i32, %c0_i32_0 : i32, i32
  }
  func.func @transform_5(%arg0: i32) -> (i32, i32) {
    %c0_i32 = arith.constant 0 : i32
    %c0_i32_0 = arith.constant 0 : i32
    return %arg0, %c0_i32 : i32, i32
  }
  func.func @transform_6(%arg0: i32) -> (i32, i32) {
    %c0_i32 = arith.constant 0 : i32
    %c0_i32_0 = arith.constant 0 : i32
    return %arg0, %c0_i32 : i32, i32
  }
}

module attributes {stable_mosaic.version = 11 : i64} {
  func.func @_mm_bias_kernel(%arg0: i32, %arg1: i32, %arg2: i32, %arg3: memref<128x128xbf16, #tpu.memory_space<vmem>>, %arg4: memref<128x128xbf16, #tpu.memory_space<vmem>>, %arg5: memref<1x128xf32, #tpu.memory_space<vmem>>, %arg6: memref<128x128xf32, #tpu.memory_space<vmem>>, %arg7: memref<128x128xf32, #tpu.memory_space<vmem>>) attributes {dimension_semantics = [#tpu.dimension_semantics<parallel>, #tpu.dimension_semantics<parallel>, #tpu.dimension_semantics<arbitrary>], iteration_bounds = array<i64: 2, 1, 1>, scalar_prefetch = 0 : i64, scratch_operands = 1 : i64, tpu.core_type = #tpu.core_type<tc>, window_params = [{transform_indices = @transform_0, window_bounds = array<i64: 128, 128>}, {transform_indices = @transform_1, window_bounds = array<i64: 128, 128>}, {transform_indices = @transform_2, window_bounds = array<i64: 1, 128>}, {transform_indices = @transform_3, window_bounds = array<i64: 128, 128>}]} {
    %c0_i32 = arith.constant 0 : i32
    %0 = arith.cmpi eq, %arg2, %c0_i32 : i32
    %1 = arith.extui %0 : i1 to i32
    %c0_i32_0 = arith.constant 0 : i32
    %2 = arith.cmpi ne, %1, %c0_i32_0 : i32
    scf.if %2 {
      %cst_9 = arith.constant 0.000000e+00 : f32
      %15 = vector.broadcast %cst_9 : f32 to vector<128x128xf32>
      %c0_10 = arith.constant 0 : index
      %c0_11 = arith.constant 0 : index
      %16 = vector.load %arg7[%c0_10, %c0_11] : memref<128x128xf32, #tpu.memory_space<vmem>>, vector<128x128xf32>
      tpu.vector_store %arg7[%c0_10, %c0_11], %15 {strides = array<i32>} : memref<128x128xf32, #tpu.memory_space<vmem>>, vector<128x128xf32>,
    } else {
    }
    %c0 = arith.constant 0 : index
    %c0_1 = arith.constant 0 : index
    %3 = vector.load %arg3[%c0, %c0_1] : memref<128x128xbf16, #tpu.memory_space<vmem>>, vector<128x128xbf16>
    %c128_i32 = arith.constant 128 : i32
    %4 = arith.muli %arg2, %c128_i32 : i32
    %5 = tpu.assume_multiple %4, 128 : i32
    %6 = arith.index_cast %5 : i32 to index
    %c0_2 = arith.constant 0 : index
    %7 = vector.load %arg4[%6, %c0_2] : memref<128x128xbf16, #tpu.memory_space<vmem>>, vector<128x128xbf16>
    %c0_3 = arith.constant 0 : index
    %c0_4 = arith.constant 0 : index
    %8 = vector.load %arg7[%c0_3, %c0_4] : memref<128x128xf32, #tpu.memory_space<vmem>>, vector<128x128xf32>
    %cst = arith.constant dense<0.000000e+00> : vector<128x128xf32>
    %9 = tpu.matmul %3, %7, %cst {dimension_numbers = #tpu.dot_dimension_numbers<[1], [0], [0], [1], [0, 0, 1, 1], [], []>} : vector<128x128xbf16>, vector<128x128xbf16>, vector<128x128xf32> -> vector<128x128xf32>
    %10 = arith.addf %8, %9 : vector<128x128xf32>
    %c0_5 = arith.constant 0 : index
    %c0_6 = arith.constant 0 : index
    %11 = vector.load %arg7[%c0_5, %c0_6] : memref<128x128xf32, #tpu.memory_space<vmem>>, vector<128x128xf32>
    tpu.vector_store %arg7[%c0_5, %c0_6], %10 {strides = array<i32>} : memref<128x128xf32, #tpu.memory_space<vmem>>, vector<128x128xf32>,
    %c0_i32_7 = arith.constant 0 : i32
    %12 = arith.cmpi eq, %arg2, %c0_i32_7 : i32
    %13 = arith.extui %12 : i1 to i32
    %c0_i32_8 = arith.constant 0 : i32
    %14 = arith.cmpi ne, %13, %c0_i32_8 : i32
    scf.if %14 {
      %c0_9 = arith.constant 0 : index
      %c0_10 = arith.constant 0 : index
      %15 = vector.load %arg7[%c0_9, %c0_10] : memref<128x128xf32, #tpu.memory_space<vmem>>, vector<128x128xf32>
      %c0_11 = arith.constant 0 : index
      %c0_12 = arith.constant 0 : index
      %16 = vector.load %arg5[%c0_11, %c0_12] : memref<1x128xf32, #tpu.memory_space<vmem>>, vector<1x128xf32>
      %17 = vector.broadcast %16 : vector<1x128xf32> to vector<128x128xf32>
      %18 = arith.addf %15, %17 : vector<128x128xf32>
      %c0_13 = arith.constant 0 : index
      %c0_14 = arith.constant 0 : index
      %19 = vector.load %arg6[%c0_13, %c0_14] : memref<128x128xf32, #tpu.memory_space<vmem>>, vector<128x128xf32>
      tpu.vector_store %arg6[%c0_13, %c0_14], %18 {strides = array<i32>} : memref<128x128xf32, #tpu.memory_space<vmem>>, vector<128x128xf32>,
    } else {
    }
    return
  }
  func.func @transform_0(%arg0: i32, %arg1: i32, %arg2: i32) -> (i32, i32) {
    %c0_i32 = arith.constant 0 : i32
    return %arg0, %arg2 : i32, i32
  }
  func.func @transform_1(%arg0: i32, %arg1: i32, %arg2: i32) -> (i32, i32) {
    %c0_i32 = arith.constant 0 : i32
    %c0_i32_0 = arith.constant 0 : i32
    return %c0_i32, %arg1 : i32, i32
  }
  func.func @transform_2(%arg0: i32, %arg1: i32, %arg2: i32) -> (i32, i32) {
    %c0_i32 = arith.constant 0 : i32
    %c0_i32_0 = arith.constant 0 : i32
    return %c0_i32, %arg1 : i32, i32
  }
  func.func @transform_3(%arg0: i32, %arg1: i32, %arg2: i32) -> (i32, i32) {
    %c0_i32 = arith.constant 0 : i32
    return %arg0, %arg1 : i32, i32
  }
}

</mosaic_0001>

<bundles_post_ra>
// kernel: vqvae_forward.13
= control target key start
LH: loop header
LB: loop body
LE: loop exit
PB: predicated region body
PF: predicated region fallthrough
CT: control target
= control target key end

     0   :  { %s604_s1 = inlined_call_operand.vmem [shape: bf16[128,128], index: 1, kind: input, shape index: {}]   ;;  %s605_s2 = inlined_call_operand.vmem [shape: f32[1,128], index: 2, kind: input, shape index: {}]   ;;  %s606_s0 = inlined_call_operand.vmem [shape: bf16[128,128], index: 0, kind: input, shape index: {}]   ;;  %s607_s3 = inlined_call_operand.vmem [shape: bf16[128,128], index: 3, kind: output, shape index: {}]  }
   0x1   :  { %v436_v0 = vld [vmem:[%s604_s1 + $0x38] sm:$0xff]  ;;  %v435_v1 = vld [vmem:[%s604_s1 + $0x30] sm:$0xff]  ;;  %v434_v2 = vld [vmem:[%s604_s1 + $0x28] sm:$0xff] }
   0x2   :  { %183 = vmatpush.bf16.msra.mxu0 %v436_v0  ;;  %484 = vmatpush.bf16.msra.mxu1 %v436_v0  ;;  %v433_v3 = vld [vmem:[%s604_s1 + $0x20] sm:$0xff]  ;;  %v432_v4 = vld [vmem:[%s604_s1 + $0x18] sm:$0xff]  ;;  %v431_v5 = vld [vmem:[%s604_s1 + $0x10] sm:$0xff] }
   0x3   :  { %485 = vmatpush.bf16.msra.mxu2 %v436_v0  ;;  %486 = vmatpush.bf16.msra.mxu3 %v436_v0  ;;  %v430_v6 = vld [vmem:[%s604_s1 + $0x8] sm:$0xff]  ;;  %v429_v7 = vld [vmem:[%s604_s1] sm:$0xff]  ;;  %v423_v9 = vld [vmem:[%s606_s0 + $0x10] sm:$0xff] }
   0x4   :  { %v421_v8 = vld [vmem:[%s606_s0] sm:$0xff]  ;;  %v427_v11 = vld [vmem:[%s606_s0 + $0x30] sm:$0xff]  ;;  %v422_v12 = vld [vmem:[%s606_s0 + $0x8] sm:$0xff] }
   0x5   :  { %v425_v10 = vld [vmem:[%s606_s0 + $0x20] sm:$0xff]  ;;  %v424_v13 = vld [vmem:[%s606_s0 + $0x18] sm:$0xff]  ;;  %v426_v14 = vld [vmem:[%s606_s0 + $0x28] sm:$0xff] }
   0x6   :  { %184 = vmatpush.bf16.msra.mxu0 %v435_v1  ;;  %487 = vmatpush.bf16.msra.mxu1 %v435_v1  ;;  %v428_v15 = vld [vmem:[%s606_s0 + $0x38] sm:$0xff]  ;;  %v508_v18 = vld [vmem:[%s605_s2] ss:$0 sm:$0xff] }
   0x7   :  { %488 = vmatpush.bf16.msra.mxu2 %v435_v1  ;;  %489 = vmatpush.bf16.msra.mxu3 %v435_v1 }
   0xa   :  { %185 = vmatpush.bf16.msra.mxu0 %v434_v2  ;;  %490 = vmatpush.bf16.msra.mxu1 %v434_v2 }
   0xb   :  { %491 = vmatpush.bf16.msra.mxu2 %v434_v2  ;;  %492 = vmatpush.bf16.msra.mxu3 %v434_v2 }
   0xe   :  { %186 = vmatpush.bf16.msra.mxu0 %v433_v3  ;;  %493 = vmatpush.bf16.msra.mxu1 %v433_v3 }
   0xf   :  { %494 = vmatpush.bf16.msra.mxu2 %v433_v3  ;;  %495 = vmatpush.bf16.msra.mxu3 %v433_v3 }
  0x12   :  { %187 = vmatpush.bf16.msra.mxu0 %v432_v4  ;;  %496 = vmatpush.bf16.msra.mxu1 %v432_v4 }
  0x13   :  { %497 = vmatpush.bf16.msra.mxu2 %v432_v4  ;;  %498 = vmatpush.bf16.msra.mxu3 %v432_v4 }
  0x16   :  { %188 = vmatpush.bf16.msra.mxu0 %v431_v5  ;;  %499 = vmatpush.bf16.msra.mxu1 %v431_v5 }
  0x17   :  { %500 = vmatpush.bf16.msra.mxu2 %v431_v5  ;;  %501 = vmatpush.bf16.msra.mxu3 %v431_v5 }
  0x1a   :  { %189 = vmatpush.bf16.msra.mxu0 %v430_v6  ;;  %502 = vmatpush.bf16.msra.mxu1 %v430_v6 }
  0x1b   :  { %503 = vmatpush.bf16.msra.mxu2 %v430_v6  ;;  %504 = vmatpush.bf16.msra.mxu3 %v430_v6 }
  0x1e   :  { %190 = vmatpush.bf16.msra.mxu0 %v429_v7  ;;  %505 = vmatpush.bf16.msra.mxu1 %v429_v7 }
  0x1f   :  { %506 = vmatpush.bf16.msra.mxu2 %v429_v7  ;;  %507 = vmatpush.bf16.msra.mxu3 %v429_v7 }
  0x21   :  { %191 = vmatmul.bf16.vlgmr.msra.gmra.mxu0 %v421_v8  ;;  %201 = vmatmul.bf16.vlgmr.msra.gmra.mxu1 %v423_v9 }
  0x22   :  { %211 = vmatmul.bf16.vlgmr.msra.gmra.mxu2 %v425_v10  ;;  %221 = vmatmul.bf16.vlgmr.msra.gmra.mxu3 %v427_v11 }
  0x31   :  { %196 = vmatmul.bf16.gmra.mxu0 %v422_v12  ;;  %206 = vmatmul.bf16.gmra.mxu1 %v424_v13 }
  0x32   :  { %216 = vmatmul.bf16.gmra.mxu2 %v426_v14  ;;  %226 = vmatmul.bf16.gmra.mxu3 %v428_v15 }
  0x9e   :  { %v192_v16 = vpop.f32.mrf.mxu0  ;;  %v202_v17 = vpop.f32.mrf.mxu1 }
  0x9f   :  { %v287_v19 = vadd.f32 %v508_v18, %v192_v16  ;;  %v291_v20 = vadd.f32 %v508_v18, %v202_v17 }
  0xa1   :  { %v303_v27 = vmax.f32 %v287_v19, 0.0  ;;  %v307_v28 = vmax.f32 %v291_v20, 0.0 }
  0xa5   :  { %v212_v21 = vpop.f32.mrf.mxu2  ;;  %v222_v22 = vpop.f32.mrf.mxu3 }
  0xa6   :  { %v194_v23 = vpop.f32.mrf.mxu0  ;;  %v204_v24 = vpop.f32.mrf.mxu1  ;;  %v295_v33 = vadd.f32 %v508_v18, %v212_v21  ;;  %v299_v34 = vadd.f32 %v508_v18, %v222_v22 }
  0xa7   :  { %v288_v25 = vadd.f32 %v508_v18, %v194_v23  ;;  %v292_v26 = vadd.f32 %v508_v18, %v204_v24 }
  0xa8   :  { %v311_v41 = vmax.f32 %v295_v33, 0.0  ;;  %v315_v42 = vmax.f32 %v299_v34, 0.0 }
  0xa9   :  { %v304_v29 = vmax.f32 %v288_v25, 0.0  ;;  %v308_v30 = vmax.f32 %v292_v26, 0.0 }
  0xab   :  { %v440_v31 = vpack.c.bf16 %v304_v29, %v303_v27  ;;  %v450_v32 = vpack.c.bf16 %v308_v30, %v307_v28 }
  0xad   :  { %441 = vst [vmem:[%s607_s3] sm:$0xff] %v440_v31   ;;  %v214_v35 = vpop.f32.mrf.mxu2  ;;  %v224_v36 = vpop.f32.mrf.mxu3 }
  0xae   :  { %478 = vst [vmem:[%s607_s3 + $0x10] sm:$0xff] %v450_v32   ;;  %v296_v37 = vadd.f32 %v508_v18, %v214_v35  ;;  %v300_v38 = vadd.f32 %v508_v18, %v224_v36  ;;  %v197_v39 = vpop.f32.mrf.mxu0  ;;  %v207_v40 = vpop.f32.mrf.mxu1 }
  0xaf   :  { %v289_v47 = vadd.f32 %v508_v18, %v197_v39  ;;  %v293_v48 = vadd.f32 %v508_v18, %v207_v40 }
  0xb0   :  { %v312_v43 = vmax.f32 %v296_v37, 0.0  ;;  %v316_v44 = vmax.f32 %v300_v38, 0.0 }
  0xb1   :  { %v305_v55 = vmax.f32 %v289_v47, 0.0  ;;  %v309_v56 = vmax.f32 %v293_v48, 0.0 }
  0xb2   :  { %v460_v45 = vpack.c.bf16 %v312_v43, %v311_v41  ;;  %v470_v46 = vpack.c.bf16 %v316_v44, %v315_v42 }
  0xb4   :  { %480 = vst [vmem:[%s607_s3 + $0x20] sm:$0xff] %v460_v45  }
  0xb5   :  { %482 = vst [vmem:[%s607_s3 + $0x30] sm:$0xff] %v470_v46   ;;  %v217_v49 = vpop.f32.mrf.mxu2  ;;  %v227_v50 = vpop.f32.mrf.mxu3 }
  0xb6   :  { %v199_v51 = vpop.f32.mrf.mxu0  ;;  %v209_v52 = vpop.f32.mrf.mxu1  ;;  %v297_v61 = vadd.f32 %v508_v18, %v217_v49  ;;  %v301_v62 = vadd.f32 %v508_v18, %v227_v50 }
  0xb7   :  { %v290_v53 = vadd.f32 %v508_v18, %v199_v51  ;;  %v294_v54 = vadd.f32 %v508_v18, %v209_v52 }
  0xb8   :  { %v313_v3 = vmax.f32 %v297_v61, 0.0  ;;  %v317_v4 = vmax.f32 %v301_v62, 0.0 }
  0xb9   :  { %v306_v57 = vmax.f32 %v290_v53, 0.0  ;;  %v310_v58 = vmax.f32 %v294_v54, 0.0 }
  0xbb   :  { %v445_v59 = vpack.c.bf16 %v306_v57, %v305_v55  ;;  %v455_v60 = vpack.c.bf16 %v310_v58, %v309_v56 }
  0xbd   :  { %477 = vst [vmem:[%s607_s3 + $0x8] sm:$0xff] %v445_v59   ;;  %v219_v63 = vpop.f32.mrf.mxu2  ;;  %v229_v0 = vpop.f32.mrf.mxu3 }
  0xbe   :  { %479 = vst [vmem:[%s607_s3 + $0x18] sm:$0xff] %v455_v60   ;;  %v298_v1 = vadd.f32 %v508_v18, %v219_v63  ;;  %v302_v2 = vadd.f32 %v508_v18, %v229_v0 }
  0xc0   :  { %v314_v5 = vmax.f32 %v298_v1, 0.0  ;;  %v318_v6 = vmax.f32 %v302_v2, 0.0 }
  0xc2   :  { %v465_v7 = vpack.c.bf16 %v314_v5, %v313_v3  ;;  %v475_v8 = vpack.c.bf16 %v318_v6, %v317_v4 }
  0xc4   :  { %481 = vst [vmem:[%s607_s3 + $0x28] sm:$0xff] %v465_v7  }
  0xc5   :  { %483 = vst [vmem:[%s607_s3 + $0x38] sm:$0xff] %v475_v8  }

// kernel: vqvae_forward.16
= control target key start
LH: loop header
LB: loop body
LE: loop exit
PB: predicated region body
PF: predicated region fallthrough
CT: control target
= control target key end

     0   :  { %s595_s1 = inlined_call_operand.vmem [shape: bf16[128,128], index: 1, kind: input, shape index: {}]   ;;  %s596_s2 = inlined_call_operand.vmem [shape: f32[1,128], index: 2, kind: input, shape index: {}]   ;;  %s597_s0 = inlined_call_operand.vmem [shape: bf16[128,128], index: 0, kind: input, shape index: {}]   ;;  %s598_s3 = inlined_call_operand.vmem [shape: bf16[128,128], index: 3, kind: output, shape index: {}]  }
   0x1   :  { %v388_v0 = vld [vmem:[%s595_s1 + $0x38] sm:$0xff]  ;;  %v387_v1 = vld [vmem:[%s595_s1 + $0x30] sm:$0xff]  ;;  %v386_v2 = vld [vmem:[%s595_s1 + $0x28] sm:$0xff] }
   0x2   :  { %175 = vmatpush.bf16.msra.mxu0 %v388_v0  ;;  %475 = vmatpush.bf16.msra.mxu1 %v388_v0  ;;  %v385_v3 = vld [vmem:[%s595_s1 + $0x20] sm:$0xff]  ;;  %v384_v4 = vld [vmem:[%s595_s1 + $0x18] sm:$0xff]  ;;  %v383_v5 = vld [vmem:[%s595_s1 + $0x10] sm:$0xff] }
   0x3   :  { %476 = vmatpush.bf16.msra.mxu2 %v388_v0  ;;  %477 = vmatpush.bf16.msra.mxu3 %v388_v0  ;;  %v390_v6 = vld [vmem:[%s597_s0] sm:$0xff]   ;;  %v462_v7 = vld [vmem:[%s597_s0 + $0x10] sm:$0xff]   ;;  %v382_v14 = vld [vmem:[%s595_s1 + $0x8] sm:$0xff] }
   0x4   :  { %v464_v8 = vld [vmem:[%s597_s0 + $0x20] sm:$0xff]   ;;  %v466_v9 = vld [vmem:[%s597_s0 + $0x30] sm:$0xff]   ;;  %v391_v10 = vunpack.c.l.bf16 %v390_v6  ;;  %v392_v11 = vunpack.c.h.bf16 %v390_v6  ;;  %v399_v12 = vunpack.c.l.bf16 %v462_v7  ;;  %v400_v13 = vunpack.c.h.bf16 %v462_v7  ;;  %v461_v32 = vld [vmem:[%s597_s0 + $0x8] sm:$0xff]  }
   0x5   :  { %v407_v15 = vunpack.c.l.bf16 %v464_v8  ;;  %v408_v16 = vunpack.c.h.bf16 %v464_v8  ;;  %v415_v17 = vunpack.c.l.bf16 %v466_v9  ;;  %v416_v18 = vunpack.c.h.bf16 %v466_v9  ;;  %v381_v23 = vld [vmem:[%s595_s1] sm:$0xff]  ;;  %v463_v33 = vld [vmem:[%s597_s0 + $0x18] sm:$0xff]   ;;  %v465_v34 = vld [vmem:[%s597_s0 + $0x28] sm:$0xff]  }
   0x6   :  { %176 = vmatpush.bf16.msra.mxu0 %v387_v1  ;;  %478 = vmatpush.bf16.msra.mxu1 %v387_v1  ;;  %v66_v19 = vmax.f32 %v391_v10, 0.0  ;;  %v67_v20 = vmax.f32 %v392_v11, 0.0  ;;  %v70_v21 = vmax.f32 %v399_v12, 0.0  ;;  %v71_v22 = vmax.f32 %v400_v13, 0.0  ;;  %v467_v35 = vld [vmem:[%s597_s0 + $0x38] sm:$0xff]  }
   0x7   :  { %479 = vmatpush.bf16.msra.mxu2 %v387_v1  ;;  %480 = vmatpush.bf16.msra.mxu3 %v387_v1  ;;  %v74_v24 = vmax.f32 %v407_v15, 0.0  ;;  %v75_v25 = vmax.f32 %v408_v16, 0.0  ;;  %v78_v26 = vmax.f32 %v415_v17, 0.0  ;;  %v79_v27 = vmax.f32 %v416_v18, 0.0  ;;  %v499_v58 = vld [vmem:[%s596_s2] ss:$0 sm:$0xff] }
   0x8   :  { %v82_v28 = vpack.c.bf16 %v67_v20, %v66_v19  ;;  %v84_v29 = vpack.c.bf16 %v71_v22, %v70_v21  ;;  %v395_v36 = vunpack.c.l.bf16 %v461_v32  ;;  %v396_v37 = vunpack.c.h.bf16 %v461_v32 }
   0x9   :  { %v86_v30 = vpack.c.bf16 %v75_v25, %v74_v24  ;;  %v88_v31 = vpack.c.bf16 %v79_v27, %v78_v26  ;;  %v403_v38 = vunpack.c.l.bf16 %v463_v33  ;;  %v404_v39 = vunpack.c.h.bf16 %v463_v33 }
   0xa   :  { %177 = vmatpush.bf16.msra.mxu0 %v386_v2  ;;  %481 = vmatpush.bf16.msra.mxu1 %v386_v2  ;;  %v411_v40 = vunpack.c.l.bf16 %v465_v34  ;;  %v412_v41 = vunpack.c.h.bf16 %v465_v34  ;;  %v419_v42 = vunpack.c.l.bf16 %v467_v35  ;;  %v420_v43 = vunpack.c.h.bf16 %v467_v35 }
   0xb   :  { %482 = vmatpush.bf16.msra.mxu2 %v386_v2  ;;  %483 = vmatpush.bf16.msra.mxu3 %v386_v2  ;;  %v68_v44 = vmax.f32 %v395_v36, 0.0  ;;  %v69_v45 = vmax.f32 %v396_v37, 0.0  ;;  %v72_v46 = vmax.f32 %v403_v38, 0.0  ;;  %v73_v47 = vmax.f32 %v404_v39, 0.0 }
   0xc   :  { %v76_v48 = vmax.f32 %v411_v40, 0.0  ;;  %v77_v49 = vmax.f32 %v412_v41, 0.0  ;;  %v80_v50 = vmax.f32 %v419_v42, 0.0  ;;  %v81_v51 = vmax.f32 %v420_v43, 0.0 }
   0xd   :  { %v83_v52 = vpack.c.bf16 %v69_v45, %v68_v44  ;;  %v85_v53 = vpack.c.bf16 %v73_v47, %v72_v46 }
   0xe   :  { %178 = vmatpush.bf16.msra.mxu0 %v385_v3  ;;  %484 = vmatpush.bf16.msra.mxu1 %v385_v3  ;;  %v87_v54 = vpack.c.bf16 %v77_v49, %v76_v48  ;;  %v89_v55 = vpack.c.bf16 %v81_v51, %v80_v50 }
   0xf   :  { %485 = vmatpush.bf16.msra.mxu2 %v385_v3  ;;  %486 = vmatpush.bf16.msra.mxu3 %v385_v3 }
  0x12   :  { %179 = vmatpush.bf16.msra.mxu0 %v384_v4  ;;  %487 = vmatpush.bf16.msra.mxu1 %v384_v4 }
  0x13   :  { %488 = vmatpush.bf16.msra.mxu2 %v384_v4  ;;  %489 = vmatpush.bf16.msra.mxu3 %v384_v4 }
  0x16   :  { %180 = vmatpush.bf16.msra.mxu0 %v383_v5  ;;  %490 = vmatpush.bf16.msra.mxu1 %v383_v5 }
  0x17   :  { %491 = vmatpush.bf16.msra.mxu2 %v383_v5  ;;  %492 = vmatpush.bf16.msra.mxu3 %v383_v5 }
  0x1a   :  { %181 = vmatpush.bf16.msra.mxu0 %v382_v14  ;;  %493 = vmatpush.bf16.msra.mxu1 %v382_v14 }
  0x1b   :  { %494 = vmatpush.bf16.msra.mxu2 %v382_v14  ;;  %495 = vmatpush.bf16.msra.mxu3 %v382_v14 }
  0x1e   :  { %182 = vmatpush.bf16.msra.mxu0 %v381_v23  ;;  %496 = vmatpush.bf16.msra.mxu1 %v381_v23 }
  0x1f   :  { %497 = vmatpush.bf16.msra.mxu2 %v381_v23  ;;  %498 = vmatpush.bf16.msra.mxu3 %v381_v23 }
  0x21   :  { %183 = vmatmul.bf16.vlgmr.msra.gmra.mxu0 %v82_v28  ;;  %193 = vmatmul.bf16.vlgmr.msra.gmra.mxu1 %v84_v29 }
  0x22   :  { %203 = vmatmul.bf16.vlgmr.msra.gmra.mxu2 %v86_v30  ;;  %213 = vmatmul.bf16.vlgmr.msra.gmra.mxu3 %v88_v31 }
  0x31   :  { %188 = vmatmul.bf16.gmra.mxu0 %v83_v52  ;;  %198 = vmatmul.bf16.gmra.mxu1 %v85_v53 }
  0x32   :  { %208 = vmatmul.bf16.gmra.mxu2 %v87_v54  ;;  %218 = vmatmul.bf16.gmra.mxu3 %v89_v55 }
  0x9e   :  { %v184_v56 = vpop.f32.mrf.mxu0  ;;  %v194_v57 = vpop.f32.mrf.mxu1 }
  0x9f   :  { %v279_v59 = vadd.f32 %v499_v58, %v184_v56  ;;  %v283_v60 = vadd.f32 %v499_v58, %v194_v57 }
  0xa1   :  { %v295_v3 = vmax.f32 %v279_v59, 0.0  ;;  %v299_v4 = vmax.f32 %v283_v60, 0.0 }
  0xa5   :  { %v204_v61 = vpop.f32.mrf.mxu2  ;;  %v214_v62 = vpop.f32.mrf.mxu3 }
  0xa6   :  { %v186_v63 = vpop.f32.mrf.mxu0  ;;  %v196_v0 = vpop.f32.mrf.mxu1  ;;  %v287_v9 = vadd.f32 %v499_v58, %v204_v61  ;;  %v291_v10 = vadd.f32 %v499_v58, %v214_v62 }
  0xa7   :  { %v280_v1 = vadd.f32 %v499_v58, %v186_v63  ;;  %v284_v2 = vadd.f32 %v499_v58, %v196_v0 }
  0xa8   :  { %v303_v17 = vmax.f32 %v287_v9, 0.0  ;;  %v307_v18 = vmax.f32 %v291_v10, 0.0 }
  0xa9   :  { %v296_v5 = vmax.f32 %v280_v1, 0.0  ;;  %v300_v6 = vmax.f32 %v284_v2, 0.0 }
  0xab   :  { %v424_v7 = vpack.c.bf16 %v296_v5, %v295_v3  ;;  %v434_v8 = vpack.c.bf16 %v300_v6, %v299_v4 }
  0xad   :  { %425 = vst [vmem:[%s598_s3] sm:$0xff] %v424_v7   ;;  %v206_v11 = vpop.f32.mrf.mxu2  ;;  %v216_v12 = vpop.f32.mrf.mxu3 }
  0xae   :  { %469 = vst [vmem:[%s598_s3 + $0x10] sm:$0xff] %v434_v8   ;;  %v288_v13 = vadd.f32 %v499_v58, %v206_v11  ;;  %v292_v14 = vadd.f32 %v499_v58, %v216_v12  ;;  %v189_v15 = vpop.f32.mrf.mxu0  ;;  %v199_v16 = vpop.f32.mrf.mxu1 }
  0xaf   :  { %v281_v23 = vadd.f32 %v499_v58, %v189_v15  ;;  %v285_v24 = vadd.f32 %v499_v58, %v199_v16 }
  0xb0   :  { %v304_v19 = vmax.f32 %v288_v13, 0.0  ;;  %v308_v20 = vmax.f32 %v292_v14, 0.0 }
  0xb1   :  { %v297_v31 = vmax.f32 %v281_v23, 0.0  ;;  %v301_v32 = vmax.f32 %v285_v24, 0.0 }
  0xb2   :  { %v444_v21 = vpack.c.bf16 %v304_v19, %v303_v17  ;;  %v454_v22 = vpack.c.bf16 %v308_v20, %v307_v18 }
  0xb4   :  { %471 = vst [vmem:[%s598_s3 + $0x20] sm:$0xff] %v444_v21  }
  0xb5   :  { %473 = vst [vmem:[%s598_s3 + $0x30] sm:$0xff] %v454_v22   ;;  %v209_v25 = vpop.f32.mrf.mxu2  ;;  %v219_v26 = vpop.f32.mrf.mxu3 }
  0xb6   :  { %v191_v27 = vpop.f32.mrf.mxu0  ;;  %v201_v28 = vpop.f32.mrf.mxu1  ;;  %v289_v37 = vadd.f32 %v499_v58, %v209_v25  ;;  %v293_v38 = vadd.f32 %v499_v58, %v219_v26 }
  0xb7   :  { %v282_v29 = vadd.f32 %v499_v58, %v191_v27  ;;  %v286_v30 = vadd.f32 %v499_v58, %v201_v28 }
  0xb8   :  { %v305_v43 = vmax.f32 %v289_v37, 0.0  ;;  %v309_v44 = vmax.f32 %v293_v38, 0.0 }
  0xb9   :  { %v298_v33 = vmax.f32 %v282_v29, 0.0  ;;  %v302_v34 = vmax.f32 %v286_v30, 0.0 }
  0xbb   :  { %v429_v35 = vpack.c.bf16 %v298_v33, %v297_v31  ;;  %v439_v36 = vpack.c.bf16 %v302_v34, %v301_v32 }
  0xbd   :  { %468 = vst [vmem:[%s598_s3 + $0x8] sm:$0xff] %v429_v35   ;;  %v211_v39 = vpop.f32.mrf.mxu2  ;;  %v221_v40 = vpop.f32.mrf.mxu3 }
  0xbe   :  { %470 = vst [vmem:[%s598_s3 + $0x18] sm:$0xff] %v439_v36   ;;  %v290_v41 = vadd.f32 %v499_v58, %v211_v39  ;;  %v294_v42 = vadd.f32 %v499_v58, %v221_v40 }
  0xc0   :  { %v306_v45 = vmax.f32 %v290_v41, 0.0  ;;  %v310_v46 = vmax.f32 %v294_v42, 0.0 }
  0xc2   :  { %v449_v47 = vpack.c.bf16 %v306_v45, %v305_v43  ;;  %v459_v48 = vpack.c.bf16 %v310_v46, %v309_v44 }
  0xc4   :  { %472 = vst [vmem:[%s598_s3 + $0x28] sm:$0xff] %v449_v47  }
  0xc5   :  { %474 = vst [vmem:[%s598_s3 + $0x38] sm:$0xff] %v459_v48  }

// kernel: vqvae_forward.15
= control target key start
LH: loop header
LB: loop body
LE: loop exit
PB: predicated region body
PF: predicated region fallthrough
CT: control target
= control target key end

     0   :  { %s588_s1 = inlined_call_operand.vmem [shape: bf16[128,128], index: 1, kind: input, shape index: {}]   ;;  %s589_s2 = inlined_call_operand.vmem [shape: f32[1,128], index: 2, kind: input, shape index: {}]   ;;  %s590_s0 = inlined_call_operand.vmem [shape: bf16[128,128], index: 0, kind: input, shape index: {}]   ;;  %s591_s3 = inlined_call_operand.vmem [shape: bf16[128,128], index: 3, kind: output, shape index: {}]  }
   0x1   :  { %v420_v0 = vld [vmem:[%s588_s1 + $0x38] sm:$0xff]  ;;  %v419_v1 = vld [vmem:[%s588_s1 + $0x30] sm:$0xff]  ;;  %v418_v2 = vld [vmem:[%s588_s1 + $0x28] sm:$0xff] }
   0x2   :  { %183 = vmatpush.bf16.msra.mxu0 %v420_v0  ;;  %468 = vmatpush.bf16.msra.mxu1 %v420_v0  ;;  %v417_v3 = vld [vmem:[%s588_s1 + $0x20] sm:$0xff]  ;;  %v416_v4 = vld [vmem:[%s588_s1 + $0x18] sm:$0xff]  ;;  %v415_v5 = vld [vmem:[%s588_s1 + $0x10] sm:$0xff] }
   0x3   :  { %469 = vmatpush.bf16.msra.mxu2 %v420_v0  ;;  %470 = vmatpush.bf16.msra.mxu3 %v420_v0  ;;  %v414_v6 = vld [vmem:[%s588_s1 + $0x8] sm:$0xff]  ;;  %v413_v7 = vld [vmem:[%s588_s1] sm:$0xff]  ;;  %v407_v9 = vld [vmem:[%s590_s0 + $0x10] sm:$0xff] }
   0x4   :  { %v405_v8 = vld [vmem:[%s590_s0] sm:$0xff]  ;;  %v411_v11 = vld [vmem:[%s590_s0 + $0x30] sm:$0xff]  ;;  %v406_v12 = vld [vmem:[%s590_s0 + $0x8] sm:$0xff] }
   0x5   :  { %v409_v10 = vld [vmem:[%s590_s0 + $0x20] sm:$0xff]  ;;  %v408_v13 = vld [vmem:[%s590_s0 + $0x18] sm:$0xff]  ;;  %v410_v14 = vld [vmem:[%s590_s0 + $0x28] sm:$0xff] }
   0x6   :  { %184 = vmatpush.bf16.msra.mxu0 %v419_v1  ;;  %471 = vmatpush.bf16.msra.mxu1 %v419_v1  ;;  %v412_v15 = vld [vmem:[%s590_s0 + $0x38] sm:$0xff]  ;;  %v492_v18 = vld [vmem:[%s589_s2] ss:$0 sm:$0xff] }
   0x7   :  { %472 = vmatpush.bf16.msra.mxu2 %v419_v1  ;;  %473 = vmatpush.bf16.msra.mxu3 %v419_v1 }
   0xa   :  { %185 = vmatpush.bf16.msra.mxu0 %v418_v2  ;;  %474 = vmatpush.bf16.msra.mxu1 %v418_v2 }
   0xb   :  { %475 = vmatpush.bf16.msra.mxu2 %v418_v2  ;;  %476 = vmatpush.bf16.msra.mxu3 %v418_v2 }
   0xe   :  { %186 = vmatpush.bf16.msra.mxu0 %v417_v3  ;;  %477 = vmatpush.bf16.msra.mxu1 %v417_v3 }
   0xf   :  { %478 = vmatpush.bf16.msra.mxu2 %v417_v3  ;;  %479 = vmatpush.bf16.msra.mxu3 %v417_v3 }
  0x12   :  { %187 = vmatpush.bf16.msra.mxu0 %v416_v4  ;;  %480 = vmatpush.bf16.msra.mxu1 %v416_v4 }
  0x13   :  { %481 = vmatpush.bf16.msra.mxu2 %v416_v4  ;;  %482 = vmatpush.bf16.msra.mxu3 %v416_v4 }
  0x16   :  { %188 = vmatpush.bf16.msra.mxu0 %v415_v5  ;;  %483 = vmatpush.bf16.msra.mxu1 %v415_v5 }
  0x17   :  { %484 = vmatpush.bf16.msra.mxu2 %v415_v5  ;;  %485 = vmatpush.bf16.msra.mxu3 %v415_v5 }
  0x1a   :  { %189 = vmatpush.bf16.msra.mxu0 %v414_v6  ;;  %486 = vmatpush.bf16.msra.mxu1 %v414_v6 }
  0x1b   :  { %487 = vmatpush.bf16.msra.mxu2 %v414_v6  ;;  %488 = vmatpush.bf16.msra.mxu3 %v414_v6 }
  0x1e   :  { %190 = vmatpush.bf16.msra.mxu0 %v413_v7  ;;  %489 = vmatpush.bf16.msra.mxu1 %v413_v7 }
  0x1f   :  { %490 = vmatpush.bf16.msra.mxu2 %v413_v7  ;;  %491 = vmatpush.bf16.msra.mxu3 %v413_v7 }
  0x21   :  { %191 = vmatmul.bf16.vlgmr.msra.gmra.mxu0 %v405_v8  ;;  %201 = vmatmul.bf16.vlgmr.msra.gmra.mxu1 %v407_v9 }
  0x22   :  { %211 = vmatmul.bf16.vlgmr.msra.gmra.mxu2 %v409_v10  ;;  %221 = vmatmul.bf16.vlgmr.msra.gmra.mxu3 %v411_v11 }
  0x31   :  { %196 = vmatmul.bf16.gmra.mxu0 %v406_v12  ;;  %206 = vmatmul.bf16.gmra.mxu1 %v408_v13 }
  0x32   :  { %216 = vmatmul.bf16.gmra.mxu2 %v410_v14  ;;  %226 = vmatmul.bf16.gmra.mxu3 %v412_v15 }
  0x9e   :  { %v192_v16 = vpop.f32.mrf.mxu0  ;;  %v202_v17 = vpop.f32.mrf.mxu1 }
  0x9f   :  { %v287_v23 = vadd.f32 %v492_v18, %v192_v16  ;;  %v291_v24 = vadd.f32 %v492_v18, %v202_v17 }
  0xa5   :  { %v212_v19 = vpop.f32.mrf.mxu2  ;;  %v222_v20 = vpop.f32.mrf.mxu3 }
  0xa6   :  { %v194_v21 = vpop.f32.mrf.mxu0  ;;  %v204_v22 = vpop.f32.mrf.mxu1  ;;  %v295_v31 = vadd.f32 %v492_v18, %v212_v19  ;;  %v299_v32 = vadd.f32 %v492_v18, %v222_v20 }
  0xa7   :  { %v288_v25 = vadd.f32 %v492_v18, %v194_v21  ;;  %v292_v26 = vadd.f32 %v492_v18, %v204_v22 }
  0xa9   :  { %v424_v27 = vpack.c.bf16 %v288_v25, %v287_v23  ;;  %v434_v28 = vpack.c.bf16 %v292_v26, %v291_v24 }
  0xab   :  { %425 = vst [vmem:[%s591_s3] sm:$0xff] %v424_v27  }
  0xac   :  { %462 = vst [vmem:[%s591_s3 + $0x10] sm:$0xff] %v434_v28  }
  0xad   :  { %v214_v29 = vpop.f32.mrf.mxu2  ;;  %v224_v30 = vpop.f32.mrf.mxu3 }
  0xae   :  { %v296_v33 = vadd.f32 %v492_v18, %v214_v29  ;;  %v300_v34 = vadd.f32 %v492_v18, %v224_v30  ;;  %v197_v35 = vpop.f32.mrf.mxu0  ;;  %v207_v36 = vpop.f32.mrf.mxu1 }
  0xaf   :  { %v289_v43 = vadd.f32 %v492_v18, %v197_v35  ;;  %v293_v44 = vadd.f32 %v492_v18, %v207_v36 }
  0xb0   :  { %v444_v37 = vpack.c.bf16 %v296_v33, %v295_v31  ;;  %v454_v38 = vpack.c.bf16 %v300_v34, %v299_v32 }
  0xb2   :  { %464 = vst [vmem:[%s591_s3 + $0x20] sm:$0xff] %v444_v37  }
  0xb3   :  { %466 = vst [vmem:[%s591_s3 + $0x30] sm:$0xff] %v454_v38  }
  0xb5   :  { %v217_v39 = vpop.f32.mrf.mxu2  ;;  %v227_v40 = vpop.f32.mrf.mxu3 }
  0xb6   :  { %v199_v41 = vpop.f32.mrf.mxu0  ;;  %v209_v42 = vpop.f32.mrf.mxu1  ;;  %v297_v51 = vadd.f32 %v492_v18, %v217_v39  ;;  %v301_v52 = vadd.f32 %v492_v18, %v227_v40 }
  0xb7   :  { %v290_v45 = vadd.f32 %v492_v18, %v199_v41  ;;  %v294_v46 = vadd.f32 %v492_v18, %v209_v42 }
  0xb9   :  { %v429_v47 = vpack.c.bf16 %v290_v45, %v289_v43  ;;  %v439_v48 = vpack.c.bf16 %v294_v46, %v293_v44 }
  0xbb   :  { %461 = vst [vmem:[%s591_s3 + $0x8] sm:$0xff] %v429_v47  }
  0xbc   :  { %463 = vst [vmem:[%s591_s3 + $0x18] sm:$0xff] %v439_v48  }
  0xbd   :  { %v219_v49 = vpop.f32.mrf.mxu2  ;;  %v229_v50 = vpop.f32.mrf.mxu3 }
  0xbe   :  { %v298_v53 = vadd.f32 %v492_v18, %v219_v49  ;;  %v302_v54 = vadd.f32 %v492_v18, %v229_v50 }
  0xc0   :  { %v449_v55 = vpack.c.bf16 %v298_v53, %v297_v51  ;;  %v459_v56 = vpack.c.bf16 %v302_v54, %v301_v52 }
  0xc2   :  { %465 = vst [vmem:[%s591_s3 + $0x28] sm:$0xff] %v449_v55  }
  0xc3   :  { %467 = vst [vmem:[%s591_s3 + $0x38] sm:$0xff] %v459_v56  }

// kernel: vqvae_forward.18
= control target key start
LH: loop header
LB: loop body
LE: loop exit
PB: predicated region body
PF: predicated region fallthrough
CT: control target
= control target key end

     0   :  { %s549_s1 = inlined_call_operand.vmem [shape: bf16[128,128], index: 1, kind: input, shape index: {}]   ;;  %s550_s2 = inlined_call_operand.vmem [shape: f32[1,128], index: 2, kind: input, shape index: {}]   ;;  %s551_s0 = inlined_call_operand.vmem [shape: bf16[128,128], index: 0, kind: input, shape index: {}]   ;;  %s552_s3 = inlined_call_operand.vmem [shape: f32[128,128], index: 3, kind: output, shape index: {}]  }
   0x1   :  { %v404_v0 = vld [vmem:[%s549_s1 + $0x38] sm:$0xff]  ;;  %v403_v1 = vld [vmem:[%s549_s1 + $0x30] sm:$0xff]  ;;  %v402_v2 = vld [vmem:[%s549_s1 + $0x28] sm:$0xff] }
   0x2   :  { %183 = vmatpush.bf16.msra.mxu0 %v404_v0  ;;  %405 = vmatpush.bf16.msra.mxu1 %v404_v0  ;;  %v401_v3 = vld [vmem:[%s549_s1 + $0x20] sm:$0xff]  ;;  %v400_v4 = vld [vmem:[%s549_s1 + $0x18] sm:$0xff]  ;;  %v399_v5 = vld [vmem:[%s549_s1 + $0x10] sm:$0xff] }
   0x3   :  { %406 = vmatpush.bf16.msra.mxu2 %v404_v0  ;;  %407 = vmatpush.bf16.msra.mxu3 %v404_v0  ;;  %v398_v6 = vld [vmem:[%s549_s1 + $0x8] sm:$0xff]  ;;  %v397_v7 = vld [vmem:[%s549_s1] sm:$0xff]  ;;  %v391_v9 = vld [vmem:[%s551_s0 + $0x10] sm:$0xff] }
   0x4   :  { %v389_v8 = vld [vmem:[%s551_s0] sm:$0xff]  ;;  %v395_v11 = vld [vmem:[%s551_s0 + $0x30] sm:$0xff]  ;;  %v390_v12 = vld [vmem:[%s551_s0 + $0x8] sm:$0xff] }
   0x5   :  { %v393_v10 = vld [vmem:[%s551_s0 + $0x20] sm:$0xff]  ;;  %v392_v13 = vld [vmem:[%s551_s0 + $0x18] sm:$0xff]  ;;  %v394_v14 = vld [vmem:[%s551_s0 + $0x28] sm:$0xff] }
   0x6   :  { %184 = vmatpush.bf16.msra.mxu0 %v403_v1  ;;  %408 = vmatpush.bf16.msra.mxu1 %v403_v1  ;;  %v396_v15 = vld [vmem:[%s551_s0 + $0x38] sm:$0xff]  ;;  %v429_v16 = vld [vmem:[%s550_s2] ss:$0 sm:$0xff] }
   0x7   :  { %409 = vmatpush.bf16.msra.mxu2 %v403_v1  ;;  %410 = vmatpush.bf16.msra.mxu3 %v403_v1 }
   0xa   :  { %185 = vmatpush.bf16.msra.mxu0 %v402_v2  ;;  %411 = vmatpush.bf16.msra.mxu1 %v402_v2 }
   0xb   :  { %412 = vmatpush.bf16.msra.mxu2 %v402_v2  ;;  %413 = vmatpush.bf16.msra.mxu3 %v402_v2 }
   0xe   :  { %186 = vmatpush.bf16.msra.mxu0 %v401_v3  ;;  %414 = vmatpush.bf16.msra.mxu1 %v401_v3 }
   0xf   :  { %415 = vmatpush.bf16.msra.mxu2 %v401_v3  ;;  %416 = vmatpush.bf16.msra.mxu3 %v401_v3 }
  0x12   :  { %187 = vmatpush.bf16.msra.mxu0 %v400_v4  ;;  %417 = vmatpush.bf16.msra.mxu1 %v400_v4 }
  0x13   :  { %418 = vmatpush.bf16.msra.mxu2 %v400_v4  ;;  %419 = vmatpush.bf16.msra.mxu3 %v400_v4 }
  0x16   :  { %188 = vmatpush.bf16.msra.mxu0 %v399_v5  ;;  %420 = vmatpush.bf16.msra.mxu1 %v399_v5 }
  0x17   :  { %421 = vmatpush.bf16.msra.mxu2 %v399_v5  ;;  %422 = vmatpush.bf16.msra.mxu3 %v399_v5 }
  0x1a   :  { %189 = vmatpush.bf16.msra.mxu0 %v398_v6  ;;  %423 = vmatpush.bf16.msra.mxu1 %v398_v6 }
  0x1b   :  { %424 = vmatpush.bf16.msra.mxu2 %v398_v6  ;;  %425 = vmatpush.bf16.msra.mxu3 %v398_v6 }
  0x1e   :  { %190 = vmatpush.bf16.msra.mxu0 %v397_v7  ;;  %426 = vmatpush.bf16.msra.mxu1 %v397_v7 }
  0x1f   :  { %427 = vmatpush.bf16.msra.mxu2 %v397_v7  ;;  %428 = vmatpush.bf16.msra.mxu3 %v397_v7 }
  0x21   :  { %191 = vmatmul.bf16.vlgmr.msra.gmra.mxu0 %v389_v8  ;;  %201 = vmatmul.bf16.vlgmr.msra.gmra.mxu1 %v391_v9 }
  0x22   :  { %211 = vmatmul.bf16.vlgmr.msra.gmra.mxu2 %v393_v10  ;;  %221 = vmatmul.bf16.vlgmr.msra.gmra.mxu3 %v395_v11 }
  0x31   :  { %196 = vmatmul.bf16.gmra.mxu0 %v390_v12  ;;  %206 = vmatmul.bf16.gmra.mxu1 %v392_v13 }
  0x32   :  { %216 = vmatmul.bf16.gmra.mxu2 %v394_v14  ;;  %226 = vmatmul.bf16.gmra.mxu3 %v396_v15 }
  0x9e   :  { %v192_v17 = vpop.f32.mrf.mxu0  ;;  %v202_v18 = vpop.f32.mrf.mxu1 }
  0x9f   :  { %v287_v19 = vadd.f32 %v429_v16, %v192_v17  ;;  %v291_v20 = vadd.f32 %v429_v16, %v202_v18 }
  0xa1   :  { %303 = vst [vmem:[%s552_s3] sm:$0xff] %v287_v19 }
  0xa2   :  { %307 = vst [vmem:[%s552_s3 + $0x20] sm:$0xff] %v291_v20 }
  0xa5   :  { %v212_v21 = vpop.f32.mrf.mxu2  ;;  %v222_v22 = vpop.f32.mrf.mxu3 }
  0xa6   :  { %v295_v23 = vadd.f32 %v429_v16, %v212_v21  ;;  %v299_v24 = vadd.f32 %v429_v16, %v222_v22  ;;  %v194_v25 = vpop.f32.mrf.mxu0  ;;  %v204_v26 = vpop.f32.mrf.mxu1 }
  0xa7   :  { %v288_v27 = vadd.f32 %v429_v16, %v194_v25  ;;  %v292_v28 = vadd.f32 %v429_v16, %v204_v26 }
  0xa8   :  { %311 = vst [vmem:[%s552_s3 + $0x40] sm:$0xff] %v295_v23 }
  0xa9   :  { %315 = vst [vmem:[%s552_s3 + $0x60] sm:$0xff] %v299_v24 }
  0xaa   :  { %304 = vst [vmem:[%s552_s3 + $0x8] sm:$0xff] %v288_v27 }
  0xab   :  { %308 = vst [vmem:[%s552_s3 + $0x28] sm:$0xff] %v292_v28 }
  0xad   :  { %v214_v29 = vpop.f32.mrf.mxu2  ;;  %v224_v30 = vpop.f32.mrf.mxu3 }
  0xae   :  { %v296_v31 = vadd.f32 %v429_v16, %v214_v29  ;;  %v300_v32 = vadd.f32 %v429_v16, %v224_v30  ;;  %v197_v33 = vpop.f32.mrf.mxu0  ;;  %v207_v34 = vpop.f32.mrf.mxu1 }
  0xaf   :  { %v289_v35 = vadd.f32 %v429_v16, %v197_v33  ;;  %v293_v36 = vadd.f32 %v429_v16, %v207_v34 }
  0xb0   :  { %312 = vst [vmem:[%s552_s3 + $0x48] sm:$0xff] %v296_v31 }
  0xb1   :  { %316 = vst [vmem:[%s552_s3 + $0x68] sm:$0xff] %v300_v32 }
  0xb2   :  { %305 = vst [vmem:[%s552_s3 + $0x10] sm:$0xff] %v289_v35 }
  0xb3   :  { %309 = vst [vmem:[%s552_s3 + $0x30] sm:$0xff] %v293_v36 }
  0xb5   :  { %v217_v37 = vpop.f32.mrf.mxu2  ;;  %v227_v38 = vpop.f32.mrf.mxu3 }
  0xb6   :  { %v297_v39 = vadd.f32 %v429_v16, %v217_v37  ;;  %v301_v40 = vadd.f32 %v429_v16, %v227_v38  ;;  %v199_v41 = vpop.f32.mrf.mxu0  ;;  %v209_v42 = vpop.f32.mrf.mxu1 }
  0xb7   :  { %v290_v43 = vadd.f32 %v429_v16, %v199_v41  ;;  %v294_v44 = vadd.f32 %v429_v16, %v209_v42 }
  0xb8   :  { %313 = vst [vmem:[%s552_s3 + $0x50] sm:$0xff] %v297_v39 }
  0xb9   :  { %317 = vst [vmem:[%s552_s3 + $0x70] sm:$0xff] %v301_v40 }
  0xba   :  { %306 = vst [vmem:[%s552_s3 + $0x18] sm:$0xff] %v290_v43 }
  0xbb   :  { %310 = vst [vmem:[%s552_s3 + $0x38] sm:$0xff] %v294_v44 }
  0xbd   :  { %v219_v45 = vpop.f32.mrf.mxu2  ;;  %v229_v46 = vpop.f32.mrf.mxu3 }
  0xbe   :  { %v298_v47 = vadd.f32 %v429_v16, %v219_v45  ;;  %v302_v48 = vadd.f32 %v429_v16, %v229_v46 }
  0xc0   :  { %314 = vst [vmem:[%s552_s3 + $0x58] sm:$0xff] %v298_v47 }
  0xc1   :  { %318 = vst [vmem:[%s552_s3 + $0x78] sm:$0xff] %v302_v48 }

// kernel: vqvae_forward.17
= control target key start
LH: loop header
LB: loop body
LE: loop exit
PB: predicated region body
PF: predicated region fallthrough
CT: control target
= control target key end

     0   :  { %s741_s1 = inlined_call_operand.vmem [shape: bf16[128,128], index: 1, kind: input, shape index: {}]   ;;  %s742_s2 = inlined_call_operand.vmem [shape: f32[1,128], index: 2, kind: input, shape index: {}]   ;;  %s743_s0 = inlined_call_operand.vmem [shape: bf16[128,128], index: 0, kind: input, shape index: {}]   ;;  %s744_s3 = inlined_call_operand.vmem [shape: bf16[128,128], index: 3, kind: input, shape index: {}]   ;;  %s745_s4 = inlined_call_operand.vmem [shape: bf16[128,128], index: 4, kind: output, shape index: {}]  }
   0x1   :  { %v487_v0 = vld [vmem:[%s741_s1 + $0x38] sm:$0xff]  ;;  %v486_v1 = vld [vmem:[%s741_s1 + $0x30] sm:$0xff]  ;;  %v485_v2 = vld [vmem:[%s741_s1 + $0x28] sm:$0xff] }
   0x2   :  { %186 = vmatpush.bf16.msra.mxu0 %v487_v0  ;;  %574 = vmatpush.bf16.msra.mxu1 %v487_v0  ;;  %v484_v3 = vld [vmem:[%s741_s1 + $0x20] sm:$0xff]  ;;  %v483_v4 = vld [vmem:[%s741_s1 + $0x18] sm:$0xff]  ;;  %v482_v5 = vld [vmem:[%s741_s1 + $0x10] sm:$0xff] }
   0x3   :  { %575 = vmatpush.bf16.msra.mxu2 %v487_v0  ;;  %576 = vmatpush.bf16.msra.mxu3 %v487_v0  ;;  %v481_v6 = vld [vmem:[%s741_s1 + $0x8] sm:$0xff]  ;;  %v480_v7 = vld [vmem:[%s741_s1] sm:$0xff]  ;;  %v474_v9 = vld [vmem:[%s743_s0 + $0x10] sm:$0xff] }
   0x4   :  { %v472_v8 = vld [vmem:[%s743_s0] sm:$0xff]  ;;  %v478_v11 = vld [vmem:[%s743_s0 + $0x30] sm:$0xff]  ;;  %v473_v12 = vld [vmem:[%s743_s0 + $0x8] sm:$0xff] }
   0x5   :  { %v476_v10 = vld [vmem:[%s743_s0 + $0x20] sm:$0xff]  ;;  %v475_v13 = vld [vmem:[%s743_s0 + $0x18] sm:$0xff]  ;;  %v477_v14 = vld [vmem:[%s743_s0 + $0x28] sm:$0xff] }
   0x6   :  { %187 = vmatpush.bf16.msra.mxu0 %v486_v1  ;;  %577 = vmatpush.bf16.msra.mxu1 %v486_v1  ;;  %v479_v15 = vld [vmem:[%s743_s0 + $0x38] sm:$0xff]  ;;  %v675_v18 = vld [vmem:[%s742_s2] ss:$0 sm:$0xff]  ;;  %v561_v20 = vld [vmem:[%s744_s3 + $0x10] sm:$0xff]  }
   0x7   :  { %578 = vmatpush.bf16.msra.mxu2 %v486_v1  ;;  %579 = vmatpush.bf16.msra.mxu3 %v486_v1  ;;  %v489_v19 = vld [vmem:[%s744_s3] sm:$0xff]   ;;  %v498_v24 = vunpack.c.l.bf16 %v561_v20  ;;  %v499_v28 = vunpack.c.h.bf16 %v561_v20  ;;  %v565_v34 = vld [vmem:[%s744_s3 + $0x30] sm:$0xff]   ;;  %v560_v61 = vld [vmem:[%s744_s3 + $0x8] sm:$0xff]  }
   0x8   :  { %v490_v22 = vunpack.c.l.bf16 %v489_v19  ;;  %v491_v27 = vunpack.c.h.bf16 %v489_v19  ;;  %v563_v33 = vld [vmem:[%s744_s3 + $0x20] sm:$0xff]   ;;  %v514_v42 = vunpack.c.l.bf16 %v565_v34  ;;  %v515_v48 = vunpack.c.h.bf16 %v565_v34  ;;  %v562_v62 = vld [vmem:[%s744_s3 + $0x18] sm:$0xff]  }
   0x9   :  { %v506_v40 = vunpack.c.l.bf16 %v563_v33  ;;  %v507_v47 = vunpack.c.h.bf16 %v563_v33  ;;  %v566_v19 = vld [vmem:[%s744_s3 + $0x38] sm:$0xff]  }
   0xa   :  { %188 = vmatpush.bf16.msra.mxu0 %v485_v2  ;;  %580 = vmatpush.bf16.msra.mxu1 %v485_v2  ;;  %v519_v33 = vunpack.c.h.bf16 %v566_v19 }
   0xb   :  { %581 = vmatpush.bf16.msra.mxu2 %v485_v2  ;;  %582 = vmatpush.bf16.msra.mxu3 %v485_v2 }
   0xe   :  { %189 = vmatpush.bf16.msra.mxu0 %v484_v3  ;;  %583 = vmatpush.bf16.msra.mxu1 %v484_v3 }
   0xf   :  { %584 = vmatpush.bf16.msra.mxu2 %v484_v3  ;;  %585 = vmatpush.bf16.msra.mxu3 %v484_v3 }
  0x12   :  { %190 = vmatpush.bf16.msra.mxu0 %v483_v4  ;;  %586 = vmatpush.bf16.msra.mxu1 %v483_v4 }
  0x13   :  { %587 = vmatpush.bf16.msra.mxu2 %v483_v4  ;;  %588 = vmatpush.bf16.msra.mxu3 %v483_v4  ;;  %v494_v4 = vunpack.c.l.bf16 %v560_v61 }
  0x16   :  { %191 = vmatpush.bf16.msra.mxu0 %v482_v5  ;;  %589 = vmatpush.bf16.msra.mxu1 %v482_v5 }
  0x17   :  { %590 = vmatpush.bf16.msra.mxu2 %v482_v5  ;;  %591 = vmatpush.bf16.msra.mxu3 %v482_v5 }
  0x1a   :  { %192 = vmatpush.bf16.msra.mxu0 %v481_v6  ;;  %592 = vmatpush.bf16.msra.mxu1 %v481_v6 }
  0x1b   :  { %593 = vmatpush.bf16.msra.mxu2 %v481_v6  ;;  %594 = vmatpush.bf16.msra.mxu3 %v481_v6  ;;  %v502_v6 = vunpack.c.l.bf16 %v562_v62 }
  0x1e   :  { %193 = vmatpush.bf16.msra.mxu0 %v480_v7  ;;  %595 = vmatpush.bf16.msra.mxu1 %v480_v7 }
  0x1f   :  { %596 = vmatpush.bf16.msra.mxu2 %v480_v7  ;;  %597 = vmatpush.bf16.msra.mxu3 %v480_v7 }
  0x21   :  { %194 = vmatmul.bf16.vlgmr.msra.gmra.mxu0 %v472_v8  ;;  %204 = vmatmul.bf16.vlgmr.msra.gmra.mxu1 %v474_v9 }
  0x22   :  { %214 = vmatmul.bf16.vlgmr.msra.gmra.mxu2 %v476_v10  ;;  %224 = vmatmul.bf16.vlgmr.msra.gmra.mxu3 %v478_v11  ;;  %v495_v11 = vunpack.c.h.bf16 %v560_v61 }
  0x31   :  { %199 = vmatmul.bf16.gmra.mxu0 %v473_v12  ;;  %209 = vmatmul.bf16.gmra.mxu1 %v475_v13  ;;  %v503_v12 = vunpack.c.h.bf16 %v562_v62 }
  0x32   :  { %219 = vmatmul.bf16.gmra.mxu2 %v477_v14  ;;  %229 = vmatmul.bf16.gmra.mxu3 %v479_v15 }
  0x9e   :  { %v195_v16 = vpop.f32.mrf.mxu0  ;;  %v205_v17 = vpop.f32.mrf.mxu1 }
  0x9f   :  { %v290_v21 = vadd.f32 %v675_v18, %v195_v16  ;;  %v294_v23 = vadd.f32 %v675_v18, %v205_v17  ;;  %v564_v17 = vld [vmem:[%s744_s3 + $0x28] sm:$0xff]  }
  0xa1   :  { %v338_v31 = vadd.f32 %v490_v22, %v290_v21  ;;  %v342_v32 = vadd.f32 %v498_v24, %v294_v23 }
  0xa3   :  { %v354_v43 = vmax.f32 %v338_v31, 0.0  ;;  %v358_v44 = vmax.f32 %v342_v32, 0.0  ;;  %v511_v32 = vunpack.c.h.bf16 %v564_v17 }
  0xa5   :  { %v215_v25 = vpop.f32.mrf.mxu2  ;;  %v225_v26 = vpop.f32.mrf.mxu3 }
  0xa6   :  { %v197_v29 = vpop.f32.mrf.mxu0  ;;  %v207_v30 = vpop.f32.mrf.mxu1  ;;  %v298_v39 = vadd.f32 %v675_v18, %v215_v25  ;;  %v302_v41 = vadd.f32 %v675_v18, %v225_v26  ;;  %v510_v25 = vunpack.c.l.bf16 %v564_v17 }
  0xa7   :  { %v291_v35 = vadd.f32 %v675_v18, %v197_v29  ;;  %v295_v36 = vadd.f32 %v675_v18, %v207_v30 }
  0xa8   :  { %v346_v53 = vadd.f32 %v506_v40, %v298_v39  ;;  %v350_v54 = vadd.f32 %v514_v42, %v302_v41 }
  0xa9   :  { %v339_v37 = vadd.f32 %v491_v27, %v291_v35  ;;  %v343_v38 = vadd.f32 %v499_v28, %v295_v36  ;;  %v518_v27 = vunpack.c.l.bf16 %v566_v19 }
  0xaa   :  { %v362_v63 = vmax.f32 %v346_v53, 0.0  ;;  %v366_v0 = vmax.f32 %v350_v54, 0.0 }
  0xab   :  { %v355_v45 = vmax.f32 %v339_v37, 0.0  ;;  %v359_v46 = vmax.f32 %v343_v38, 0.0 }
  0xad   :  { %v523_v49 = vpack.c.bf16 %v355_v45, %v354_v43  ;;  %v533_v50 = vpack.c.bf16 %v359_v46, %v358_v44  ;;  %v217_v51 = vpop.f32.mrf.mxu2  ;;  %v227_v52 = vpop.f32.mrf.mxu3 }
  0xae   :  { %v299_v55 = vadd.f32 %v675_v18, %v217_v51  ;;  %v303_v56 = vadd.f32 %v675_v18, %v227_v52  ;;  %v200_v57 = vpop.f32.mrf.mxu0  ;;  %v210_v58 = vpop.f32.mrf.mxu1 }
  0xaf   :  { %524 = vst [vmem:[%s745_s4] sm:$0xff] %v523_v49   ;;  %v292_v3 = vadd.f32 %v675_v18, %v200_v57  ;;  %v296_v5 = vadd.f32 %v675_v18, %v210_v58 }
  0xb0   :  { %568 = vst [vmem:[%s745_s4 + $0x10] sm:$0xff] %v533_v50   ;;  %v347_v59 = vadd.f32 %v507_v47, %v299_v55  ;;  %v351_v60 = vadd.f32 %v515_v48, %v303_v56 }
  0xb1   :  { %v340_v15 = vadd.f32 %v494_v4, %v292_v3  ;;  %v344_v16 = vadd.f32 %v502_v6, %v296_v5 }
  0xb2   :  { %v363_v1 = vmax.f32 %v347_v59, 0.0  ;;  %v367_v2 = vmax.f32 %v351_v60, 0.0 }
  0xb3   :  { %v356_v28 = vmax.f32 %v340_v15, 0.0  ;;  %v360_v29 = vmax.f32 %v344_v16, 0.0 }
  0xb4   :  { %v543_v7 = vpack.c.bf16 %v363_v1, %v362_v63  ;;  %v553_v8 = vpack.c.bf16 %v367_v2, %v366_v0 }
  0xb5   :  { %v220_v9 = vpop.f32.mrf.mxu2  ;;  %v230_v10 = vpop.f32.mrf.mxu3 }
  0xb6   :  { %570 = vst [vmem:[%s745_s4 + $0x20] sm:$0xff] %v543_v7   ;;  %v202_v13 = vpop.f32.mrf.mxu0  ;;  %v212_v14 = vpop.f32.mrf.mxu1  ;;  %v300_v24 = vadd.f32 %v675_v18, %v220_v9  ;;  %v304_v26 = vadd.f32 %v675_v18, %v230_v10 }
  0xb7   :  { %572 = vst [vmem:[%s745_s4 + $0x30] sm:$0xff] %v553_v8   ;;  %v293_v20 = vadd.f32 %v675_v18, %v202_v13  ;;  %v297_v21 = vadd.f32 %v675_v18, %v212_v14 }
  0xb8   :  { %v348_v38 = vadd.f32 %v510_v25, %v300_v24  ;;  %v352_v39 = vadd.f32 %v518_v27, %v304_v26 }
  0xb9   :  { %v341_v22 = vadd.f32 %v495_v11, %v293_v20  ;;  %v345_v23 = vadd.f32 %v503_v12, %v297_v21 }
  0xba   :  { %v364_v44 = vmax.f32 %v348_v38, 0.0  ;;  %v368_v45 = vmax.f32 %v352_v39, 0.0 }
  0xbb   :  { %v357_v30 = vmax.f32 %v341_v22, 0.0  ;;  %v361_v31 = vmax.f32 %v345_v23, 0.0 }
  0xbd   :  { %v528_v34 = vpack.c.bf16 %v357_v30, %v356_v28  ;;  %v538_v35 = vpack.c.bf16 %v361_v31, %v360_v29  ;;  %v222_v36 = vpop.f32.mrf.mxu2  ;;  %v232_v37 = vpop.f32.mrf.mxu3 }
  0xbe   :  { %v301_v40 = vadd.f32 %v675_v18, %v222_v36  ;;  %v305_v41 = vadd.f32 %v675_v18, %v232_v37 }
  0xbf   :  { %567 = vst [vmem:[%s745_s4 + $0x8] sm:$0xff] %v528_v34  }
  0xc0   :  { %569 = vst [vmem:[%s745_s4 + $0x18] sm:$0xff] %v538_v35   ;;  %v349_v42 = vadd.f32 %v511_v32, %v301_v40  ;;  %v353_v43 = vadd.f32 %v519_v33, %v305_v41 }
  0xc2   :  { %v365_v46 = vmax.f32 %v349_v42, 0.0  ;;  %v369_v47 = vmax.f32 %v353_v43, 0.0 }
  0xc4   :  { %v548_v48 = vpack.c.bf16 %v365_v46, %v364_v44  ;;  %v558_v49 = vpack.c.bf16 %v369_v47, %v368_v45 }
  0xc6   :  { %571 = vst [vmem:[%s745_s4 + $0x28] sm:$0xff] %v548_v48  }
  0xc7   :  { %573 = vst [vmem:[%s745_s4 + $0x38] sm:$0xff] %v558_v49  }

// kernel: vqvae_forward.19
= control target key start
LH: loop header
LB: loop body
LE: loop exit
PB: predicated region body
PF: predicated region fallthrough
CT: control target
= control target key end

     0   :  { %s2557_s0 = inlined_call_operand.vmem [shape: f32[128,128], index: 0, kind: input, shape index: {}]   ;;  %s2558_s3 = inlined_call_operand.vmem [shape: f32[1,128], index: 3, kind: input, shape index: {}]   ;;  %s2559_s4 = inlined_call_operand.vmem [shape: f32[1,128], index: 4, kind: input, shape index: {}]   ;;  %s2560_s1 = inlined_call_operand.vmem [shape: bf16[128,128], index: 1, kind: input, shape index: {}]   ;;  %s2561_s2 = inlined_call_operand.vmem [shape: bf16[128,128], index: 2, kind: input, shape index: {}]   ;;  %s2562_s5 = inlined_call_operand.vmem [shape: bf16[128,128], index: 5, kind: output, shape index: {0}]   ;;  %s2563_s6 = inlined_call_operand.vmem [shape: s32[128,1], index: 6, kind: output, shape index: {1}]  }
   0x1   :  { %v30_v0 = vld [vmem:[%s2557_s0 + $0x40] sm:$0xff]  ;;  %v32_v2 = vld [vmem:[%s2557_s0 + $0x50] sm:$0xff]  ;;  %v31_v3 = vld [vmem:[%s2557_s0 + $0x48] sm:$0xff] }
   0x2   :  { %v22_v1 = vld [vmem:[%s2557_s0] sm:$0xff]  ;;  %54 = vadd.xlane.f32.xlu0 %v30_v0  ;;  %58 = vadd.xlane.f32.xlu2 %v32_v2  ;;  %v23_v4 = vld [vmem:[%s2557_s0 + $0x8] sm:$0xff]  ;;  %v33_v5 = vld [vmem:[%s2557_s0 + $0x58] sm:$0xff] }
   0x3   :  { %38 = vadd.xlane.f32.xlu1 %v22_v1  ;;  %v1461_v6 = vld [vmem:[%s2557_s0 + $0x10] sm:$0xff]  ;;  %v25_v7 = vld [vmem:[%s2557_s0 + $0x18] sm:$0xff]  ;;  %v34_v8 = vld [vmem:[%s2557_s0 + $0x60] sm:$0xff] }
   0x4   :  { %v1473_v9 = vld [vmem:[%s2557_s0 + $0x68] sm:$0xff]  ;;  %v1478_v10 = vld [vmem:[%s2557_s0 + $0x20] sm:$0xff]  ;;  %v1488_v12 = vld [vmem:[%s2557_s0 + $0x78] sm:$0xff] }
   0x5   :  { %v27_v11 = vld [vmem:[%s2557_s0 + $0x28] sm:$0xff]  ;;  %v1493_v13 = vld [vmem:[%s2557_s0 + $0x70] sm:$0xff]  ;;  %v1564_v52 = vld [vmem:[%s2557_s0 + $0x38] sm:$0xff] }
   0x6   :  { %v1523_v30 = vld [vmem:[%s2557_s0 + $0x30] sm:$0xff] }
   0xa   :  { %56 = vadd.xlane.f32.xlu0 %v31_v3  ;;  %60 = vadd.xlane.f32.xlu2 %v33_v5 }
   0xb   :  { %40 = vadd.xlane.f32.xlu1 %v23_v4 }
  0x12   :  { %42 = vadd.xlane.f32.xlu0 %v1461_v6  ;;  %62 = vadd.xlane.f32.xlu2 %v34_v8 }
  0x13   :  { %44 = vadd.xlane.f32.xlu1 %v25_v7 }
  0x1a   :  { %64 = vadd.xlane.f32.xlu0 %v1473_v9  ;;  %48 = vadd.xlane.f32.xlu2 %v27_v11 }
  0x1b   :  { %46 = vadd.xlane.f32.xlu1 %v1478_v10 }
  0x22   :  { %68 = vadd.xlane.f32.xlu0 %v1488_v12  ;;  %66 = vadd.xlane.f32.xlu2 %v1493_v13 }
  0x75   :  { %v55_v14 = vpop.xlane.xlu0 %54  ;;  %v59_v17 = vpop.xlane.xlu2 %58 }
  0x76   :  { %v39_v15 = vpop.xlane.xlu1 %38  ;;  %v1497_v16 = vmul.f32 0.125, %v55_v14  ;;  %v1518_v29 = vmul.f32 0.125, %v59_v17  ;;  %v1230_v14 = vld [vmem:[%s2560_s1 + $0x10] sm:$0xff] }
  0x77   :  { %v1508_v25 = vmul.f32 0.125, %v39_v15 }
  0x78   :  { %v1500_v18 = vsub.f32 %v30_v0, %v1497_v16  ;;  %v1537_v35 = vsub.f32 %v32_v2, %v1518_v29 }
  0x79   :  { %v1530_v33 = vsub.f32 %v22_v1, %v1508_v25 }
  0x7a   :  { %v110_v19 = vmul.f32 %v1500_v18, %v1500_v18  ;;  %v112_v42 = vmul.f32 %v1537_v35, %v1537_v35 }
  0x7b   :  { %v102_v40 = vmul.f32 %v1530_v33, %v1530_v33 }
  0x7c   :  { %134 = vadd.xlane.f32.xlu0 %v110_v19 }
  0x7d   :  { %v57_v20 = vpop.xlane.xlu0 %56  ;;  %v61_v24 = vpop.xlane.xlu2 %60 }
  0x7e   :  { %v41_v21 = vpop.xlane.xlu1 %40  ;;  %v1504_v22 = vmul.f32 0.125, %v57_v20  ;;  %v1516_v28 = vmul.f32 0.125, %v61_v24 }
  0x7f   :  { %v1506_v23 = vmul.f32 0.125, %v41_v21 }
  0x80   :  { %v1511_v26 = vsub.f32 %v31_v3, %v1504_v22  ;;  %v1534_v34 = vsub.f32 %v33_v5, %v1516_v28  ;;  %v159_v20 = vmul.f32 %v1504_v22, %v1504_v22  ;;  %v1228_v22 = vld [vmem:[%s2560_s1] sm:$0xff] }
  0x81   :  { %v1514_v27 = vsub.f32 %v23_v4, %v1506_v23  ;;  %v151_v24 = vmul.f32 %v1506_v23, %v1506_v23 }
  0x82   :  { %v111_v31 = vmul.f32 %v1511_v26, %v1511_v26  ;;  %v113_v39 = vmul.f32 %v1534_v34, %v1534_v34 }
  0x83   :  { %v103_v32 = vmul.f32 %v1514_v27, %v1514_v27 }
  0x84   :  { %50 = vadd.xlane.f32.xlu0 %v1523_v30  ;;  %136 = vadd.xlane.f32.xlu1 %v111_v31 }
  0x85   :  { %120 = vadd.xlane.f32.xlu2 %v103_v32  ;;  %v43_v36 = vpop.xlane.xlu0 %42  ;;  %v63_v38 = vpop.xlane.xlu2 %62  ;;  %v175_v32 = vmul.f32 120.0, %v159_v20 }
  0x86   :  { %v45_v37 = vpop.xlane.xlu1 %44  ;;  %v1543_v41 = vmul.f32 0.125, %v63_v38  ;;  %v1555_v49 = vmul.f32 0.125, %v43_v36 }
  0x87   :  { %v1547_v43 = vmul.f32 0.125, %v45_v37  ;;  %v167_v37 = vmul.f32 120.0, %v151_v24 }
  0x88   :  { %v1550_v44 = vsub.f32 %v34_v8, %v1543_v41  ;;  %v1572_v55 = vsub.f32 %v1461_v6, %v1555_v49  ;;  %v1235_v8 = vld [vmem:[%s2560_s1 + $0x38] sm:$0xff] }
  0x89   :  { %v1553_v45 = vsub.f32 %v25_v7, %v1547_v43  ;;  %1291 = vmatpush.bf16.msra.mxu2 %v1235_v8  ;;  %518 = vmatpush.bf16.msra.mxu0 %v1235_v8 }
  0x8a   :  { %v114_v50 = vmul.f32 %v1550_v44, %v1550_v44  ;;  %v104_v61 = vmul.f32 %v1572_v55, %v1572_v55 }
  0x8b   :  { %v105_v53 = vmul.f32 %v1553_v45, %v1553_v45 }
  0x8c   :  { %140 = vadd.xlane.f32.xlu0 %v113_v39  ;;  %118 = vadd.xlane.f32.xlu1 %v102_v40 }
  0x8d   :  { %138 = vadd.xlane.f32.xlu2 %v112_v42  ;;  %v65_v46 = vpop.xlane.xlu0 %64  ;;  %v49_v47 = vpop.xlane.xlu2 %48 }
  0x8e   :  { %v47_v48 = vpop.xlane.xlu1 %46  ;;  %v1559_v51 = vmul.f32 0.125, %v49_v47  ;;  %v1582_v59 = vmul.f32 0.125, %v65_v46  ;;  %v150_v46 = vmul.f32 %v1508_v25, %v1508_v25  ;;  %v161_v47 = vmul.f32 %v1516_v28, %v1516_v28 }
  0x8f   :  { %v1568_v54 = vmul.f32 0.125, %v47_v48 }
  0x90   :  { %v1576_v56 = vsub.f32 %v27_v11, %v1559_v51  ;;  %v1594_v0 = vsub.f32 %v1473_v9, %v1582_v59  ;;  %v1234_v9 = vld [vmem:[%s2560_s1 + $0x30] sm:$0xff]  ;;  %v1232_v11 = vld [vmem:[%s2560_s1 + $0x20] sm:$0xff] }
  0x91   :  { %v1580_v57 = vsub.f32 %v1478_v10, %v1568_v54  ;;  %1292 = vmatpush.bf16.msra.mxu2 %v1234_v9  ;;  %519 = vmatpush.bf16.msra.mxu0 %v1234_v9  ;;  %v1233_v10 = vld [vmem:[%s2560_s1 + $0x28] sm:$0xff] }
  0x92   :  { %v107_v60 = vmul.f32 %v1576_v56, %v1576_v56  ;;  %v115_v3 = vmul.f32 %v1594_v0, %v1594_v0 }
  0x93   :  { %v106_v62 = vmul.f32 %v1580_v57, %v1580_v57 }
  0x94   :  { %142 = vadd.xlane.f32.xlu0 %v114_v50  ;;  %52 = vadd.xlane.f32.xlu1 %v1564_v52 }
  0x95   :  { %124 = vadd.xlane.f32.xlu2 %v105_v53  ;;  %v69_v58 = vpop.xlane.xlu0 %68  ;;  %v67_v2 = vpop.xlane.xlu2 %66  ;;  %1293 = vmatpush.bf16.msra.mxu2 %v1233_v10  ;;  %v160_v53 = vmul.f32 %v1518_v29, %v1518_v29 }
  0x96   :  { %v1590_v63 = vmul.f32 0.125, %v69_v58  ;;  %v1602_v4 = vmul.f32 0.125, %v67_v2  ;;  %520 = vmatpush.bf16.msra.mxu0 %v1233_v10  ;;  %v166_v2 = vmul.f32 120.0, %v150_v46 }
  0x98   :  { %v1598_v1 = vsub.f32 %v1488_v12, %v1590_v63  ;;  %v1608_v6 = vsub.f32 %v1493_v13, %v1602_v4  ;;  %v1231_v12 = vld [vmem:[%s2560_s1 + $0x18] sm:$0xff]  ;;  %v158_v13 = vmul.f32 %v1497_v16, %v1497_v16  ;;  %v1229_v16 = vld [vmem:[%s2560_s1 + $0x8] sm:$0xff]  ;;  %v165_v46 = vmul.f32 %v1590_v63, %v1590_v63 }
  0x99   :  { %1294 = vmatpush.bf16.msra.mxu2 %v1232_v11 }
  0x9a   :  { %v117_v5 = vmul.f32 %v1598_v1, %v1598_v1  ;;  %v116_v7 = vmul.f32 %v1608_v6, %v1608_v6  ;;  %521 = vmatpush.bf16.msra.mxu0 %v1232_v11  ;;  %v174_v15 = vmul.f32 120.0, %v158_v13 }
  0x9c   :  { %128 = vadd.xlane.f32.xlu0 %v107_v60  ;;  %122 = vadd.xlane.f32.xlu1 %v104_v61 }
  0x9d   :  { %126 = vadd.xlane.f32.xlu2 %v106_v62  ;;  %1295 = vmatpush.bf16.msra.mxu2 %v1231_v12 }
  0x9e   :  { %522 = vmatpush.bf16.msra.mxu0 %v1231_v12  ;;  %v162_v12 = vmul.f32 %v1543_v41, %v1543_v41  ;;  %v163_v41 = vmul.f32 %v1582_v59, %v1582_v59 }
  0xa0   :  { %v1711_v63 = vmul.f32 120.0, %v163_v41 }
  0xa1   :  { %1296 = vmatpush.bf16.msra.mxu2 %v1230_v14 }
  0xa2   :  { %523 = vmatpush.bf16.msra.mxu0 %v1230_v14 }
  0xa4   :  { %144 = vadd.xlane.f32.xlu1 %v115_v3 }
  0xa5   :  { %148 = vadd.xlane.f32.xlu2 %v117_v5  ;;  %1297 = vmatpush.bf16.msra.mxu2 %v1229_v16  ;;  %v176_v5 = vmul.f32 120.0, %v160_v53  ;;  %v164_v53 = vmul.f32 %v1602_v4, %v1602_v4 }
  0xa6   :  { %524 = vmatpush.bf16.msra.mxu0 %v1229_v16 }
  0xa9   :  { %1298 = vmatpush.bf16.msra.mxu2 %v1228_v22 }
  0xaa   :  { %525 = vmatpush.bf16.msra.mxu0 %v1228_v22  ;;  %v178_v22 = vmul.f32 120.0, %v162_v12 }
  0xac   :  { %146 = vadd.xlane.f32.xlu1 %v116_v7 }
  0xef   :  { %v135_v17 = vpop.xlane.xlu0 %134 }
  0xf0   :  { %v190_v19 = vsub.f32 %v135_v17, %v174_v15  ;;  %v153_v15 = vmul.f32 %v1547_v43, %v1547_v43 }
  0xf2   :  { %v206_v21 = vmul.f32 0.125, %v190_v19 }
  0xf4   :  { %v1639_v31 = vadd.f32 1e-05, %v206_v21  ;;  %v152_v21 = vmul.f32 %v1555_v49, %v1555_v49  ;;  %v155_v49 = vmul.f32 %v1559_v51, %v1559_v51 }
  0xf6   :  { %1309 = vrsqrt.f32 %v1639_v31  ;;  %vm316_vm1 = vweird.f32 %v1639_v31 }
  0xf7   :  { %v51_v36 = vpop.xlane.xlu0 %50  ;;  %v137_v38 = vpop.xlane.xlu1 %136 }
  0xf8   :  { %v1645_v39 = vmul.f32 0.125, %v51_v36  ;;  %v121_v23 = vpop.xlane.xlu2 %120  ;;  %v191_v40 = vsub.f32 %v137_v38, %v175_v32  ;;  %v154_v36 = vmul.f32 %v1568_v54, %v1568_v54 }
  0xf9   :  { %v183_v42 = vsub.f32 %v121_v23, %v167_v37 }
  0xfa   :  { %v1653_v48 = vsub.f32 %v1523_v30, %v1645_v39  ;;  %v207_v50 = vmul.f32 0.125, %v191_v40  ;;  %v177_v30 = vmul.f32 120.0, %v161_v47  ;;  %v169_v40 = vmul.f32 120.0, %v153_v15 }
  0xfb   :  { %v199_v58 = vmul.f32 0.125, %v183_v42 }
  0xfc   :  { %v1657_v60 = vpop.eup %1309  ;;  %v1659_v61 = vadd.f32 1e-05, %v207_v50  ;;  %v108_v62 = vmul.f32 %v1653_v48, %v1653_v48 }
  0xfd   :  { %v311_v25 = vmul.f32 %v1657_v60, %v1639_v31  ;;  %v1665_v28 = vadd.f32 1e-05, %v199_v58  ;;  %vm317_vm0 = vweird.f32 %v1657_v60 }
  0xfe   :  { %1311 = vrsqrt.f32 %v1659_v61  ;;  %130 = vadd.xlane.f32.xlu0 %v108_v62  ;;  %vm1730_vm2 = vmor %vm316_vm1, %vm317_vm0  ;;  %vm326_vm4 = vweird.f32 %v1659_v61 }
  0xff   :  { %v312_v29 = vmul.f32 %v1657_v60, %v311_v25  ;;  %1313 = vrsqrt.f32 %v1665_v28  ;;  %v141_v3 = vpop.xlane.xlu0 %140  ;;  %v119_v7 = vpop.xlane.xlu1 %118  ;;  %vm246_vm6 = vweird.f32 %v1665_v28 }
 0x100   :  { %v193_v8 = vsub.f32 %v141_v3, %v177_v30  ;;  %v139_v9 = vpop.xlane.xlu2 %138  ;;  %v182_v10 = vsub.f32 %v119_v7, %v166_v2 }
 0x101   :  { %v192_v11 = vsub.f32 %v139_v9, %v176_v5  ;;  %v313_v17 = vmul.f32 0.5, %v312_v29  ;;  %v168_v29 = vmul.f32 120.0, %v152_v21 }
 0x102   :  { %v209_v13 = vmul.f32 0.125, %v193_v8  ;;  %v198_v14 = vmul.f32 0.125, %v182_v10  ;;  %v171_v10 = vmul.f32 120.0, %v155_v49 }
 0x103   :  { %v208_v19 = vmul.f32 0.125, %v192_v11  ;;  %v314_v23 = vsub.f32 1.5, %v313_v17  ;;  %v170_v11 = vmul.f32 120.0, %v154_v36 }
 0x104   :  { %v1674_v20 = vpop.eup %1311  ;;  %v1678_v24 = vadd.f32 1e-05, %v209_v13  ;;  %v1680_v16 = vadd.f32 1e-05, %v198_v14 }
 0x105   :  { %v1682_v32 = vpop.eup %1313  ;;  %v321_v43 = vmul.f32 %v1674_v20, %v1659_v61  ;;  %v1690_v37 = vadd.f32 1e-05, %v208_v19  ;;  %v315_v3 = vmul.f32 %v1657_v60, %v314_v23  ;;  %vm327_vm3 = vweird.f32 %v1674_v20 }
 0x106   :  { %v241_v38 = vmul.f32 %v1682_v32, %v1665_v28  ;;  %1315 = vrsqrt.f32 %v1678_v24  ;;  %vm1750_vm5 = vmor %vm326_vm4, %vm327_vm3  ;;  %vm247_vm7 = vweird.f32 %v1682_v32  ;;  %vm236_vm8 = vweird.f32 %v1680_v16 }
 0x107   :  { %v322_v59 = vmul.f32 %v1674_v20, %v321_v43  ;;  %1317 = vrsqrt.f32 %v1690_v37  ;;  %v143_v54 = vpop.xlane.xlu0 %142  ;;  %v53_v42 = vpop.xlane.xlu1 %52  ;;  %v181_v43 = vmul.f32 120.0, %v165_v46  ;;  %v319_v49 = vsel %vm1730_vm2, %v1657_v60, %v315_v3  ;;  %vm1825_vm15 = vmor %vm246_vm6, %vm247_vm7 }
 0x108   :  { %1319 = vrsqrt.f32 %v1680_v16  ;;  %v194_v51 = vsub.f32 %v143_v54, %v178_v22  ;;  %v125_v47 = vpop.xlane.xlu2 %124  ;;  %v1702_v50 = vmul.f32 0.125, %v53_v42  ;;  %v242_v58 = vmul.f32 %v1682_v32, %v241_v38 }
 0x109   :  { %v323_v62 = vmul.f32 0.5, %v322_v59  ;;  %v185_v25 = vsub.f32 %v125_v47, %v169_v40  ;;  %vm336_vm9 = vweird.f32 %v1690_v37  ;;  %vm346_vm12 = vweird.f32 %v1678_v24 }
 0x10a   :  { %v210_v30 = vmul.f32 0.125, %v194_v51  ;;  %v1709_v2 = vsub.f32 %v1564_v52, %v1702_v50  ;;  %v243_v12 = vmul.f32 0.5, %v242_v58  ;;  %v1758_v58 = vmul.f32 120.0, %v164_v53 }
 0x10b   :  { %v324_v5 = vsub.f32 1.5, %v323_v62  ;;  %v201_v7 = vmul.f32 0.125, %v185_v25 }
 0x10c   :  { %v1715_v8 = vpop.eup %1315  ;;  %v1717_v4 = vadd.f32 1e-05, %v210_v30  ;;  %v109_v9 = vmul.f32 %v1709_v2, %v1709_v2  ;;  %v244_v54 = vsub.f32 1.5, %v243_v12  ;;  %v398_v30 = vmul.f32 %v319_v49, %v1500_v18 }
 0x10d   :  { %v1721_v52 = vpop.eup %1317  ;;  %v341_v13 = vmul.f32 %v1715_v8, %v1678_v24  ;;  %v1726_v14 = vadd.f32 1e-05, %v201_v7  ;;  %v325_v19 = vmul.f32 %v1674_v20, %v324_v5  ;;  %vm347_vm10 = vweird.f32 %v1715_v8 }
 0x10e   :  { %v1728_v15 = vpop.eup %1319  ;;  %v331_v21 = vmul.f32 %v1721_v52, %v1690_v37  ;;  %1321 = vrsqrt.f32 %v1717_v4  ;;  %132 = vadd.xlane.f32.xlu1 %v109_v9  ;;  %v1774_v7 = vmul.f32 %v1682_v32, %v244_v54  ;;  %vm337_vm13 = vweird.f32 %v1721_v52 }
 0x10f   :  { %v231_v31 = vmul.f32 %v1728_v15, %v1680_v16  ;;  %v129_v41 = vpop.xlane.xlu0 %128  ;;  %v123_v36 = vpop.xlane.xlu1 %122  ;;  %v342_v38 = vmul.f32 %v1715_v8, %v341_v13  ;;  %1323 = vrsqrt.f32 %v1726_v14  ;;  %v329_v47 = vsel %vm1750_vm5, %v1674_v20, %v325_v19  ;;  %vm1846_vm1 = vmor %vm336_vm9, %vm337_vm13 }
 0x110   :  { %v332_v22 = vmul.f32 %v1721_v52, %v331_v21  ;;  %v187_v23 = vsub.f32 %v129_v41, %v171_v10  ;;  %v127_v59 = vpop.xlane.xlu2 %126  ;;  %v184_v46 = vsub.f32 %v123_v36, %v168_v29  ;;  %v1766_v29 = vld [vmem:[%s2558_s3] ss:$0 sm:$0xff]  ;;  %v399_v10 = vmul.f32 %v329_v47, %v1511_v26  ;;  %vm1873_vm5 = vmor %vm346_vm12, %vm347_vm10 }
 0x111   :  { %v232_v40 = vmul.f32 %v1728_v15, %v231_v31  ;;  %v186_v42 = vsub.f32 %v127_v59, %v170_v11  ;;  %v343_v5 = vmul.f32 0.5, %v342_v38  ;;  %vm237_vm11 = vweird.f32 %v1728_v15 }
 0x112   :  { %v333_v60 = vmul.f32 0.5, %v332_v22  ;;  %v203_v51 = vmul.f32 0.125, %v187_v23  ;;  %v200_v53 = vmul.f32 0.125, %v184_v46  ;;  %v418_v26 = vmul.f32 %v1766_v29, %v398_v30  ;;  %v1800_v22 = vld [vmem:[%s2559_s4] ss:$0 sm:$0xff]  ;;  %vm1810_vm14 = vmor %vm236_vm8, %vm237_vm11 }
 0x113   :  { %v233_v62 = vmul.f32 0.5, %v232_v40  ;;  %v202_v25 = vmul.f32 0.125, %v186_v42  ;;  %v344_v41 = vsub.f32 1.5, %v343_v5  ;;  %v419_v61 = vmul.f32 %v1766_v29, %v399_v10 }
 0x114   :  { %v1768_v3 = vpop.eup %1321  ;;  %v1771_v20 = vadd.f32 1e-05, %v203_v51  ;;  %v334_v12 = vsub.f32 1.5, %v333_v60  ;;  %v1794_v36 = vadd.f32 1e-05, %v200_v53  ;;  %v438_v5 = vadd.f32 %v1800_v22, %v418_v26 }
 0x115   :  { %v234_v9 = vsub.f32 1.5, %v233_v62  ;;  %v351_v18 = vmul.f32 %v1768_v3, %v1717_v4  ;;  %v1780_v11 = vpop.eup %1323  ;;  %v1785_v13 = vadd.f32 1e-05, %v202_v25  ;;  %v345_v62 = vmul.f32 %v1715_v8, %v344_v41 }
 0x116   :  { %1325 = vrsqrt.f32 %v1771_v20  ;;  %v261_v21 = vmul.f32 %v1780_v11, %v1726_v14  ;;  %v335_v40 = vmul.f32 %v1721_v52, %v334_v12  ;;  %vm357_vm0 = vweird.f32 %v1768_v3 }
 0x117   :  { %v235_v17 = vmul.f32 %v1728_v15, %v234_v9  ;;  %v352_v19 = vmul.f32 %v1768_v3, %v351_v18  ;;  %v145_v31 = vpop.xlane.xlu1 %144  ;;  %1327 = vrsqrt.f32 %v1785_v13  ;;  %v249_v28 = vsel %vm1825_vm15, %v1682_v32, %v1774_v7 }
 0x118   :  { %v149_v49 = vpop.xlane.xlu2 %148  ;;  %v195_v38 = vsub.f32 %v145_v31, %v1711_v63  ;;  %v262_v59 = vmul.f32 %v1780_v11, %v261_v21  ;;  %1329 = vrsqrt.f32 %v1794_v36  ;;  %vm266_vm2 = vweird.f32 %v1726_v14 }
 0x119   :  { %v353_v23 = vmul.f32 0.5, %v352_v19  ;;  %v197_v54 = vsub.f32 %v149_v49, %v181_v43  ;;  %v439_v43 = vadd.f32 %v1800_v22, %v419_v61  ;;  %v239_v51 = vsel %vm1810_vm14, %v1728_v15, %v235_v17 }
 0x11a   :  { %v211_v42 = vmul.f32 0.125, %v195_v38  ;;  %v263_v46 = vmul.f32 0.5, %v262_v59  ;;  %v390_v17 = vmul.f32 %v239_v51, %v1530_v33  ;;  %vm356_vm3 = vweird.f32 %v1717_v4 }
 0x11b   :  { %v213_v60 = vmul.f32 0.125, %v197_v54  ;;  %v354_v25 = vsub.f32 1.5, %v353_v23  ;;  %v450_v12 = vpack.c.bf16 %v439_v43, %v438_v5  ;;  %vm267_vm4 = vweird.f32 %v1780_v11  ;;  %vm1918_vm13 = vmor %vm356_vm3, %vm357_vm0 }
 0x11c   :  { %v1819_v47 = vpop.eup %1325  ;;  %v1830_v30 = vadd.f32 1e-05, %v211_v42  ;;  %v264_v15 = vsub.f32 1.5, %v263_v46  ;;  %v339_v19 = vsel %vm1846_vm1, %v1721_v52, %v335_v40  ;;  %v391_v26 = vmul.f32 %v249_v28, %v1514_v27  ;;  %vm268_vm12 = vmor %vm266_vm2, %vm267_vm4 }
 0x11d   :  { %v281_v53 = vmul.f32 %v1819_v47, %v1771_v20  ;;  %v1840_v9 = vpop.eup %1327  ;;  %v1851_v10 = vadd.f32 1e-05, %v213_v60  ;;  %v355_v31 = vmul.f32 %v1768_v3, %v354_v25  ;;  %546 = vmatmul.bf16.vlgmr.msra.gmra.mxu2 %v450_v12  ;;  %vm256_vm6 = vweird.f32 %v1794_v36 }
 0x11e   :  { %1331 = vrsqrt.f32 %v1830_v30  ;;  %v271_v37 = vmul.f32 %v1840_v9, %v1785_v13  ;;  %v1863_v21 = vpop.eup %1329  ;;  %v265_v52 = vmul.f32 %v1780_v11, %v264_v15  ;;  %vm276_vm7 = vweird.f32 %v1785_v13 }
 0x11f   :  { %v282_v32 = vmul.f32 %v1819_v47, %v281_v53  ;;  %v147_v7 = vpop.xlane.xlu1 %146  ;;  %1333 = vrsqrt.f32 %v1851_v10  ;;  %v251_v23 = vmul.f32 %v1863_v21, %v1794_v36  ;;  %v411_v24 = vmul.f32 %v1766_v29, %v391_v26 }
 0x120   :  { %v196_v33 = vsub.f32 %v147_v7, %v1758_v58  ;;  %v272_v38 = vmul.f32 %v1840_v9, %v271_v37  ;;  %v410_v58 = vmul.f32 %v1766_v29, %v390_v17  ;;  %v349_v59 = vsel %vm1873_vm5, %v1715_v8, %v345_v62 }
 0x121   :  { %v283_v49 = vmul.f32 0.5, %v282_v32  ;;  %v252_v40 = vmul.f32 %v1863_v21, %v251_v23  ;;  %v400_v63 = vmul.f32 %v339_v19, %v1537_v35  ;;  %vm286_vm8 = vweird.f32 %v1771_v20 }
 0x122   :  { %v212_v27 = vmul.f32 0.125, %v196_v33  ;;  %v273_v61 = vmul.f32 0.5, %v272_v38  ;;  %v430_v60 = vadd.f32 %v1800_v22, %v410_v58  ;;  %v431_v43 = vadd.f32 %v1800_v22, %v411_v24 }
 0x123   :  { %v284_v54 = vsub.f32 1.5, %v283_v49  ;;  %v401_v51 = vmul.f32 %v349_v59, %v1534_v34  ;;  %vm287_vm9 = vweird.f32 %v1819_v47  ;;  %v253_v16 = vmul.f32 0.5, %v252_v40 }
 0x124   :  { %v1890_v42 = vpop.eup %1331  ;;  %v1893_v46 = vadd.f32 1e-05, %v212_v27  ;;  %v274_v8 = vsub.f32 1.5, %v273_v61  ;;  %vm277_vm10 = vweird.f32 %v1840_v9  ;;  %vm257_vm11 = vweird.f32 %v1863_v21  ;;  %vm288_vm1 = vmor %vm286_vm8, %vm287_vm9 }
 0x125   :  { %v361_v62 = vmul.f32 %v1890_v42, %v1830_v30  ;;  %v1901_v35 = vpop.eup %1333  ;;  %v446_v25 = vpack.c.bf16 %v431_v43, %v430_v60  ;;  %v285_v34 = vmul.f32 %v1819_v47, %v284_v54  ;;  %v254_v15 = vsub.f32 1.5, %v253_v16  ;;  %vm258_vm14 = vmor %vm256_vm6, %vm257_vm11 }
 0x126   :  { %1335 = vrsqrt.f32 %v1893_v46  ;;  %v275_v5 = vmul.f32 %v1840_v9, %v274_v8  ;;  %v381_v53 = vmul.f32 %v1901_v35, %v1851_v10  ;;  %v420_v14 = vmul.f32 %v1766_v29, %v400_v63  ;;  %vm1943_vm0 = vmor %vm276_vm7, %vm277_vm10 }
 0x127   :  { %v362_v18 = vmul.f32 %v1890_v42, %v361_v62  ;;  %526 = vmatmul.bf16.vlgmr.msra.gmra.mxu0 %v446_v25  ;;  %v421_v12 = vmul.f32 %v1766_v29, %v401_v51  ;;  %v269_v17 = vsel %vm268_vm12, %v1780_v11, %v265_v52  ;;  %v255_v32 = vmul.f32 %v1863_v21, %v254_v15 }
 0x128   :  { %v382_v37 = vmul.f32 %v1901_v35, %v381_v53  ;;  %v393_v7 = vmul.f32 %v269_v17, %v1553_v45  ;;  %v359_v4 = vsel %vm1918_vm13, %v1768_v3, %v355_v31  ;;  %vm367_vm15 = vweird.f32 %v1890_v42 }
 0x129   :  { %v363_v19 = vmul.f32 0.5, %v362_v18  ;;  %v440_v11 = vadd.f32 %v1800_v22, %v420_v14  ;;  %v441_v33 = vadd.f32 %v1800_v22, %v421_v12  ;;  %v259_v31 = vsel %vm258_vm14, %v1863_v21, %v255_v32 }
 0x12a   :  { %v383_v3 = vmul.f32 0.5, %v382_v37  ;;  %v413_v36 = vmul.f32 %v1766_v29, %v393_v7  ;;  %v402_v26 = vmul.f32 %v359_v4, %v1550_v44  ;;  %v392_v38 = vmul.f32 %v259_v31, %v1572_v55 }
 0x12b   :  { %v364_v52 = vsub.f32 1.5, %v363_v19  ;;  %v451_v49 = vpack.c.bf16 %v441_v33, %v440_v11  ;;  %v279_v13 = vsel %vm1943_vm0, %v1840_v9, %v275_v5  ;;  %vm386_vm2 = vweird.f32 %v1851_v10 }
 0x12c   :  { %v1336_v41 = vpop.eup %1335  ;;  %v384_v23 = vsub.f32 1.5, %v383_v3  ;;  %vm366_vm3 = vweird.f32 %v1830_v30  ;;  %vm387_vm4 = vweird.f32 %v1901_v35  ;;  %v412_v21 = vmul.f32 %v1766_v29, %v392_v38 }
 0x12d   :  { %v371_v44 = vmul.f32 %v1336_v41, %v1893_v46  ;;  %v365_v55 = vmul.f32 %v1890_v42, %v364_v52  ;;  %v289_v9 = vsel %vm288_vm1, %v1819_v47, %v285_v34  ;;  %vm368_vm5 = vmor %vm366_vm3, %vm367_vm15  ;;  %v394_v58 = vmul.f32 %v279_v13, %v1580_v57  ;;  %551 = vmatmul.bf16.gmra.mxu2 %v451_v49 }
 0x12e   :  { %v385_v27 = vmul.f32 %v1901_v35, %v384_v23  ;;  %v395_v30 = vmul.f32 %v289_v9, %v1576_v56  ;;  %v432_v24 = vadd.f32 %v1800_v22, %v412_v21  ;;  %v433_v59 = vadd.f32 %v1800_v22, %v413_v36  ;;  %vm388_vm6 = vmor %vm386_vm2, %vm387_vm4 }
 0x12f   :  { %v372_v20 = vmul.f32 %v1336_v41, %v371_v44  ;;  %v369_v54 = vsel %vm368_vm5, %v1890_v42, %v365_v55  ;;  %v422_v61 = vmul.f32 %v1766_v29, %v402_v26  ;;  %v414_v63 = vmul.f32 %v1766_v29, %v394_v58 }
 0x130   :  { %v403_v40 = vmul.f32 %v369_v54, %v1594_v0  ;;  %v415_v57 = vmul.f32 %v1766_v29, %v395_v30  ;;  %vm377_vm7 = vweird.f32 %v1336_v41  ;;  %v447_v56 = vpack.c.bf16 %v433_v59, %v432_v24 }
 0x131   :  { %v373_v47 = vmul.f32 0.5, %v372_v20  ;;  %v389_v60 = vsel %vm388_vm6, %v1901_v35, %v385_v27  ;;  %v434_v42 = vadd.f32 %v1800_v22, %v414_v63  ;;  %vm376_vm8 = vweird.f32 %v1893_v46 }
 0x132   :  { %v423_v51 = vmul.f32 %v1766_v29, %v403_v40  ;;  %v435_v8 = vadd.f32 %v1800_v22, %v415_v57  ;;  %v405_v10 = vmul.f32 %v389_v60, %v1598_v1  ;;  %v442_v16 = vadd.f32 %v1800_v22, %v422_v61  ;;  %vm378_vm9 = vmor %vm376_vm8, %vm377_vm7 }
 0x133   :  { %v374_v43 = vsub.f32 1.5, %v373_v47  ;;  %v156_v18 = vmul.f32 %v1645_v39, %v1645_v39  ;;  %v157_v37 = vmul.f32 %v1702_v50, %v1702_v50  ;;  %v567_v55 = vlaneseq }
 0x134   :  { %v443_v62 = vadd.f32 %v1800_v22, %v423_v51  ;;  %v448_v25 = vpack.c.bf16 %v435_v8, %v434_v42  ;;  %v425_v15 = vmul.f32 %v1766_v29, %v405_v10 }
 0x135   :  { %v375_v0 = vmul.f32 %v1336_v41, %v374_v43  ;;  %v172_v14 = vmul.f32 120.0, %v156_v18  ;;  %v173_v19 = vmul.f32 120.0, %v157_v37  ;;  %v2000_v58 = vand.u32 127, %v567_v55 }
 0x136   :  { %v452_v34 = vpack.c.bf16 %v443_v62, %v442_v16  ;;  %v445_v1 = vadd.f32 %v1800_v22, %v425_v15 }
 0x137   :  { %v379_v35 = vsel %vm378_vm9, %v1336_v41, %v375_v0  ;;  %531 = vmatmul.bf16.gmra.mxu0 %v447_v56  ;;  %vm569_vm0 = vcmp.lt.s32.totalorder %v2000_v58, 16 }
 0x138   :  { %v404_v5 = vmul.f32 %v379_v35, %v1608_v6 }
 0x13a   :  { %v424_v53 = vmul.f32 %v1766_v29, %v404_v5 }
 0x13c   :  { %v444_v46 = vadd.f32 %v1800_v22, %v424_v53 }
 0x13d   :  { %556 = vmatmul.bf16.gmra.mxu2 %v452_v34 }
 0x13e   :  { %v453_v28 = vpack.c.bf16 %v445_v1, %v444_v46 }
 0x147   :  { %536 = vmatmul.bf16.gmra.mxu0 %v448_v25 }
 0x14d   :  { %561 = vmatmul.bf16.gmra.mxu2 %v453_v28 }
 0x171   :  { %v131_v12 = vpop.xlane.xlu0 %130 }
 0x172   :  { %v188_v17 = vsub.f32 %v131_v12, %v172_v14 }
 0x174   :  { %v204_v32 = vmul.f32 0.125, %v188_v17 }
 0x176   :  { %v220_v6 = vadd.f32 1e-05, %v204_v32 }
 0x178   :  { %1337 = vrsqrt.f32 %v220_v6  ;;  %vm296_vm11 = vweird.f32 %v220_v6 }
 0x17e   :  { %v1338_v7 = vpop.eup %1337 }
 0x17f   :  { %v291_v4 = vmul.f32 %v1338_v7, %v220_v6  ;;  %vm297_vm10 = vweird.f32 %v1338_v7 }
 0x180   :  { %vm298_vm12 = vmor %vm296_vm11, %vm297_vm10 }
 0x181   :  { %v133_v11 = vpop.xlane.xlu1 %132  ;;  %v292_v45 = vmul.f32 %v1338_v7, %v291_v4 }
 0x182   :  { %v189_v33 = vsub.f32 %v133_v11, %v173_v19 }
 0x183   :  { %v293_v36 = vmul.f32 0.5, %v292_v45 }
 0x184   :  { %v205_v3 = vmul.f32 0.125, %v189_v33 }
 0x185   :  { %v294_v39 = vsub.f32 1.5, %v293_v36 }
 0x186   :  { %v221_v31 = vadd.f32 1e-05, %v205_v3 }
 0x187   :  { %v295_v41 = vmul.f32 %v1338_v7, %v294_v39 }
 0x188   :  { %1339 = vrsqrt.f32 %v221_v31  ;;  %vm306_vm14 = vweird.f32 %v221_v31 }
 0x189   :  { %v299_v50 = vsel %vm298_vm12, %v1338_v7, %v295_v41 }
 0x18a   :  { %v396_v23 = vmul.f32 %v299_v50, %v1653_v48 }
 0x18c   :  { %v416_v27 = vmul.f32 %v1766_v29, %v396_v23 }
 0x18e   :  { %v1340_v26 = vpop.eup %1339  ;;  %v436_v30 = vadd.f32 %v1800_v22, %v416_v27 }
 0x18f   :  { %v301_v52 = vmul.f32 %v1340_v26, %v221_v31  ;;  %vm307_vm13 = vweird.f32 %v1340_v26 }
 0x190   :  { %vm308_vm15 = vmor %vm306_vm14, %vm307_vm13 }
 0x191   :  { %v302_v49 = vmul.f32 %v1340_v26, %v301_v52 }
 0x193   :  { %v303_v38 = vmul.f32 0.5, %v302_v49 }
 0x195   :  { %v304_v13 = vsub.f32 1.5, %v303_v38 }
 0x197   :  { %v305_v44 = vmul.f32 %v1340_v26, %v304_v13 }
 0x199   :  { %v309_v21 = vsel %vm308_vm15, %v1340_v26, %v305_v44 }
 0x19a   :  { %v397_v9 = vmul.f32 %v309_v21, %v1709_v2 }
 0x19c   :  { %v417_v20 = vmul.f32 %v1766_v29, %v397_v9 }
 0x19e   :  { %v437_v24 = vadd.f32 %v1800_v22, %v417_v20 }
 0x1a0   :  { %v449_v59 = vpack.c.bf16 %v437_v24, %v436_v30  ;;  %v547_v48 = vpop.f32.mrf.mxu2 }
 0x1a1   :  { %v2007_v54 = vsel %vm569_vm0, %v547_v48, -1e+30 }
 0x1a2   :  { %541 = vmatmul.bf16.gmra.mxu0 %v449_v59  ;;  %602 = vmax.xlane.f32.xlu2 %v2007_v54 }
 0x1a4   :  { %v527_v2 = vpop.f32.mrf.mxu0 }
 0x1a5   :  { %v2012_v29 = vsel %vm569_vm0, %v527_v2, -1e+30 }
 0x1a6   :  { %586 = vmax.xlane.f32.xlu1 %v2012_v29 }
 0x1a8   :  { %v549_v61 = vpop.f32.mrf.mxu2 }
 0x1a9   :  { %v2017_v22 = vsel %vm569_vm0, %v549_v61, -1e+30 }
 0x1aa   :  { %604 = vmax.xlane.f32.xlu0 %v2017_v22 }
 0x1ac   :  { %v529_v47 = vpop.f32.mrf.mxu0 }
 0x1ad   :  { %v2022_v40 = vsel %vm569_vm0, %v529_v47, -1e+30 }
 0x1ae   :  { %588 = vmax.xlane.f32.xlu2 %v2022_v40 }
 0x1b0   :  { %v552_v63 = vpop.f32.mrf.mxu2 }
 0x1b1   :  { %v2027_v57 = vsel %vm569_vm0, %v552_v63, -1e+30 }
 0x1b2   :  { %606 = vmax.xlane.f32.xlu0 %v2027_v57 }
 0x1b4   :  { %v532_v56 = vpop.f32.mrf.mxu0 }
 0x1b5   :  { %v2032_v60 = vsel %vm569_vm0, %v532_v56, -1e+30 }
 0x1b6   :  { %590 = vmax.xlane.f32.xlu2 %v2032_v60 }
 0x1b8   :  { %v554_v43 = vpop.f32.mrf.mxu2 }
 0x1b9   :  { %v2037_v51 = vsel %vm569_vm0, %v554_v43, -1e+30 }
 0x1ba   :  { %608 = vmax.xlane.f32.xlu1 %v2037_v51 }
 0x1bc   :  { %v534_v42 = vpop.f32.mrf.mxu0 }
 0x1bd   :  { %v2042_v8 = vsel %vm569_vm0, %v534_v42, -1e+30 }
 0x1be   :  { %592 = vmax.xlane.f32.xlu0 %v2042_v8 }
 0x1c0   :  { %v557_v10 = vpop.f32.mrf.mxu2 }
 0x1c1   :  { %v2047_v0 = vsel %vm569_vm0, %v557_v10, -1e+30 }
 0x1c2   :  { %610 = vmax.xlane.f32.xlu1 %v2047_v0 }
 0x1c4   :  { %v537_v16 = vpop.f32.mrf.mxu0 }
 0x1c5   :  { %v2052_v62 = vsel %vm569_vm0, %v537_v16, -1e+30 }
 0x1c6   :  { %594 = vmax.xlane.f32.xlu0 %v2052_v62 }
 0x1c8   :  { %v559_v25 = vpop.f32.mrf.mxu2 }
 0x1c9   :  { %v2057_v34 = vsel %vm569_vm0, %v559_v25, -1e+30 }
 0x1ca   :  { %612 = vmax.xlane.f32.xlu2 %v2057_v34 }
 0x1cc   :  { %v539_v35 = vpop.f32.mrf.mxu0 }
 0x1cd   :  { %v2062_v5 = vsel %vm569_vm0, %v539_v35, -1e+30 }
 0x1ce   :  { %596 = vmax.xlane.f32.xlu1 %v2062_v5 }
 0x1d0   :  { %v562_v15 = vpop.f32.mrf.mxu2 }
 0x1d1   :  { %v2067_v53 = vsel %vm569_vm0, %v562_v15, -1e+30 }
 0x1d2   :  { %614 = vmax.xlane.f32.xlu2 %v2067_v53 }
 0x1d8   :  { %v564_v46 = vpop.f32.mrf.mxu2 }
 0x1d9   :  { %v2072_v1 = vsel %vm569_vm0, %v564_v46, -1e+30 }
 0x1da   :  { %616 = vmax.xlane.f32.xlu0 %v2072_v1 }
 0x215   :  { %v2075_v28 = vpop.xlane.xlu2 %602 }
 0x216   :  { %v626_v18 = vsub.f32 %v2007_v54, %v2075_v28  ;;  %vm738_vm9 = vcmp.ge.f32.partialorder %v2007_v54, %v2075_v28 }
 0x218   :  { %v650_v14 = vmul.f32 1.442695, %v626_v18 }
 0x219   :  { %v2085_v6 = vpop.xlane.xlu1 %586 }
 0x21a   :  { %1341 = vpow2.f32 %v650_v14  ;;  %v618_v33 = vsub.f32 %v2012_v29, %v2085_v6  ;;  %vm730_vm1 = vcmp.ge.f32.partialorder %v2012_v29, %v2085_v6 }
 0x21c   :  { %v634_v31 = vmul.f32 1.442695, %v618_v33 }
 0x21d   :  { %v2079_v17 = vpop.xlane.xlu0 %604 }
 0x21e   :  { %v627_v37 = vsub.f32 %v2017_v22, %v2079_v17  ;;  %vm739_vm14 = vcmp.ge.f32.partialorder %v2017_v22, %v2079_v17 }
 0x21f   :  { %v542_v12 = vpop.f32.mrf.mxu0 }
 0x220   :  { %v2083_v32 = vsel %vm569_vm0, %v542_v12, -1e+30  ;;  %v2092_v4 = vpop.eup %1341  ;;  %v652_v19 = vmul.f32 1.442695, %v627_v37 }
 0x221   :  { %598 = vmax.xlane.f32.xlu0 %v2083_v32  ;;  %v2090_v7 = vpop.xlane.xlu2 %588  ;;  %682 = vadd.xlane.f32.xlu1 %v2092_v4 }
 0x222   :  { %v619_v11 = vsub.f32 %v2022_v40, %v2090_v7  ;;  %1343 = vpow2.f32 %v652_v19  ;;  %vm731_vm7 = vcmp.ge.f32.partialorder %v2022_v40, %v2090_v7 }
 0x224   :  { %v636_v45 = vmul.f32 1.442695, %v619_v11  ;;  %v1243_v11 = vld [vmem:[%s2561_s2 + $0x38] sm:$0xff] }
 0x225   :  { %v2099_v36 = vpop.xlane.xlu0 %606  ;;  %1299 = vmatpush.bf16.msra.mxu3 %v1243_v11  ;;  %1075 = vmatpush.bf16.msra.mxu1 %v1243_v11 }
 0x226   :  { %1345 = vpow2.f32 %v636_v45  ;;  %v628_v39 = vsub.f32 %v2027_v57, %v2099_v36  ;;  %v1242_v45 = vld [vmem:[%s2561_s2 + $0x30] sm:$0xff]  ;;  %vm740_vm5 = vcmp.ge.f32.partialorder %v2027_v57, %v2099_v36 }
 0x227   :  { %v544_v3 = vpop.f32.mrf.mxu0  ;;  %1347 = vpow2.f32 %v634_v31 }
 0x228   :  { %v2105_v26 = vsel %vm569_vm0, %v544_v3, -1e+30  ;;  %v2109_v52 = vpop.eup %1343  ;;  %v654_v49 = vmul.f32 1.442695, %v628_v39  ;;  %v1241_v39 = vld [vmem:[%s2561_s2 + $0x28] sm:$0xff] }
 0x229   :  { %v2107_v41 = vpop.xlane.xlu2 %590  ;;  %684 = vadd.xlane.f32.xlu2 %v2109_v52  ;;  %600 = vmax.xlane.f32.xlu1 %v2105_v26 }
 0x22a   :  { %v620_v38 = vsub.f32 %v2032_v60, %v2107_v41  ;;  %1349 = vpow2.f32 %v654_v49  ;;  %1300 = vmatpush.bf16.msra.mxu3 %v1242_v45  ;;  %1076 = vmatpush.bf16.msra.mxu1 %v1242_v45  ;;  %vm732_vm3 = vcmp.ge.f32.partialorder %v2032_v60, %v2107_v41 }
 0x22c   :  { %v2115_v50 = vpop.eup %1345  ;;  %v638_v13 = vmul.f32 1.442695, %v620_v38 }
 0x22d   :  { %668 = vadd.xlane.f32.xlu0 %v2115_v50  ;;  %v2118_v23 = vpop.xlane.xlu1 %608  ;;  %v2122_v55 = vpop.eup %1347 }
 0x22e   :  { %1351 = vpow2.f32 %v638_v13  ;;  %v629_v44 = vsub.f32 %v2037_v51, %v2118_v23  ;;  %1301 = vmatpush.bf16.msra.mxu3 %v1241_v39  ;;  %1077 = vmatpush.bf16.msra.mxu1 %v1241_v39  ;;  %vm741_vm11 = vcmp.ge.f32.partialorder %v2037_v51, %v2118_v23 }
 0x230   :  { %v2126_v9 = vpop.eup %1349  ;;  %v656_v27 = vmul.f32 1.442695, %v629_v44  ;;  %v2191_v44 = vsel %vm730_vm1, %v2000_v58, 128 }
 0x231   :  { %v2124_v21 = vpop.xlane.xlu0 %592  ;;  %666 = vadd.xlane.f32.xlu2 %v2122_v55  ;;  %686 = vadd.xlane.f32.xlu1 %v2126_v9 }
 0x232   :  { %v621_v20 = vsub.f32 %v2042_v8, %v2124_v21  ;;  %1353 = vpow2.f32 %v656_v27  ;;  %v763_v27 = vshra.s32 %v2191_v44, 16  ;;  %vm733_vm10 = vcmp.ge.f32.partialorder %v2042_v8, %v2124_v21 }
 0x234   :  { %v2132_v30 = vpop.eup %1351  ;;  %v640_v24 = vmul.f32 1.442695, %v621_v20  ;;  %v2196_v20 = vcvt.s32.f32 %v763_v27 }
 0x235   :  { %670 = vadd.xlane.f32.xlu0 %v2132_v30  ;;  %v2135_v59 = vpop.xlane.xlu1 %610 }
 0x236   :  { %1355 = vpow2.f32 %v640_v24  ;;  %v630_v48 = vsub.f32 %v2047_v0, %v2135_v59  ;;  %vm742_vm15 = vcmp.ge.f32.partialorder %v2047_v0, %v2135_v59 }
 0x238   :  { %v2139_v61 = vpop.eup %1353  ;;  %v658_v47 = vmul.f32 1.442695, %v630_v48  ;;  %v1240_v48 = vld [vmem:[%s2561_s2 + $0x20] sm:$0xff] }
 0x239   :  { %v595_v2 = vpop.xlane.xlu0 %594  ;;  %688 = vadd.xlane.f32.xlu2 %v2139_v61  ;;  %1302 = vmatpush.bf16.msra.mxu3 %v1240_v48 }
 0x23a   :  { %v622_v63 = vsub.f32 %v2052_v62, %v595_v2  ;;  %1357 = vpow2.f32 %v658_v47  ;;  %vm734_vm2 = vcmp.ge.f32.partialorder %v2052_v62, %v595_v2  ;;  %v1239_v62 = vld [vmem:[%s2561_s2 + $0x18] sm:$0xff]  ;;  %1078 = vmatpush.bf16.msra.mxu1 %v1240_v48  ;;  %v1238_v2 = vld [vmem:[%s2561_s2 + $0x10] sm:$0xff]  ;;  %v1237_v47 = vld [vmem:[%s2561_s2 + $0x8] sm:$0xff] }
 0x23b   :  { %v2199_v24 = vsel %vm734_vm2, %v2000_v58, 128 }
 0x23c   :  { %v2143_v56 = vpop.eup %1355  ;;  %v642_v43 = vmul.f32 1.442695, %v622_v63  ;;  %v819_v29 = vshra.s32 %v2199_v24, 16  ;;  %v1236_v63 = vld [vmem:[%s2561_s2] sm:$0xff] }
 0x23d   :  { %672 = vadd.xlane.f32.xlu1 %v2143_v56  ;;  %v2146_v42 = vpop.xlane.xlu2 %612  ;;  %1303 = vmatpush.bf16.msra.mxu3 %v1239_v62 }
 0x23e   :  { %1359 = vpow2.f32 %v642_v43  ;;  %v631_v10 = vsub.f32 %v2057_v34, %v2146_v42  ;;  %v2203_v6 = vcvt.s32.f32 %v819_v29  ;;  %1079 = vmatpush.bf16.msra.mxu1 %v1239_v62  ;;  %v2247_v29 = vsel %vm740_vm5, %v2000_v58, 128 }
 0x23f   :  { %vm743_vm8 = vcmp.ge.f32.partialorder %v2057_v34, %v2146_v42  ;;  %v2282_v42 = vsel %vm738_vm9, %v2000_v58, 128 }
 0x240   :  { %v2152_v25 = vpop.eup %1357  ;;  %v660_v35 = vmul.f32 1.442695, %v631_v10 }
 0x241   :  { %v2150_v16 = vpop.xlane.xlu1 %596  ;;  %690 = vadd.xlane.f32.xlu2 %v2152_v25  ;;  %1304 = vmatpush.bf16.msra.mxu3 %v1238_v2 }
 0x242   :  { %v623_v15 = vsub.f32 %v2062_v5, %v2150_v16  ;;  %1361 = vpow2.f32 %v660_v35  ;;  %1080 = vmatpush.bf16.msra.mxu1 %v1238_v2  ;;  %vm735_vm6 = vcmp.ge.f32.partialorder %v2062_v5, %v2150_v16 }
 0x243   :  { %v2255_v36 = vsel %vm735_vm6, %v2000_v58, 128 }
 0x244   :  { %v2157_v46 = vpop.eup %1359  ;;  %v644_v18 = vmul.f32 1.442695, %v623_v15  ;;  %v833_v40 = vshra.s32 %v2255_v36, 16 }
 0x245   :  { %674 = vadd.xlane.f32.xlu1 %v2157_v46  ;;  %v2160_v14 = vpop.xlane.xlu2 %614  ;;  %1305 = vmatpush.bf16.msra.mxu3 %v1237_v47 }
 0x246   :  { %1363 = vpow2.f32 %v644_v18  ;;  %v632_v12 = vsub.f32 %v2067_v53, %v2160_v14  ;;  %1081 = vmatpush.bf16.msra.mxu1 %v1237_v47  ;;  %v903_v47 = vshra.s32 %v2247_v29, 16  ;;  %v2279_v34 = vcvt.s32.f32 %v833_v40 }
 0x247   :  { %vm744_vm13 = vcmp.ge.f32.partialorder %v2067_v53, %v2160_v14 }
 0x248   :  { %v2164_v37 = vpop.eup %1361  ;;  %v662_v19 = vmul.f32 1.442695, %v632_v12  ;;  %v2230_v12 = vsel %vm732_vm3, %v2000_v58, 128 }
 0x249   :  { %692 = vadd.xlane.f32.xlu0 %v2164_v37  ;;  %1306 = vmatpush.bf16.msra.mxu3 %v1236_v63  ;;  %v791_v39 = vshra.s32 %v2230_v12, 16 }
 0x24a   :  { %1365 = vpow2.f32 %v662_v19  ;;  %1082 = vmatpush.bf16.msra.mxu1 %v1236_v63 }
 0x24b   :  { %v2250_v57 = vcvt.s32.f32 %v791_v39 }
 0x24c   :  { %v2170_v33 = vpop.eup %1363 }
 0x24d   :  { %676 = vadd.xlane.f32.xlu2 %v2170_v33  ;;  %v2176_v3 = vpop.xlane.xlu0 %616 }
 0x24e   :  { %v633_v31 = vsub.f32 %v2072_v1, %v2176_v3  ;;  %vm745_vm0 = vcmp.ge.f32.partialorder %v2072_v1, %v2176_v3 }
 0x250   :  { %v2183_v49 = vpop.eup %1365  ;;  %v664_v38 = vmul.f32 1.442695, %v633_v31 }
 0x251   :  { %694 = vadd.xlane.f32.xlu0 %v2183_v49 }
 0x252   :  { %1367 = vpow2.f32 %v664_v38 }
 0x258   :  { %v2188_v13 = vpop.eup %1367 }
 0x259   :  { %696 = vadd.xlane.f32.xlu1 %v2188_v13 }
 0x261   :  { %766 = vmin.xlane.f32.xlu1 %v2196_v20 }
 0x269   :  { %822 = vmin.xlane.f32.xlu1 %v2203_v6 }
 0x294   :  { %v2221_v43 = vpop.xlane.xlu0 %598  ;;  %v683_v35 = vpop.xlane.xlu1 %682 }
 0x295   :  { %v624_v10 = vsub.f32 %v2083_v32, %v2221_v43  ;;  %vm736_vm12 = vcmp.ge.f32.partialorder %v2083_v32, %v2221_v43 }
 0x296   :  { %v2316_v40 = vsel %vm736_vm12, %v2000_v58, 128 }
 0x297   :  { %v646_v15 = vmul.f32 1.442695, %v624_v10 }
 0x299   :  { %1369 = vpow2.f32 %v646_v15 }
 0x29a   :  { %1371 = vrcp.f32 %v683_v35  ;;  %v2264_v35 = vsel %vm731_vm7, %v2000_v58, 128 }
 0x29b   :  { %v777_v15 = vshra.s32 %v2264_v35, 16 }
 0x29c   :  { %v685_v19 = vpop.xlane.xlu2 %684  ;;  %v601_v11 = vpop.xlane.xlu1 %600 }
 0x29d   :  { %1373 = vrcp.f32 %v685_v19  ;;  %v625_v45 = vsub.f32 %v2105_v26, %v601_v11  ;;  %vm737_vm4 = vcmp.ge.f32.partialorder %v2105_v26, %v601_v11  ;;  %v2290_v39 = vcvt.s32.f32 %v777_v15 }
 0x29e   :  { %v2236_v31 = vsel %vm737_vm4, %v2000_v58, 128  ;;  %v2329_v15 = vsel %vm744_vm13, %v2000_v58, 128 }
 0x29f   :  { %v2227_v18 = vpop.eup %1369  ;;  %v648_v60 = vmul.f32 1.442695, %v625_v45  ;;  %v861_v41 = vshra.s32 %v2236_v31, 16 }
 0x2a0   :  { %678 = vadd.xlane.f32.xlu2 %v2227_v18  ;;  %v669_v38 = vpop.xlane.xlu0 %668  ;;  %v1372_v27 = vpop.eup %1371 }
 0x2a1   :  { %1375 = vpow2.f32 %v648_v60  ;;  %v2244_v26 = vcvt.s32.f32 %v861_v41  ;;  %v722_v5 = vmul.f32 %v1372_v27, %v2092_v4  ;;  %v2272_v4 = vcvt.s32.f32 %v903_v47 }
 0x2a2   :  { %1377 = vrcp.f32 %v669_v38  ;;  %v2293_v38 = vsel %vm733_vm10, %v2000_v58, 128  ;;  %v875_v27 = vshra.s32 %v2282_v42, 16 }
 0x2a3   :  { %v1374_v48 = vpop.eup %1373  ;;  %864 = vmin.xlane.f32.xlu1 %v2244_v26  ;;  %v805_v21 = vshra.s32 %v2293_v38, 16 }
 0x2a4   :  { %v667_v62 = vpop.xlane.xlu2 %666  ;;  %v723_v16 = vmul.f32 %v1374_v48, %v2109_v52  ;;  %v687_v2 = vpop.xlane.xlu1 %686  ;;  %v2275_v52 = vsel %vm743_vm8, %v2000_v58, 128 }
 0x2a5   :  { %1379 = vrcp.f32 %v667_v62  ;;  %v945_v45 = vshra.s32 %v2275_v52, 16  ;;  %v2303_v62 = vcvt.s32.f32 %v875_v27  ;;  %v2313_v47 = vcvt.s32.f32 %v805_v21 }
 0x2a6   :  { %v1007_v63 = vpack.c.bf16 %v723_v16, %v722_v5  ;;  %1381 = vrcp.f32 %v687_v2  ;;  %v2306_v5 = vsel %vm741_vm11, %v2000_v58, 128 }
 0x2a7   :  { %v2261_v10 = vpop.eup %1375 }
 0x2a8   :  { %794 = vmin.xlane.f32.xlu2 %v2250_v57  ;;  %1103 = vmatmul.bf16.vlgmr.msra.gmra.mxu3 %v1007_v63  ;;  %v1378_v7 = vpop.eup %1377  ;;  %v671_v8 = vpop.xlane.xlu0 %670 }
 0x2a9   :  { %680 = vadd.xlane.f32.xlu0 %v2261_v10  ;;  %v715_v11 = vmul.f32 %v1378_v7, %v2115_v50  ;;  %v2299_v50 = vcvt.s32.f32 %v945_v45  ;;  %v917_v7 = vshra.s32 %v2306_v5, 16 }
 0x2ab   :  { %v1380_v19 = vpop.eup %1379  ;;  %906 = vmin.xlane.f32.xlu1 %v2272_v4  ;;  %v2324_v43 = vcvt.s32.f32 %v917_v7 }
 0x2ac   :  { %v689_v54 = vpop.xlane.xlu2 %688  ;;  %v714_v28 = vmul.f32 %v1380_v19, %v2122_v55  ;;  %v1382_v55 = vpop.eup %1381 }
 0x2ad   :  { %1383 = vrcp.f32 %v689_v54  ;;  %v724_v16 = vmul.f32 %v1382_v55, %v2126_v9 }
 0x2ae   :  { %v1003_v60 = vpack.c.bf16 %v715_v11, %v714_v28  ;;  %v2336_v28 = vsel %vm739_vm14, %v2000_v58, 128  ;;  %v959_v11 = vshra.s32 %v2329_v15, 16  ;;  %vm986_vm14 = vcmask 7168  }
 0x2af   :  { %v889_v17 = vshra.s32 %v2336_v28, 16 }
 0x2b0   :  { %836 = vmin.xlane.f32.xlu2 %v2279_v34  ;;  %v673_v41 = vpop.xlane.xlu1 %672  ;;  %1083 = vmatmul.bf16.vlgmr.msra.gmra.mxu1 %v1003_v60  ;;  %v2341_v60 = vcvt.s32.f32 %v959_v11 }
 0x2b1   :  { %780 = vmin.xlane.f32.xlu0 %v2290_v39  ;;  %1385 = vrcp.f32 %v673_v41  ;;  %v2348_v55 = vcvt.s32.f32 %v889_v17 }
 0x2b2   :  { %1387 = vrcp.f32 %v671_v8 }
 0x2b3   :  { %v1384_v48 = vpop.eup %1383  ;;  %948 = vmin.xlane.f32.xlu1 %v2299_v50 }
 0x2b4   :  { %v725_v51 = vmul.f32 %v1384_v48, %v2139_v61  ;;  %v691_v23 = vpop.xlane.xlu2 %690  ;;  %v847_v61 = vshra.s32 %v2316_v40, 16  ;;  %v2351_v48 = vsel %vm742_vm15, %v2000_v58, 128 }
 0x2b5   :  { %1389 = vrcp.f32 %v691_v23  ;;  %v931_v59 = vshra.s32 %v2351_v48, 16 }
 0x2b6   :  { %v1008_v2 = vpack.c.bf16 %v725_v51, %v724_v16 }
 0x2b7   :  { %v1386_v63 = vpop.eup %1385 }
 0x2b8   :  { %878 = vmin.xlane.f32.xlu2 %v2303_v62  ;;  %1108 = vmatmul.bf16.gmra.mxu3 %v1008_v2  ;;  %v1388_v32 = vpop.eup %1387  ;;  %v717_v9 = vmul.f32 %v1386_v63, %v2143_v56  ;;  %v2333_v56 = vcvt.s32.f32 %v847_v61  ;;  %v675_v45 = vpop.xlane.xlu1 %674  ;;  %v2359_v2 = vcvt.s32.f32 %v931_v59  ;;  %v2362_v63 = vsel %vm745_vm0, %v2000_v58, 128 }
 0x2b9   :  { %808 = vmin.xlane.f32.xlu0 %v2313_v47  ;;  %v716_v54 = vmul.f32 %v1388_v32, %v2132_v30  ;;  %v973_v32 = vshra.s32 %v2362_v63, 16 }
 0x2bb   :  { %v1004_v14 = vpack.c.bf16 %v717_v9, %v716_v54  ;;  %v1390_v22 = vpop.eup %1389  ;;  %v2373_v54 = vcvt.s32.f32 %v973_v32  ;;  %v944_v32 = vand.u32 65535, %v2275_v52  ;;  %v888_v52 = vand.u32 65535, %v2336_v28 }
 0x2bc   :  { %v693_v19 = vpop.xlane.xlu0 %692  ;;  %v726_v41 = vmul.f32 %v1390_v22, %v2152_v25 }
 0x2bd   :  { %1391 = vrcp.f32 %v693_v19 }
 0x2c0   :  { %920 = vmin.xlane.f32.xlu2 %v2324_v43  ;;  %v677_v53 = vpop.xlane.xlu2 %676  ;;  %1088 = vmatmul.bf16.gmra.mxu1 %v1004_v14 }
 0x2c1   :  { %850 = vmin.xlane.f32.xlu0 %v2333_v56  ;;  %1393 = vrcp.f32 %v677_v53 }
 0x2c2   :  { %1395 = vrcp.f32 %v675_v45 }
 0x2c3   :  { %v1392_v30 = vpop.eup %1391 }
 0x2c4   :  { %v727_v27 = vmul.f32 %v1392_v30, %v2164_v37  ;;  %v695_v16 = vpop.xlane.xlu0 %694 }
 0x2c5   :  { %1397 = vrcp.f32 %v695_v16  ;;  %v874_v16 = vand.u32 65535, %v2282_v42  ;;  %v776_v42 = vand.u32 65535, %v2264_v35 }
 0x2c6   :  { %v1009_v8 = vpack.c.bf16 %v727_v27, %v726_v41  ;;  %v818_v27 = vand.u32 65535, %v2199_v24 }
 0x2c7   :  { %v1394_v21 = vpop.eup %1393 }
 0x2c8   :  { %962 = vmin.xlane.f32.xlu2 %v2341_v60  ;;  %1113 = vmatmul.bf16.gmra.mxu3 %v1009_v8  ;;  %v1396_v51 = vpop.eup %1395  ;;  %v719_v0 = vmul.f32 %v1394_v21, %v2170_v33  ;;  %v762_v33 = vand.u32 65535, %v2191_v44 }
 0x2c9   :  { %892 = vmin.xlane.f32.xlu0 %v2348_v55  ;;  %v718_v37 = vmul.f32 %v1396_v51, %v2157_v46 }
 0x2ca   :  { %v764_v3 = vcvt.s32.f32 %v762_v33 }
 0x2cb   :  { %v1005_v23 = vpack.c.bf16 %v719_v0, %v718_v37  ;;  %v1398_v7 = vpop.eup %1397 }
 0x2cc   :  { %v697_v25 = vpop.xlane.xlu1 %696  ;;  %v728_v46 = vmul.f32 %v1398_v7, %v2183_v49  ;;  %v902_v49 = vand.u32 65535, %v2247_v29  ;;  %v778_v7 = vcvt.s32.f32 %v776_v42 }
 0x2cd   :  { %1399 = vrcp.f32 %v697_v25  ;;  %v876_v25 = vcvt.s32.f32 %v874_v16 }
 0x2ce   :  { %v904_v45 = vcvt.s32.f32 %v902_v49 }
 0x2d0   :  { %1093 = vmatmul.bf16.gmra.mxu1 %v1005_v23 }
 0x2d1   :  { %934 = vmin.xlane.f32.xlu0 %v2359_v2 }
 0x2d3   :  { %v1400_v9 = vpop.eup %1399 }
 0x2d4   :  { %v2367_v1 = vpop.xlane.xlu1 %766  ;;  %v729_v61 = vmul.f32 %v1400_v9, %v2188_v13 }
 0x2d5   :  { %vm768_vm1 = vcmp.eq.f32.partialorder %v2196_v20, %v2367_v1 }
 0x2d6   :  { %v769_v58 = vsel %vm768_vm1, %v764_v3, inf  ;;  %v1010_v19 = vpack.c.bf16 %v729_v61, %v728_v46  ;;  %v790_v46 = vand.u32 65535, %v2230_v12  ;;  %v946_v61 = vcvt.s32.f32 %v944_v32 }
 0x2d7   :  { %770 = vmin.xlane.f32.xlu2 %v769_v58 }
 0x2d8   :  { %1118 = vmatmul.bf16.gmra.mxu3 %v1010_v19  ;;  %v792_v19 = vcvt.s32.f32 %v790_v46 }
 0x2d9   :  { %976 = vmin.xlane.f32.xlu0 %v2373_v54 }
 0x2dc   :  { %v2376_v44 = vpop.xlane.xlu1 %822 }
 0x2dd   :  { %vm824_vm3 = vcmp.eq.f32.partialorder %v2203_v6, %v2376_v44 }
 0x313   :  { %v679_v53 = vpop.xlane.xlu2 %678 }
 0x314   :  { %1401 = vrcp.f32 %v679_v53 }
 0x316   :  { %v2378_v14 = vpop.xlane.xlu1 %864 }
 0x317   :  { %vm866_vm5 = vcmp.eq.f32.partialorder %v2244_v26, %v2378_v14 }
 0x31a   :  { %v1402_v22 = vpop.eup %1401 }
 0x31b   :  { %v2380_v11 = vpop.xlane.xlu2 %794  ;;  %v720_v29 = vmul.f32 %v1402_v22, %v2227_v18  ;;  %v860_v18 = vand.u32 65535, %v2236_v31  ;;  %v804_v22 = vand.u32 65535, %v2293_v38 }
 0x31c   :  { %v681_v13 = vpop.xlane.xlu0 %680  ;;  %vm796_vm8 = vcmp.eq.f32.partialorder %v2250_v57, %v2380_v11  ;;  %v916_v57 = vand.u32 65535, %v2306_v5  ;;  %v832_v5 = vand.u32 65535, %v2255_v36 }
 0x31d   :  { %1403 = vrcp.f32 %v681_v13  ;;  %v862_v23 = vcvt.s32.f32 %v860_v18  ;;  %v890_v13 = vcvt.s32.f32 %v888_v52 }
 0x31e   :  { %v2383_v20 = vpop.xlane.xlu1 %906  ;;  %v834_v36 = vcvt.s32.f32 %v832_v5 }
 0x31f   :  { %vm908_vm2 = vcmp.eq.f32.partialorder %v2272_v4, %v2383_v20  ;;  %v820_v4 = vcvt.s32.f32 %v818_v27  ;;  %v867_v33 = vsel %vm866_vm5, %v862_v23, inf  ;;  %v913_v52 = vcvt.f32.s32 %v2383_v20 }
 0x320   :  { %v909_v17 = vsel %vm908_vm2, %v904_v45, inf }
 0x321   :  { %910 = vmin.xlane.f32.xlu0 %v909_v17  ;;  %v825_v0 = vsel %vm824_vm3, %v820_v4, inf  ;;  %v918_v17 = vcvt.s32.f32 %v916_v57 }
 0x323   :  { %v2387_v30 = vpop.xlane.xlu2 %836  ;;  %v1404_v41 = vpop.eup %1403 }
 0x324   :  { %v2390_v8 = vpop.xlane.xlu0 %780  ;;  %v721_v21 = vmul.f32 %v1404_v41, %v2261_v10  ;;  %vm838_vm12 = vcmp.eq.f32.partialorder %v2279_v34, %v2387_v30  ;;  %v958_v34 = vand.u32 65535, %v2329_v15 }
 0x325   :  { %vm782_vm6 = vcmp.eq.f32.partialorder %v2290_v39, %v2390_v8 }
 0x326   :  { %v1006_v51 = vpack.c.bf16 %v721_v21, %v720_v29  ;;  %v783_v31 = vsel %vm782_vm6, %v778_v7, inf  ;;  %v960_v23 = vcvt.s32.f32 %v958_v34 }
 0x328   :  { %1098 = vmatmul.bf16.gmra.mxu1 %v1006_v51 }
 0x329   :  { %826 = vmin.xlane.f32.xlu0 %v825_v0 }
 0x32b   :  { %v2397_v59 = vpop.xlane.xlu2 %878  ;;  %v1104_v10 = vpop.f32.mrf.mxu3 }
 0x32c   :  { %vm880_vm4 = vcmp.eq.f32.partialorder %v2303_v62, %v2397_v59  ;;  %v2402_v37 = vpop.xlane.xlu0 %808  ;;  %v2409_v62 = vpop.xlane.xlu1 %948 }
 0x32d   :  { %v881_v24 = vsel %vm880_vm4, %v876_v25, inf  ;;  %v1084_v6 = vpop.f32.mrf.mxu1  ;;  %vm950_vm7 = vcmp.eq.f32.partialorder %v2299_v50, %v2409_v62  ;;  %v797_v50 = vsel %vm796_vm8, %v792_v19, inf  ;;  %vm810_vm11 = vcmp.eq.f32.partialorder %v2313_v47, %v2402_v37 }
 0x32e   :  { %882 = vmin.xlane.f32.xlu1 %v881_v24  ;;  %v951_v58 = vsel %vm950_vm7, %v946_v61, inf  ;;  %v930_v47 = vand.u32 65535, %v2351_v48  ;;  %v839_v25 = vsel %vm838_vm12, %v834_v36, inf }
 0x331   :  { %868 = vmin.xlane.f32.xlu0 %v867_v33 }
 0x333   :  { %v1106_v9 = vpop.f32.mrf.mxu3  ;;  %v2426_v12 = vpop.xlane.xlu2 %920 }
 0x334   :  { %v2412_v3 = vpop.xlane.xlu0 %850  ;;  %v1267_v35 = vpack.c.bf16 %v1106_v9, %v1104_v10  ;;  %vm922_vm10 = vcmp.eq.f32.partialorder %v2324_v43, %v2426_v12  ;;  %v773_v43 = vcvt.f32.s32 %v2367_v1  ;;  %v932_v10 = vcvt.s32.f32 %v930_v47 }
 0x335   :  { %v1086_v26 = vpop.f32.mrf.mxu1  ;;  %v923_v27 = vsel %vm922_vm10, %v918_v17, inf  ;;  %vm852_vm0 = vcmp.eq.f32.partialorder %v2333_v56, %v2412_v3  ;;  %v801_v47 = vcvt.f32.s32 %v2380_v11 }
 0x336   :  { %784 = vmin.xlane.f32.xlu1 %v783_v31  ;;  %1287 = vst [vmem:[%s2562_s5 + $0x20] sm:$0xff] %v1267_v35   ;;  %v1247_v39 = vpack.c.bf16 %v1086_v26, %v1084_v6  ;;  %v774_v24 = vshll.u32 %v773_v43, 16  ;;  %v955_v43 = vcvt.f32.s32 %v2409_v62 }
 0x338   :  { %1248 = vst [vmem:[%s2562_s5] sm:$0xff] %v1247_v39  }
 0x339   :  { %952 = vmin.xlane.f32.xlu0 %v951_v58  ;;  %v914_v58 = vshll.u32 %v913_v52, 16 }
 0x33b   :  { %v1109_v53 = vpop.f32.mrf.mxu3  ;;  %v2436_v41 = vpop.xlane.xlu2 %962 }
 0x33c   :  { %v2428_v49 = vpop.xlane.xlu0 %892  ;;  %vm964_vm15 = vcmp.eq.f32.partialorder %v2341_v60, %v2436_v41 }
 0x33d   :  { %vm894_vm9 = vcmp.eq.f32.partialorder %v2348_v55, %v2428_v49  ;;  %v1089_v28 = vpop.f32.mrf.mxu1  ;;  %v806_v55 = vcvt.s32.f32 %v804_v22  ;;  %v965_v33 = vsel %vm964_vm15, %v960_v23, inf  ;;  %v899_v62 = vcvt.f32.s32 %v2428_v49 }
 0x33e   :  { %798 = vmin.xlane.f32.xlu1 %v797_v50  ;;  %v895_v45 = vsel %vm894_vm9, %v890_v13, inf  ;;  %v927_v23 = vcvt.f32.s32 %v2426_v12 }
 0x33f   :  { %896 = vmin.xlane.f32.xlu2 %v895_v45  ;;  %v811_v51 = vsel %vm810_vm11, %v806_v55, inf }
 0x343   :  { %v1111_v29 = vpop.f32.mrf.mxu3 }
 0x344   :  { %v1272_v21 = vpack.c.bf16 %v1111_v29, %v1109_v53  ;;  %v2445_v4 = vpop.xlane.xlu0 %934  ;;  %v829_v53 = vcvt.f32.s32 %v2376_v44  ;;  %v787_v29 = vcvt.f32.s32 %v2390_v8 }
 0x345   :  { %v1091_v16 = vpop.f32.mrf.mxu1  ;;  %vm936_vm13 = vcmp.eq.f32.partialorder %v2359_v2, %v2445_v4  ;;  %v846_v2 = vand.u32 65535, %v2316_v40  ;;  %v972_v40 = vand.u32 65535, %v2362_v63 }
 0x346   :  { %924 = vmin.xlane.f32.xlu1 %v923_v27  ;;  %1288 = vst [vmem:[%s2562_s5 + $0x28] sm:$0xff] %v1272_v21   ;;  %v1252_v38 = vpack.c.bf16 %v1091_v16, %v1089_v28  ;;  %v937_v6 = vsel %vm936_vm13, %v932_v10, inf  ;;  %v830_v57 = vshll.u32 %v829_v53, 16  ;;  %v871_v27 = vcvt.f32.s32 %v2378_v14 }
 0x347   :  { %812 = vmin.xlane.f32.xlu2 %v811_v51  ;;  %v848_v7 = vcvt.s32.f32 %v846_v2  ;;  %v974_v46 = vcvt.s32.f32 %v972_v40  ;;  %v788_v51 = vshll.u32 %v787_v29, 16  ;;  %v802_v10 = vshll.u32 %v801_v47, 16 }
 0x348   :  { %1284 = vst [vmem:[%s2562_s5 + $0x8] sm:$0xff] %v1252_v38   ;;  %v872_v21 = vshll.u32 %v871_v27, 16  ;;  %v843_v40 = vcvt.f32.s32 %v2387_v30 }
 0x349   :  { %v853_v9 = vsel %vm852_vm0, %v848_v7, inf  ;;  %v928_v7 = vshll.u32 %v927_v23, 16 }
 0x34a   :  { %v771_v0 = vpop.xlane.xlu2 %770 }
 0x34b   :  { %v772_v18 = vcvt.f32.s32 %v771_v0  ;;  %v1114_v1 = vpop.f32.mrf.mxu3 }
 0x34c   :  { %v2468_v60 = vpop.xlane.xlu0 %976 }
 0x34d   :  { %v775_v42 = vadd.s32 %v774_v24, %v772_v18  ;;  %v1094_v48 = vpop.f32.mrf.mxu1  ;;  %vm978_vm1 = vcmp.eq.f32.partialorder %v2373_v54, %v2468_v60  ;;  %v885_v54 = vcvt.f32.s32 %v2397_v59 }
 0x34e   :  { %840 = vmin.xlane.f32.xlu1 %v839_v25  ;;  %v979_v26 = vsel %vm978_vm1, %v974_v46, inf  ;;  %v956_v25 = vshll.u32 %v955_v43, 16 }
 0x34f   :  { %938 = vmin.xlane.f32.xlu2 %v937_v6  ;;  %987 = vst.msk [vmem:[%s2563_s6] sm:$0xff] %vm986_vm14, %v775_v42  ;;  %v886_v22 = vshll.u32 %v885_v54, 16  ;;  %v900_v6 = vshll.u32 %v899_v62, 16 }
 0x353   :  { %v1116_v15 = vpop.f32.mrf.mxu3 }
 0x354   :  { %v1277_v31 = vpack.c.bf16 %v1116_v15, %v1114_v1 }
 0x355   :  { %v1096_v32 = vpop.f32.mrf.mxu1 }
 0x356   :  { %966 = vmin.xlane.f32.xlu1 %v965_v33  ;;  %1289 = vst [vmem:[%s2562_s5 + $0x30] sm:$0xff] %v1277_v31   ;;  %v1257_v35 = vpack.c.bf16 %v1096_v32, %v1094_v48  ;;  %v815_v33 = vcvt.f32.s32 %v2402_v37 }
 0x357   :  { %854 = vmin.xlane.f32.xlu2 %v853_v9 }
 0x358   :  { %1285 = vst [vmem:[%s2562_s5 + $0x10] sm:$0xff] %v1257_v35   ;;  %v816_v35 = vshll.u32 %v815_v33, 16 }
 0x35b   :  { %v1119_v56 = vpop.f32.mrf.mxu3 }
 0x35f   :  { %980 = vmin.xlane.f32.xlu2 %v979_v26  ;;  %v844_v26 = vshll.u32 %v843_v40, 16 }
 0x363   :  { %v1121_v39 = vpop.f32.mrf.mxu3 }
 0x364   :  { %v1282_v61 = vpack.c.bf16 %v1121_v39, %v1119_v56  ;;  %v941_v56 = vcvt.f32.s32 %v2445_v4 }
 0x366   :  { %1290 = vst [vmem:[%s2562_s5 + $0x38] sm:$0xff] %v1282_v61  }
 0x394   :  { %v911_v63 = vpop.xlane.xlu0 %910 }
 0x395   :  { %v912_v19 = vcvt.f32.s32 %v911_v63  ;;  %v942_v63 = vshll.u32 %v941_v56, 16 }
 0x397   :  { %v915_v50 = vadd.s32 %v914_v58, %v912_v19  ;;  %v969_v58 = vcvt.f32.s32 %v2436_v41  ;;  %v857_v19 = vcvt.f32.s32 %v2412_v3  ;;  %v983_v3 = vcvt.f32.s32 %v2468_v60 }
 0x399   :  { %997 = vst.msk [vmem:[%s2563_s6 + $0x50] sm:$0xff] %vm986_vm14, %v915_v50  ;;  %v970_v53 = vshll.u32 %v969_v58, 16 }
 0x39c   :  { %v827_v13 = vpop.xlane.xlu0 %826 }
 0x39d   :  { %v828_v28 = vcvt.f32.s32 %v827_v13 }
 0x39f   :  { %v831_v17 = vadd.s32 %v830_v57, %v828_v28  ;;  %v858_v28 = vshll.u32 %v857_v19, 16 }
 0x3a1   :  { %v883_v45 = vpop.xlane.xlu1 %882  ;;  %991 = vst.msk [vmem:[%s2563_s6 + $0x20] sm:$0xff] %vm986_vm14, %v831_v17  ;;  %v984_v17 = vshll.u32 %v983_v3, 16 }
 0x3a2   :  { %v884_v20 = vcvt.f32.s32 %v883_v45 }
 0x3a4   :  { %v887_v44 = vadd.s32 %v886_v22, %v884_v20  ;;  %v869_v55 = vpop.xlane.xlu0 %868 }
 0x3a5   :  { %v1099_v59 = vpop.f32.mrf.mxu1  ;;  %v870_v5 = vcvt.f32.s32 %v869_v55 }
 0x3a6   :  { %995 = vst.msk [vmem:[%s2563_s6 + $0x40] sm:$0xff] %vm986_vm14, %v887_v44 }
 0x3a7   :  { %v873_v14 = vadd.s32 %v872_v21, %v870_v5 }
 0x3a9   :  { %v785_v16 = vpop.xlane.xlu1 %784  ;;  %994 = vst.msk [vmem:[%s2563_s6 + $0x38] sm:$0xff] %vm986_vm14, %v873_v14 }
 0x3aa   :  { %v786_v38 = vcvt.f32.s32 %v785_v16 }
 0x3ac   :  { %v789_v8 = vadd.s32 %v788_v51, %v786_v38  ;;  %v953_v0 = vpop.xlane.xlu0 %952 }
 0x3ad   :  { %v1101_v36 = vpop.f32.mrf.mxu1  ;;  %v954_v18 = vcvt.f32.s32 %v953_v0 }
 0x3ae   :  { %988 = vst.msk [vmem:[%s2563_s6 + $0x8] sm:$0xff] %vm986_vm14, %v789_v8  ;;  %v1262_v24 = vpack.c.bf16 %v1101_v36, %v1099_v59 }
 0x3af   :  { %v957_v34 = vadd.s32 %v956_v25, %v954_v18 }
 0x3b0   :  { %1286 = vst [vmem:[%s2562_s5 + $0x18] sm:$0xff] %v1262_v24  }
 0x3b1   :  { %v799_v1 = vpop.xlane.xlu1 %798  ;;  %1000 = vst.msk [vmem:[%s2563_s6 + $0x68] sm:$0xff] %vm986_vm14, %v957_v34 }
 0x3b2   :  { %v800_v11 = vcvt.f32.s32 %v799_v1  ;;  %v897_v42 = vpop.xlane.xlu2 %896 }
 0x3b3   :  { %v898_v2 = vcvt.f32.s32 %v897_v42 }
 0x3b4   :  { %v803_v48 = vadd.s32 %v802_v10, %v800_v11 }
 0x3b5   :  { %v901_v49 = vadd.s32 %v900_v6, %v898_v2 }
 0x3b6   :  { %989 = vst.msk [vmem:[%s2563_s6 + $0x10] sm:$0xff] %vm986_vm14, %v803_v48 }
 0x3b7   :  { %996 = vst.msk [vmem:[%s2563_s6 + $0x48] sm:$0xff] %vm986_vm14, %v901_v49 }
 0x3b9   :  { %v925_v15 = vpop.xlane.xlu1 %924 }
 0x3ba   :  { %v926_v31 = vcvt.f32.s32 %v925_v15  ;;  %v813_v32 = vpop.xlane.xlu2 %812 }
 0x3bb   :  { %v814_v12 = vcvt.f32.s32 %v813_v32 }
 0x3bc   :  { %v929_v9 = vadd.s32 %v928_v7, %v926_v31 }
 0x3bd   :  { %v817_v37 = vadd.s32 %v816_v35, %v814_v12 }
 0x3be   :  { %998 = vst.msk [vmem:[%s2563_s6 + $0x58] sm:$0xff] %vm986_vm14, %v929_v9 }
 0x3bf   :  { %990 = vst.msk [vmem:[%s2563_s6 + $0x18] sm:$0xff] %vm986_vm14, %v817_v37 }
 0x3c1   :  { %v841_v46 = vpop.xlane.xlu1 %840 }
 0x3c2   :  { %v842_v39 = vcvt.f32.s32 %v841_v46  ;;  %v939_v61 = vpop.xlane.xlu2 %938 }
 0x3c3   :  { %v940_v30 = vcvt.f32.s32 %v939_v61 }
 0x3c4   :  { %v845_v52 = vadd.s32 %v844_v26, %v842_v39 }
 0x3c5   :  { %v943_v4 = vadd.s32 %v942_v63, %v940_v30 }
 0x3c6   :  { %992 = vst.msk [vmem:[%s2563_s6 + $0x28] sm:$0xff] %vm986_vm14, %v845_v52 }
 0x3c7   :  { %999 = vst.msk [vmem:[%s2563_s6 + $0x60] sm:$0xff] %vm986_vm14, %v943_v4 }
 0x3c9   :  { %v967_v50 = vpop.xlane.xlu1 %966 }
 0x3ca   :  { %v968_v54 = vcvt.f32.s32 %v967_v50  ;;  %v855_v13 = vpop.xlane.xlu2 %854 }
 0x3cb   :  { %v856_v41 = vcvt.f32.s32 %v855_v13 }
 0x3cc   :  { %v971_v57 = vadd.s32 %v970_v53, %v968_v54 }
 0x3cd   :  { %v859_v45 = vadd.s32 %v858_v28, %v856_v41 }
 0x3ce   :  { %1001 = vst.msk [vmem:[%s2563_s6 + $0x70] sm:$0xff] %vm986_vm14, %v971_v57 }
 0x3cf   :  { %993 = vst.msk [vmem:[%s2563_s6 + $0x30] sm:$0xff] %vm986_vm14, %v859_v45 }
 0x3d2   :  { %v981_v22 = vpop.xlane.xlu2 %980 }
 0x3d3   :  { %v982_v20 = vcvt.f32.s32 %v981_v22 }
 0x3d5   :  { %v985_v27 = vadd.s32 %v984_v17, %v982_v20 }
 0x3d7   :  { %1002 = vst.msk [vmem:[%s2563_s6 + $0x78] sm:$0xff] %vm986_vm14, %v985_v27 }

// kernel: vqvae_forward.25
= control target key start
LH: loop header
LB: loop body
LE: loop exit
PB: predicated region body
PF: predicated region fallthrough
CT: control target
= control target key end

     0   :  { %s844_s12 = smov 0   ;;  %s846_s13 = smov 0   ;;  %s929_s0 = inlined_call_operand.vmem [shape: bf16[256,128], index: 0, kind: input, shape index: {}]   ;;  %s930_s1 = inlined_call_operand.vmem [shape: bf16[128,128], index: 1, kind: input, shape index: {}]   ;;  %s931_s2 = inlined_call_operand.vmem [shape: f32[1,128], index: 2, kind: input, shape index: {}]   ;;  %s932_s3 = inlined_call_operand.vmem [shape: f32[256,128], index: 3, kind: output, shape index: {}]  }
   0x1   :  { %s848_s14 = smov 0  }
   0x2 LB: > { %s32_s15 = sadd.s32 1, %s818_s13  ;;  %p664_p0 = scmp.ge.s32.totalorder %s822_s14, 1  ;;  %s822_s14 = sphi %s848_s14, %s13_s14   ;;  %s818_s13 = sphi %s846_s13, %s934_s13   ;;  %s814_s12 = sphi %s844_s12, %s933_s12  }
   0x3   : > { %p34_p1 = scmp.ge.s32.totalorder %s32_s15, 2  ;;  %p181_p2 = scmp.lt.s32.totalorder %s822_s14, 3 }
   0x5   : > { %s936_s15 = smov (%p34_p1, %s32_s15), 0  ;;  %p182_p3 = pnand %p664_p0, %p181_p2 }
   0x6   : > { %s665_s24 = sshll.u32 (!%p182_p3), %s814_s12, 4 }
   0x7   : > { %185 = sbr.rel (%p182_p3) target bundleno = 205 (0xcd), region = 32  ;;  %p219_p4 = scmp.lt.s32.totalorder (!%p182_p3), %s665_s24, 31 }
   0xc   : > { %v750_v0 = vld [vmem:[%s930_s1 + $0x38] sm:$0xff]  ;;  %v749_v1 = vld [vmem:[%s930_s1 + $0x30] sm:$0xff]  ;;  %v748_v2 = vld [vmem:[%s930_s1 + $0x28] sm:$0xff]  ;;  %s938_s24 = smov (!%p219_p4, %s665_s24), 31 }
   0xd   : > { %412 = vmatpush.bf16.msra.mxu0 %v750_v0  ;;  %751 = vmatpush.bf16.msra.mxu1 %v750_v0  ;;  %v747_v3 = vld [vmem:[%s930_s1 + $0x20] sm:$0xff]  ;;  %v746_v4 = vld [vmem:[%s930_s1 + $0x18] sm:$0xff]  ;;  %v745_v5 = vld [vmem:[%s930_s1 + $0x10] sm:$0xff]  ;;  %s666_s4 = sshll.u32 %s938_s24, 2  ;;  %s668_s10 = sshll.u32 %s938_s24, 3 }
   0xe   : > { %752 = vmatpush.bf16.msra.mxu2 %v750_v0  ;;  %753 = vmatpush.bf16.msra.mxu3 %v750_v0  ;;  %v744_v6 = vld [vmem:[%s930_s1 + $0x8] sm:$0xff]  ;;  %v743_v7 = vld [vmem:[%s930_s1] sm:$0xff]  ;;  %s225_s9 = scalar_lea.vmem %s929_s0, %s666_s4  ;;  %s902_s18 = scalar_lea.vmem %s932_s3, %s668_s10 }
   0xf   : > { %v735_v8 = vld [vmem:[%s225_s9] sm:$0xff]  ;;  %v737_v9 = vld [vmem:[%s225_s9 + $0x10] sm:$0xff]  ;;  %v736_v12 = vld [vmem:[%s225_s9 + $0x8] sm:$0xff] }
  0x10   : > { %v739_v10 = vld [vmem:[%s225_s9 + $0x20] sm:$0xff]  ;;  %v741_v11 = vld [vmem:[%s225_s9 + $0x30] sm:$0xff]  ;;  %v738_v13 = vld [vmem:[%s225_s9 + $0x18] sm:$0xff] }
  0x11   : > { %413 = vmatpush.bf16.msra.mxu0 %v749_v1  ;;  %754 = vmatpush.bf16.msra.mxu1 %v749_v1  ;;  %v740_v14 = vld [vmem:[%s225_s9 + $0x28] sm:$0xff]  ;;  %v742_v15 = vld [vmem:[%s225_s9 + $0x38] sm:$0xff]  ;;  %v799_v16 = vld [vmem:[%s931_s2] ss:$0 sm:$0xff] }
  0x12   : > { %755 = vmatpush.bf16.msra.mxu2 %v749_v1  ;;  %756 = vmatpush.bf16.msra.mxu3 %v749_v1 }
  0x15   : > { %414 = vmatpush.bf16.msra.mxu0 %v748_v2  ;;  %757 = vmatpush.bf16.msra.mxu1 %v748_v2 }
  0x16   : > { %758 = vmatpush.bf16.msra.mxu2 %v748_v2  ;;  %759 = vmatpush.bf16.msra.mxu3 %v748_v2 }
  0x19   : > { %415 = vmatpush.bf16.msra.mxu0 %v747_v3  ;;  %760 = vmatpush.bf16.msra.mxu1 %v747_v3 }
  0x1a   : > { %761 = vmatpush.bf16.msra.mxu2 %v747_v3  ;;  %762 = vmatpush.bf16.msra.mxu3 %v747_v3 }
  0x1d   : > { %416 = vmatpush.bf16.msra.mxu0 %v746_v4  ;;  %763 = vmatpush.bf16.msra.mxu1 %v746_v4 }
  0x1e   : > { %764 = vmatpush.bf16.msra.mxu2 %v746_v4  ;;  %765 = vmatpush.bf16.msra.mxu3 %v746_v4 }
  0x21   : > { %417 = vmatpush.bf16.msra.mxu0 %v745_v5  ;;  %766 = vmatpush.bf16.msra.mxu1 %v745_v5 }
  0x22   : > { %767 = vmatpush.bf16.msra.mxu2 %v745_v5  ;;  %768 = vmatpush.bf16.msra.mxu3 %v745_v5 }
  0x25   : > { %418 = vmatpush.bf16.msra.mxu0 %v744_v6  ;;  %769 = vmatpush.bf16.msra.mxu1 %v744_v6 }
  0x26   : > { %770 = vmatpush.bf16.msra.mxu2 %v744_v6  ;;  %771 = vmatpush.bf16.msra.mxu3 %v744_v6 }
  0x29   : > { %419 = vmatpush.bf16.msra.mxu0 %v743_v7  ;;  %772 = vmatpush.bf16.msra.mxu1 %v743_v7 }
  0x2a   : > { %773 = vmatpush.bf16.msra.mxu2 %v743_v7  ;;  %774 = vmatpush.bf16.msra.mxu3 %v743_v7 }
  0x2c   : > { %420 = vmatmul.bf16.vlgmr.msra.gmra.mxu0 %v735_v8  ;;  %430 = vmatmul.bf16.vlgmr.msra.gmra.mxu1 %v737_v9 }
  0x2d   : > { %440 = vmatmul.bf16.vlgmr.msra.gmra.mxu2 %v739_v10  ;;  %450 = vmatmul.bf16.vlgmr.msra.gmra.mxu3 %v741_v11 }
  0x3c   : > { %425 = vmatmul.bf16.gmra.mxu0 %v736_v12  ;;  %435 = vmatmul.bf16.gmra.mxu1 %v738_v13 }
  0x3d   : > { %445 = vmatmul.bf16.gmra.mxu2 %v740_v14  ;;  %455 = vmatmul.bf16.gmra.mxu3 %v742_v15 }
  0xa9   : > { %v421_v17 = vpop.f32.mrf.mxu0  ;;  %v431_v18 = vpop.f32.mrf.mxu1 }
  0xaa   : > { %v516_v19 = vadd.f32 %v799_v16, %v421_v17  ;;  %v520_v20 = vadd.f32 %v799_v16, %v431_v18 }
  0xac   : > { %532 = vst [vmem:[%s902_s18] sm:$0xff] %v516_v19 }
  0xad   : > { %536 = vst [vmem:[%s902_s18 + $0x20] sm:$0xff] %v520_v20 }
  0xb0   : > { %v441_v21 = vpop.f32.mrf.mxu2  ;;  %v451_v22 = vpop.f32.mrf.mxu3 }
  0xb1   : > { %v524_v23 = vadd.f32 %v799_v16, %v441_v21  ;;  %v528_v24 = vadd.f32 %v799_v16, %v451_v22  ;;  %v423_v25 = vpop.f32.mrf.mxu0  ;;  %v433_v26 = vpop.f32.mrf.mxu1 }
  0xb2   : > { %v517_v27 = vadd.f32 %v799_v16, %v423_v25  ;;  %v521_v28 = vadd.f32 %v799_v16, %v433_v26 }
  0xb3   : > { %540 = vst [vmem:[%s902_s18 + $0x40] sm:$0xff] %v524_v23 }
  0xb4   : > { %544 = vst [vmem:[%s902_s18 + $0x60] sm:$0xff] %v528_v24 }
  0xb5   : > { %533 = vst [vmem:[%s902_s18 + $0x8] sm:$0xff] %v517_v27 }
  0xb6   : > { %537 = vst [vmem:[%s902_s18 + $0x28] sm:$0xff] %v521_v28 }
  0xb8   : > { %v443_v29 = vpop.f32.mrf.mxu2  ;;  %v453_v30 = vpop.f32.mrf.mxu3 }
  0xb9   : > { %v525_v31 = vadd.f32 %v799_v16, %v443_v29  ;;  %v529_v32 = vadd.f32 %v799_v16, %v453_v30  ;;  %v426_v33 = vpop.f32.mrf.mxu0  ;;  %v436_v34 = vpop.f32.mrf.mxu1 }
  0xba   : > { %v518_v35 = vadd.f32 %v799_v16, %v426_v33  ;;  %v522_v36 = vadd.f32 %v799_v16, %v436_v34 }
  0xbb   : > { %541 = vst [vmem:[%s902_s18 + $0x48] sm:$0xff] %v525_v31 }
  0xbc   : > { %545 = vst [vmem:[%s902_s18 + $0x68] sm:$0xff] %v529_v32 }
  0xbd   : > { %534 = vst [vmem:[%s902_s18 + $0x10] sm:$0xff] %v518_v35 }
  0xbe   : > { %538 = vst [vmem:[%s902_s18 + $0x30] sm:$0xff] %v522_v36 }
  0xc0   : > { %v446_v37 = vpop.f32.mrf.mxu2  ;;  %v456_v38 = vpop.f32.mrf.mxu3 }
  0xc1   : > { %v526_v39 = vadd.f32 %v799_v16, %v446_v37  ;;  %v530_v40 = vadd.f32 %v799_v16, %v456_v38  ;;  %v428_v41 = vpop.f32.mrf.mxu0  ;;  %v438_v42 = vpop.f32.mrf.mxu1 }
  0xc2   : > { %v519_v43 = vadd.f32 %v799_v16, %v428_v41  ;;  %v523_v44 = vadd.f32 %v799_v16, %v438_v42 }
  0xc3   : > { %542 = vst [vmem:[%s902_s18 + $0x50] sm:$0xff] %v526_v39 }
  0xc4   : > { %546 = vst [vmem:[%s902_s18 + $0x70] sm:$0xff] %v530_v40 }
  0xc5   : > { %535 = vst [vmem:[%s902_s18 + $0x18] sm:$0xff] %v519_v43 }
  0xc6   : > { %539 = vst [vmem:[%s902_s18 + $0x38] sm:$0xff] %v523_v44 }
  0xc8   : > { %v448_v45 = vpop.f32.mrf.mxu2  ;;  %v458_v46 = vpop.f32.mrf.mxu3 }
  0xc9   : > { %v527_v47 = vadd.f32 %v799_v16, %v448_v45  ;;  %v531_v48 = vadd.f32 %v799_v16, %v458_v46 }
  0xcb   : > { %543 = vst [vmem:[%s902_s18 + $0x58] sm:$0xff] %v527_v47 }
  0xcc   : > { %547 = vst [vmem:[%s902_s18 + $0x78] sm:$0xff] %v531_v48 }
  0xcd PF: > { %s13_s14 = sadd.s32 1, %s822_s14   ;;  %s933_s12 = smov %s818_s13 }
  0xce   : > { %p10_p5 = scmp.ge.s32.totalorder %s13_s14, 4   ;;  %s934_s13 = smov %s936_s15 }
  0xd0   :  { %12 = sbr.rel (!%p10_p5) target bundleno = 2 (0x2), region = 77 }

// kernel: squeeze.1
= control target key start
LH: loop header
LB: loop body
LE: loop exit
PB: predicated region body
PF: predicated region fallthrough
CT: control target
= control target key end

     0   :  { %s80_s0 = inlined_call_operand.vmem [shape: s32[32], index: 0, kind: input, shape index: {}]   ;;  %s81_s1 = inlined_call_operand.hbm [shape: s32[2,16], index: 1, kind: output, shape index: {}]  }
   0x1   :  { %v5_v0 = vld [vmem:[%s80_s0] sm:$0x1] }
   0x2   :  { %2 = vsyncpa [#allocation1], 0  ;;  %6 = vst [vmem:[#allocation3] sm:$0x1] %v5_v0  ;;  %vm8_vm0 = vcmask 130048   ;;  %s62_s0 = smov 112  }
   0x3   :  { %s63_s8 = smov [#allocation0]   ;;  %s27_s1 = sshll.u32 %s81_s1, 4  ;;  %s28_s1 = int_to_ptr.hbm [resolvable:$true] %s27_s1 }
   0x4   :  { %s25_s9 = sshll.u32 %s63_s8, 4  ;;  %s26_s9 = int_to_ptr.vmem [resolvable:$true] %s25_s9 }
   0x9   :  { %v10_v1 = vld [vmem:[#allocation3] sm:$0x1]  }
   0xa   :  { %v7_v2 = vld [vmem:[#allocation3] sm:$0x1]   ;;  %11 = vrot.lane.b32.xlu0 %v10_v1, %s62_s0 }
   0xb   :  { %9 = vst.msk [vmem:[#allocation2] sm:$0x1] %vm8_vm0, %v7_v2  }
  0x7c   :  { %v12_v3 = vpop.permute.xlu0 %11  }
  0x7d   :  { %15 = vst.msk [vmem:[#allocation2 + $0x1] sm:$0x1] %vm8_vm0, %v12_v3  }
  0x84   :  { %v18_v4 = vld [vmem:[#allocation2] sm:$0x3] }
  0x85   :  { %21 = vst [vmem:[#allocation0] sm:$0x3] %v18_v4 }
  0x86   :  { %30 = dma.vmem_to_hbm [thread:$0]  %s26_s9, 32, %s28_s1, [#allocation1]  }
  0x87   :  { %60 = dma.done.wait [#allocation1], 32  }
  0x88   :  { %61 = vsyncadd [#allocation1], 4294967264 }
  0x89   :  { %33 = vsyncpa [#allocation1], 1 }

</bundles_post_ra>
